<compile_context>
chip_gen: v6e
topology: v6e:2x2x1
jax: 0.10.0
libtpu: 0.0.40
codegen_flags: <defaults>
</compile_context>

<pallas_src>
import jax
import jax.numpy as jnp
import numpy as np
from jax.experimental import pallas as pl
from jax.experimental.pallas import tpu as pltpu

EPS = 1e-6
NEG_INF = -1e30
OUT_PAD = 128  # lane-dense padded width for the final 2-logit projection


# ----------------------------- in-kernel helpers ----------------------------
def _ln(x):
    # LayerNorm with gamma=1, beta=0 (as in the PyTorch module), eps=1e-6.
    mean = jnp.mean(x, axis=-1, keepdims=True)
    var = jnp.mean(jnp.square(x - mean), axis=-1, keepdims=True)
    return (x - mean) * jax.lax.rsqrt(var + EPS)


def _softmax(s):
    m = jnp.max(s, axis=-1, keepdims=True)
    e = jnp.exp(s - m)
    return e * pl.reciprocal(jnp.sum(e, axis=-1, keepdims=True), approx=True)


# --------------------------- fused whole-forward kernel ----------------------
def _make_forward_kernel(turn_nums, conv_layer_nums):
    T, C = turn_nums, conv_layer_nums

    def kernel(ids_col_ref, ids_row_ref, emb_ref,
               sp_ref, sn_ref, attn_add_ref, pair_ok_ref,
               lin_wta_ref, lin_wtb_ref, lin_b_ref,
               dw_ref, db_ref, pwt_ref, pb_ref,
               ff1_wt_ref, ff1_b_ref, ff2_wt_ref, ff2_b_ref,
               out_wta_ref, out_wtb_ref, out_b_ref,
               o_ref):
        f32 = jnp.float32
        bf16 = jnp.bfloat16
        S = ids_col_ref.shape[0]
        V = emb_ref.shape[0]

        # ---- embedding lookup as a one-hot matmul on the (idle) MXU ----
        ids_col = ids_col_ref[...]                                        # (S,1) int32
        onehot = (ids_col == jax.lax.broadcasted_iota(jnp.int32, (S, V), 1)).astype(f32)
        x = jnp.dot(onehot, emb_ref[...], preferred_element_type=f32)     # (S, H)

        # ---- additive masks (built once, reused every turn) ----
        attn_add = attn_add_ref[...]                                      # block-diag self-attn
        valid_col = ids_row_ref[...] != 0                                 # (1, S) non-pad tokens
        # interaction mask: context rows may attend valid question cols of the
        # same batch element, question rows may attend valid context cols.
        inter_add = jnp.where((pair_ok_ref[...] > 0.0) & valid_col, 0.0, NEG_INF)

        sp = sp_ref[...]   # (S,S): row i picks row i-1 of the same segment (else 0)
        sn = sn_ref[...]   # (S,S): row i picks row i+1 of the same segment (else 0)

        x_a, x_b = x, None                       # [x | interaction-att] halves
        for t in range(T):
            # -------- Conv_with_Attention_Block on the stacked tile --------
            if x_b is None:
                h = x_a                          # width already == hidden
            else:
                h = _ln(jnp.dot(x_a.astype(bf16), lin_wta_ref[t],
                                preferred_element_type=f32)
                        + jnp.dot(x_b.astype(bf16), lin_wtb_ref[t],
                                  preferred_element_type=f32)
                        + lin_b_ref[t])

            for ci in range(C):
                k = t * C + ci
                y = _ln(h)
                # depthwise conv (kernel=3, pad=1 along seq) via shift matmuls
                ym1 = jnp.dot(sp, y, preferred_element_type=f32)
                yp1 = jnp.dot(sn, y, preferred_element_type=f32)
                dwk = dw_ref[k]                                           # (3, H)
                y = ym1 * dwk[0:1, :] + y * dwk[1:2, :] + yp1 * dwk[2:3, :] + db_ref[k]
                # pointwise conv
                y = jnp.dot(y.astype(bf16), pwt_ref[k],
                            preferred_element_type=f32) + pb_ref[k]
                h = y + h                                                 # residual

            # self-attention (Q=K=V=LN(h)), block-diagonal over segments + residual
            y = _ln(h)
            yb = y.astype(bf16)
            sc = jax.lax.dot_general(yb, yb, (((1,), (1,)), ((), ())),
                                     preferred_element_type=f32)          # (S, S)
            att = jnp.dot(_softmax(sc + attn_add).astype(bf16), yb,
                          preferred_element_type=f32) + h

            # feed-forward + residual
            y = _ln(att)
            ff = jnp.maximum(jnp.dot(y.astype(bf16), ff1_wt_ref[t],
                                     preferred_element_type=f32) + ff1_b_ref[t], 0.0)
            enc = jnp.dot(ff.astype(bf16), ff2_wt_ref[t],
                          preferred_element_type=f32) + ff2_b_ref[t] + att

            # interaction attention: ONE masked softmax gives Q2C (context rows)
            # and C2Q (question rows) simultaneously on the stacked tile.
            eb = enc.astype(bf16)
            sim = jax.lax.dot_general(eb, eb, (((1,), (1,)), ((), ())),
                                      preferred_element_type=f32)         # (S, S)
            att2 = jnp.dot(_softmax(sim + inter_add).astype(bf16), eb,
                           preferred_element_type=f32)                    # (S, H)

            # torch.cat([x, att], dim=2) kept as split halves (split weights)
            x_a, x_b = enc, att2

        # final output projection, lane-dense padded to OUT_PAD columns
        o_ref[...] = (jnp.dot(x_a.astype(bf16), out_wta_ref[...],
                              preferred_element_type=f32)
                      + jnp.dot(x_b.astype(bf16), out_wtb_ref[...],
                                preferred_element_type=f32)
                      + out_b_ref[...])

    return kernel


# ------------------------------ pallas wrapper --------------------------------
def _full(shape):
    nd = len(shape)
    return pl.BlockSpec(tuple(shape), lambda i, _n=nd: (0,) * _n)


@jax.jit
def my_model_forward(prepared, context_ids, question_ids):
    B, Lc = context_ids.shape
    _, Lq = question_ids.shape
    seg = Lc + Lq
    S_total = B * seg
    S_pad = ((S_total + 7) // 8) * 8

    emb = prepared["embedding"]                       # (V_pad, H) f32
    T = prepared["lin_b"].shape[0]
    C = prepared["dw"].shape[0] // T

    # Fold batch + (context, question) onto the sublane axis: one stacked tile.
    ids = jnp.concatenate([context_ids, question_ids], axis=1).reshape(-1)
    ids = jnp.pad(ids, (0, S_pad - S_total)).astype(jnp.int32)
    ids_col = ids.reshape(S_pad, 1)
    ids_row = ids.reshape(1, S_pad)

    # Static structural masks / shift matrices (trace-time numpy constants).
    seg_id = np.full(S_pad, 2 * B, np.int32)          # pad rows: own dummy segment
    batch_id = np.full(S_pad, -1, np.int32)
    is_ctx = np.zeros(S_pad, bool)
    for b in range(B):
        s0 = b * seg
        seg_id[s0:s0 + Lc] = 2 * b
        batch_id[s0:s0 + Lc] = b
        is_ctx[s0:s0 + Lc] = True
        seg_id[s0 + Lc:s0 + seg] = 2 * b + 1
        batch_id[s0 + Lc:s0 + seg] = b
    same_seg = seg_id[:, None] == seg_id[None, :]
    attn_add = np.where(same_seg, 0.0, NEG_INF).astype(np.float32)
    pair_ok = ((batch_id[:, None] == batch_id[None, :])
               & (batch_id[:, None] >= 0)
               & (is_ctx[:, None] != is_ctx[None, :])).astype(np.float32)
    idx = np.arange(S_pad)
    shift_prev = (same_seg & (idx[None, :] == idx[:, None] - 1)).astype(np.float32)
    shift_next = (same_seg & (idx[None, :] == idx[:, None] + 1)).astype(np.float32)

    weights = (prepared["lin_wt_a"], prepared["lin_wt_b"], prepared["lin_b"],
               prepared["dw"], prepared["db"], prepared["pwt"], prepared["pb"],
               prepared["ff1_wt"], prepared["ff1_b"],
               prepared["ff2_wt"], prepared["ff2_b"],
               prepared["out_wt_a"], prepared["out_wt_b"], prepared["out_b"])

    inputs = (ids_col, ids_row, emb,
              jnp.asarray(shift_prev), jnp.asarray(shift_next),
              jnp.asarray(attn_add), jnp.asarray(pair_ok)) + weights

    out = pl.pallas_call(
        _make_forward_kernel(T, C),
        out_shape=jax.ShapeDtypeStruct((S_pad, OUT_PAD), jnp.float32),
        grid=(1,),
        in_specs=[_full(a.shape) for a in inputs],
        out_specs=_full((S_pad, OUT_PAD)),
        compiler_params=pltpu.CompilerParams(
            dimension_semantics=("arbitrary",)),
    )(*inputs)

    logits = out[:S_total].reshape(B, seg, OUT_PAD)[:, :Lc, :2]
    return logits[:, :, 0], logits[:, :, 1]


# -------------------------------- parameters ---------------------------------
def init_params(key, vocab, embed_dim, hidden, inter, turn_nums, conv_layer_nums):
    # torch-layout parameters (same init scheme as the PyTorch module).
    n_keys = 4 + turn_nums * (3 + 2 * conv_layer_nums) * 4
    keys = iter(jax.random.split(key, n_keys))

    def nrm(shape, fan_in):
        return jax.random.normal(next(keys), shape, jnp.float32) * (2.0 / fan_in) ** 0.5

    emb = jax.random.uniform(next(keys), (vocab, embed_dim), jnp.float32, -0.1, 0.1)
    emb = emb.at[0].set(0.0)  # padding_idx=0

    blocks = []
    for _ in range(turn_nums):
        convs = []
        for _ in range(conv_layer_nums):
            convs.append(dict(
                dw=nrm((3, hidden), 3),                 # depthwise (tap, channel)
                db=jnp.zeros((hidden,), jnp.float32),
                pw=nrm((hidden, hidden), hidden),        # pointwise (out, in)
                pb=jnp.zeros((hidden,), jnp.float32)))
        blocks.append(dict(
            lin_w=nrm((hidden, 2 * hidden), 2 * hidden),
            lin_b=jnp.zeros((hidden,), jnp.float32),
            convs=convs,
            ff_w1=nrm((inter, hidden), hidden),
            ff_b1=jnp.zeros((inter,), jnp.float32),
            ff_w2=nrm((hidden, inter), inter),
            ff_b2=jnp.zeros((hidden,), jnp.float32)))
    out_w = nrm((2, 2 * hidden), 2 * hidden)
    out_b = jnp.zeros((2,), jnp.float32)
    return dict(embedding=emb, blocks=blocks, out_w=out_w, out_b=out_b)


def prepare_params(params, hidden, inter):
    # One-time re-layout: transpose / stack / split / pad / cast all weights into
    # kernel-ready form so the forward HLO carries zero transposes/reshapes.
    bf16 = jnp.bfloat16
    blocks = params["blocks"]
    lin_wt = [b["lin_w"].T for b in blocks]                               # (2H, H)
    lin_wt_a = jnp.stack([w[:hidden] for w in lin_wt]).astype(bf16)       # (T, H, H)
    lin_wt_b = jnp.stack([w[hidden:] for w in lin_wt]).astype(bf16)       # (T, H, H)
    lin_b = jnp.stack([b["lin_b"].reshape(1, hidden) for b in blocks])    # (T, 1, H)
    dw = jnp.stack([c["dw"] for b in blocks for c in b["convs"]])         # (T*C, 3, H)
    db = jnp.stack([c["db"].reshape(1, hidden) for b in blocks for c in b["convs"]])
    pwt = jnp.stack([c["pw"].T for b in blocks for c in b["convs"]]).astype(bf16)
    pb = jnp.stack([c["pb"].reshape(1, hidden) for b in blocks for c in b["convs"]])
    ff1_wt = jnp.stack([b["ff_w1"].T for b in blocks]).astype(bf16)       # (T, H, I)
    ff1_b = jnp.stack([b["ff_b1"].reshape(1, inter) for b in blocks])     # (T, 1, I)
    ff2_wt = jnp.stack([b["ff_w2"].T for b in blocks]).astype(bf16)       # (T, I, H)
    ff2_b = jnp.stack([b["ff_b2"].reshape(1, hidden) for b in blocks])    # (T, 1, H)

    out_wt = params["out_w"].T                                            # (2H, 2)
    out_wt_a = (jnp.zeros((hidden, OUT_PAD), jnp.float32)
                .at[:, :2].set(out_wt[:hidden]).astype(bf16))
    out_wt_b = (jnp.zeros((hidden, OUT_PAD), jnp.float32)
                .at[:, :2].set(out_wt[hidden:]).astype(bf16))
    out_b = jnp.zeros((1, OUT_PAD), jnp.float32).at[:, :2].set(params["out_b"])

    emb = params["embedding"]
    vocab, edim = emb.shape
    v_pad = ((vocab + 127) // 128) * 128                                  # lane-dense one-hot
    emb_pad = jnp.zeros((v_pad, edim), jnp.float32).at[:vocab].set(emb)

    return dict(embedding=emb_pad,
                lin_wt_a=lin_wt_a, lin_wt_b=lin_wt_b, lin_b=lin_b,
                dw=dw, db=db, pwt=pwt, pb=pb,
                ff1_wt=ff1_wt, ff1_b=ff1_b, ff2_wt=ff2_wt, ff2_b=ff2_b,
                out_wt_a=out_wt_a, out_wt_b=out_wt_b, out_b=out_b)


# ----------------------------------- main ------------------------------------
if __name__ == "__main__":
    B, LC, LQ = 2, 16, 8
    VOCAB, EMBED_DIM, HIDDEN, INTER = 50, 32, 32, 64
    TURN_NUMS, CONV_LAYER_NUMS = 2, 2

    key = jax.random.PRNGKey(0)
    kp, kc, kq = jax.random.split(key, 3)
    params = init_params(kp, VOCAB, EMBED_DIM, HIDDEN, INTER, TURN_NUMS, CONV_LAYER_NUMS)
    prepared = prepare_params(params, HIDDEN, INTER)

    context_ids = jax.random.randint(kc, (B, LC), 1, VOCAB, dtype=jnp.int32)
    question_ids = jax.random.randint(kq, (B, LQ), 1, VOCAB, dtype=jnp.int32)
    # a couple of padding tokens (id 0) to exercise the mask path
    context_ids = context_ids.at[:, -1].set(0)
    question_ids = question_ids.at[:, -1].set(0)

    start_logits, end_logits = my_model_forward(prepared, context_ids, question_ids)
    jax.block_until_ready((start_logits, end_logits))

    assert start_logits.shape == (B, LC) and end_logits.shape == (B, LC)
    assert bool(jnp.all(jnp.isfinite(start_logits))) and bool(jnp.all(jnp.isfinite(end_logits)))
    print("KERNEL_OK")
</pallas_src>

<mosaic_0001>
module attributes {stable_mosaic.version = 11 : i64} {
  func.func @kernel(%arg0: i32, %arg1: memref<48x1xi32, #tpu.memory_space<vmem>>, %arg2: memref<1x48xi32, #tpu.memory_space<vmem>>, %arg3: memref<128x32xf32, #tpu.memory_space<vmem>>, %arg4: memref<48x48xf32, #tpu.memory_space<vmem>>, %arg5: memref<48x48xf32, #tpu.memory_space<vmem>>, %arg6: memref<48x48xf32, #tpu.memory_space<vmem>>, %arg7: memref<48x48xf32, #tpu.memory_space<vmem>>, %arg8: memref<2x32x32xbf16, #tpu.memory_space<vmem>>, %arg9: memref<2x32x32xbf16, #tpu.memory_space<vmem>>, %arg10: memref<2x1x32xf32, #tpu.memory_space<vmem>>, %arg11: memref<4x3x32xf32, #tpu.memory_space<vmem>>, %arg12: memref<4x1x32xf32, #tpu.memory_space<vmem>>, %arg13: memref<4x32x32xbf16, #tpu.memory_space<vmem>>, %arg14: memref<4x1x32xf32, #tpu.memory_space<vmem>>, %arg15: memref<2x32x64xbf16, #tpu.memory_space<vmem>>, %arg16: memref<2x1x64xf32, #tpu.memory_space<vmem>>, %arg17: memref<2x64x32xbf16, #tpu.memory_space<vmem>>, %arg18: memref<2x1x32xf32, #tpu.memory_space<vmem>>, %arg19: memref<32x128xbf16, #tpu.memory_space<vmem>>, %arg20: memref<32x128xbf16, #tpu.memory_space<vmem>>, %arg21: memref<1x128xf32, #tpu.memory_space<vmem>>, %arg22: memref<48x128xf32, #tpu.memory_space<vmem>>) attributes {dimension_semantics = [#tpu.dimension_semantics<arbitrary>], iteration_bounds = array<i64: 1>, scalar_prefetch = 0 : i64, scratch_operands = 0 : i64, tpu.core_type = #tpu.core_type<tc>, window_params = [{pipeline_mode = #tpu.pipeline_mode<synchronous>, transform_indices = @transform_0, window_bounds = array<i64: 48, 1>}, {pipeline_mode = #tpu.pipeline_mode<synchronous>, transform_indices = @transform_1, window_bounds = array<i64: 1, 48>}, {pipeline_mode = #tpu.pipeline_mode<synchronous>, transform_indices = @transform_2, window_bounds = array<i64: 128, 32>}, {pipeline_mode = #tpu.pipeline_mode<synchronous>, transform_indices = @transform_3, window_bounds = array<i64: 48, 48>}, {pipeline_mode = #tpu.pipeline_mode<synchronous>, transform_indices = @transform_4, window_bounds = array<i64: 48, 48>}, {pipeline_mode = #tpu.pipeline_mode<synchronous>, transform_indices = @transform_5, window_bounds = array<i64: 48, 48>}, {pipeline_mode = #tpu.pipeline_mode<synchronous>, transform_indices = @transform_6, window_bounds = array<i64: 48, 48>}, {pipeline_mode = #tpu.pipeline_mode<synchronous>, transform_indices = @transform_7, window_bounds = array<i64: 2, 32, 32>}, {pipeline_mode = #tpu.pipeline_mode<synchronous>, transform_indices = @transform_8, window_bounds = array<i64: 2, 32, 32>}, {pipeline_mode = #tpu.pipeline_mode<synchronous>, transform_indices = @transform_9, window_bounds = array<i64: 2, 1, 32>}, {pipeline_mode = #tpu.pipeline_mode<synchronous>, transform_indices = @transform_10, window_bounds = array<i64: 4, 3, 32>}, {pipeline_mode = #tpu.pipeline_mode<synchronous>, transform_indices = @transform_11, window_bounds = array<i64: 4, 1, 32>}, {pipeline_mode = #tpu.pipeline_mode<synchronous>, transform_indices = @transform_12, window_bounds = array<i64: 4, 32, 32>}, {pipeline_mode = #tpu.pipeline_mode<synchronous>, transform_indices = @transform_13, window_bounds = array<i64: 4, 1, 32>}, {pipeline_mode = #tpu.pipeline_mode<synchronous>, transform_indices = @transform_14, window_bounds = array<i64: 2, 32, 64>}, {pipeline_mode = #tpu.pipeline_mode<synchronous>, transform_indices = @transform_15, window_bounds = array<i64: 2, 1, 64>}, {pipeline_mode = #tpu.pipeline_mode<synchronous>, transform_indices = @transform_16, window_bounds = array<i64: 2, 64, 32>}, {pipeline_mode = #tpu.pipeline_mode<synchronous>, transform_indices = @transform_17, window_bounds = array<i64: 2, 1, 32>}, {pipeline_mode = #tpu.pipeline_mode<synchronous>, transform_indices = @transform_18, window_bounds = array<i64: 32, 128>}, {pipeline_mode = #tpu.pipeline_mode<synchronous>, transform_indices = @transform_19, window_bounds = array<i64: 32, 128>}, {pipeline_mode = #tpu.pipeline_mode<synchronous>, transform_indices = @transform_20, window_bounds = array<i64: 1, 128>}, {pipeline_mode = #tpu.pipeline_mode<synchronous>, transform_indices = @transform_21, window_bounds = array<i64: 48, 128>}]} {
    %c0 = arith.constant 0 : index
    %c0_0 = arith.constant 0 : index
    %0 = vector.load %arg1[%c0, %c0_0] : memref<48x1xi32, #tpu.memory_space<vmem>>, vector<48x1xi32>
    %1 = tpu.iota {dimensions = array<i32: 1>} : vector<48x128xi32>
    %2 = vector.broadcast %0 : vector<48x1xi32> to vector<48x128xi32>
    %3 = arith.cmpi eq, %2, %1 : vector<48x128xi32>
    %4 = arith.extui %3 : vector<48x128xi1> to vector<48x128xi32>
    %5 = arith.sitofp %4 : vector<48x128xi32> to vector<48x128xf32>
    %c0_1 = arith.constant 0 : index
    %c0_2 = arith.constant 0 : index
    %6 = vector.load %arg3[%c0_1, %c0_2] : memref<128x32xf32, #tpu.memory_space<vmem>>, vector<128x32xf32>
    %cst = arith.constant dense<0.000000e+00> : vector<48x32xf32>
    %7 = tpu.matmul %5, %6, %cst {dimension_numbers = #tpu.dot_dimension_numbers<[1], [0], [0], [1], [0, 0, 1, 1], [], []>} : vector<48x128xf32>, vector<128x32xf32>, vector<48x32xf32> -> vector<48x32xf32>
    %c0_3 = arith.constant 0 : index
    %c0_4 = arith.constant 0 : index
    %8 = vector.load %arg6[%c0_3, %c0_4] : memref<48x48xf32, #tpu.memory_space<vmem>>, vector<48x48xf32>
    %c0_5 = arith.constant 0 : index
    %c0_6 = arith.constant 0 : index
    %9 = vector.load %arg2[%c0_5, %c0_6] : memref<1x48xi32, #tpu.memory_space<vmem>>, vector<1x48xi32>
    %c0_i32 = arith.constant 0 : i32
    %10 = vector.broadcast %c0_i32 : i32 to vector<1x48xi32>
    %11 = arith.cmpi ne, %9, %10 : vector<1x48xi32>
    %c0_7 = arith.constant 0 : index
    %c0_8 = arith.constant 0 : index
    %12 = vector.load %arg7[%c0_7, %c0_8] : memref<48x48xf32, #tpu.memory_space<vmem>>, vector<48x48xf32>
    %cst_9 = arith.constant 0.000000e+00 : f32
    %13 = vector.broadcast %cst_9 : f32 to vector<48x48xf32>
    %14 = arith.cmpf ogt, %12, %13 : vector<48x48xf32>
    %15 = vector.broadcast %11 : vector<1x48xi1> to vector<48x48xi1>
    %16 = arith.andi %14, %15 : vector<48x48xi1>
    %cst_10 = arith.constant 0.000000e+00 : f32
    %cst_11 = arith.constant -1.000000e+30 : f32
    %17 = vector.broadcast %cst_10 : f32 to vector<48x48xf32>
    %18 = vector.broadcast %cst_11 : f32 to vector<48x48xf32>
    %19 = arith.select %16, %17, %18 : vector<48x48xi1>, vector<48x48xf32>
    %c0_12 = arith.constant 0 : index
    %c0_13 = arith.constant 0 : index
    %20 = vector.load %arg4[%c0_12, %c0_13] : memref<48x48xf32, #tpu.memory_space<vmem>>, vector<48x48xf32>
    %c0_14 = arith.constant 0 : index
    %c0_15 = arith.constant 0 : index
    %21 = vector.load %arg5[%c0_14, %c0_15] : memref<48x48xf32, #tpu.memory_space<vmem>>, vector<48x48xf32>
    %cst_16 = arith.constant dense<0.000000e+00> : vector<48xf32>
    %22 = vector.multi_reduction <add>, %7, %cst_16 [1] : vector<48x32xf32> to vector<48xf32>
    %23 = vector.shape_cast %22 : vector<48xf32> to vector<48x1xf32>
    %cst_17 = arith.constant 3.200000e+01 : f32
    %24 = vector.broadcast %cst_17 : f32 to vector<48x1xf32>
    %25 = arith.divf %23, %24 : vector<48x1xf32>
    %26 = vector.broadcast %25 : vector<48x1xf32> to vector<48x32xf32>
    %27 = arith.subf %7, %26 : vector<48x32xf32>
    %28 = arith.mulf %27, %27 : vector<48x32xf32>
    %cst_18 = arith.constant dense<0.000000e+00> : vector<48xf32>
    %29 = vector.multi_reduction <add>, %28, %cst_18 [1] : vector<48x32xf32> to vector<48xf32>
    %30 = vector.shape_cast %29 : vector<48xf32> to vector<48x1xf32>
    %cst_19 = arith.constant 3.200000e+01 : f32
    %31 = vector.broadcast %cst_19 : f32 to vector<48x1xf32>
    %32 = arith.divf %30, %31 : vector<48x1xf32>
    %33 = vector.broadcast %25 : vector<48x1xf32> to vector<48x32xf32>
    %34 = arith.subf %7, %33 : vector<48x32xf32>
    %cst_20 = arith.constant 9.99999997E-7 : f32
    %35 = vector.broadcast %cst_20 : f32 to vector<48x1xf32>
    %36 = arith.addf %32, %35 : vector<48x1xf32>
    %37 = math.rsqrt %36 : vector<48x1xf32>
    %38 = vector.broadcast %37 : vector<48x1xf32> to vector<48x32xf32>
    %39 = arith.mulf %34, %38 : vector<48x32xf32>
    %cst_21 = arith.constant dense<0.000000e+00> : vector<48x32xf32>
    %40 = tpu.matmul %20, %39, %cst_21 {dimension_numbers = #tpu.dot_dimension_numbers<[1], [0], [0], [1], [0, 0, 1, 1], [], []>} : vector<48x48xf32>, vector<48x32xf32>, vector<48x32xf32> -> vector<48x32xf32>
    %cst_22 = arith.constant dense<0.000000e+00> : vector<48x32xf32>
    %41 = tpu.matmul %21, %39, %cst_22 {dimension_numbers = #tpu.dot_dimension_numbers<[1], [0], [0], [1], [0, 0, 1, 1], [], []>} : vector<48x48xf32>, vector<48x32xf32>, vector<48x32xf32> -> vector<48x32xf32>
    %c0_23 = arith.constant 0 : index
    %c0_24 = arith.constant 0 : index
    %c0_25 = arith.constant 0 : index
    %42 = vector.load %arg11[%c0_23, %c0_24, %c0_25] : memref<4x3x32xf32, #tpu.memory_space<vmem>>, vector<1x3x32xf32>
    %43 = vector.shape_cast %42 : vector<1x3x32xf32> to vector<3x32xf32>
    %44 = vector.extract_strided_slice %43 {offsets = [0, 0], sizes = [1, 32], strides = [1, 1]} : vector<3x32xf32> to vector<1x32xf32>
    %45 = vector.broadcast %44 : vector<1x32xf32> to vector<48x32xf32>
    %46 = arith.mulf %40, %45 : vector<48x32xf32>
    %47 = vector.extract_strided_slice %43 {offsets = [1, 0], sizes = [1, 32], strides = [1, 1]} : vector<3x32xf32> to vector<1x32xf32>
    %48 = vector.broadcast %47 : vector<1x32xf32> to vector<48x32xf32>
    %49 = arith.mulf %39, %48 : vector<48x32xf32>
    %50 = arith.addf %46, %49 : vector<48x32xf32>
    %51 = vector.extract_strided_slice %43 {offsets = [2, 0], sizes = [1, 32], strides = [1, 1]} : vector<3x32xf32> to vector<1x32xf32>
    %52 = vector.broadcast %51 : vector<1x32xf32> to vector<48x32xf32>
    %53 = arith.mulf %41, %52 : vector<48x32xf32>
    %54 = arith.addf %50, %53 : vector<48x32xf32>
    %c0_26 = arith.constant 0 : index
    %c0_27 = arith.constant 0 : index
    %c0_28 = arith.constant 0 : index
    %55 = vector.load %arg12[%c0_26, %c0_27, %c0_28] : memref<4x1x32xf32, #tpu.memory_space<vmem>>, vector<1x1x32xf32>
    %56 = vector.shape_cast %55 : vector<1x1x32xf32> to vector<1x32xf32>
    %57 = vector.broadcast %56 : vector<1x32xf32> to vector<48x32xf32>
    %58 = arith.addf %54, %57 : vector<48x32xf32>
    %59 = arith.truncf %58 : vector<48x32xf32> to vector<48x32xbf16>
    %c0_29 = arith.constant 0 : index
    %c0_30 = arith.constant 0 : index
    %c0_31 = arith.constant 0 : index
    %60 = vector.load %arg13[%c0_29, %c0_30, %c0_31] : memref<4x32x32xbf16, #tpu.memory_space<vmem>>, vector<1x32x32xbf16>
    %61 = vector.shape_cast %60 : vector<1x32x32xbf16> to vector<32x32xbf16>
    %cst_32 = arith.constant dense<0.000000e+00> : vector<48x32xf32>
    %62 = tpu.matmul %59, %61, %cst_32 {dimension_numbers = #tpu.dot_dimension_numbers<[1], [0], [0], [1], [0, 0, 1, 1], [], []>} : vector<48x32xbf16>, vector<32x32xbf16>, vector<48x32xf32> -> vector<48x32xf32>
    %c0_33 = arith.constant 0 : index
    %c0_34 = arith.constant 0 : index
    %c0_35 = arith.constant 0 : index
    %63 = vector.load %arg14[%c0_33, %c0_34, %c0_35] : memref<4x1x32xf32, #tpu.memory_space<vmem>>, vector<1x1x32xf32>
    %64 = vector.shape_cast %63 : vector<1x1x32xf32> to vector<1x32xf32>
    %65 = vector.broadcast %64 : vector<1x32xf32> to vector<48x32xf32>
    %66 = arith.addf %62, %65 : vector<48x32xf32>
    %67 = arith.addf %66, %7 : vector<48x32xf32>
    %cst_36 = arith.constant dense<0.000000e+00> : vector<48xf32>
    %68 = vector.multi_reduction <add>, %67, %cst_36 [1] : vector<48x32xf32> to vector<48xf32>
    %69 = vector.shape_cast %68 : vector<48xf32> to vector<48x1xf32>
    %cst_37 = arith.constant 3.200000e+01 : f32
    %70 = vector.broadcast %cst_37 : f32 to vector<48x1xf32>
    %71 = arith.divf %69, %70 : vector<48x1xf32>
    %72 = vector.broadcast %71 : vector<48x1xf32> to vector<48x32xf32>
    %73 = arith.subf %67, %72 : vector<48x32xf32>
    %74 = arith.mulf %73, %73 : vector<48x32xf32>
    %cst_38 = arith.constant dense<0.000000e+00> : vector<48xf32>
    %75 = vector.multi_reduction <add>, %74, %cst_38 [1] : vector<48x32xf32> to vector<48xf32>
    %76 = vector.shape_cast %75 : vector<48xf32> to vector<48x1xf32>
    %cst_39 = arith.constant 3.200000e+01 : f32
    %77 = vector.broadcast %cst_39 : f32 to vector<48x1xf32>
    %78 = arith.divf %76, %77 : vector<48x1xf32>
    %79 = vector.broadcast %71 : vector<48x1xf32> to vector<48x32xf32>
    %80 = arith.subf %67, %79 : vector<48x32xf32>
    %cst_40 = arith.constant 9.99999997E-7 : f32
    %81 = vector.broadcast %cst_40 : f32 to vector<48x1xf32>
    %82 = arith.addf %78, %81 : vector<48x1xf32>
    %83 = math.rsqrt %82 : vector<48x1xf32>
    %84 = vector.broadcast %83 : vector<48x1xf32> to vector<48x32xf32>
    %85 = arith.mulf %80, %84 : vector<48x32xf32>
    %cst_41 = arith.constant dense<0.000000e+00> : vector<48x32xf32>
    %86 = tpu.matmul %20, %85, %cst_41 {dimension_numbers = #tpu.dot_dimension_numbers<[1], [0], [0], [1], [0, 0, 1, 1], [], []>} : vector<48x48xf32>, vector<48x32xf32>, vector<48x32xf32> -> vector<48x32xf32>
    %cst_42 = arith.constant dense<0.000000e+00> : vector<48x32xf32>
    %87 = tpu.matmul %21, %85, %cst_42 {dimension_numbers = #tpu.dot_dimension_numbers<[1], [0], [0], [1], [0, 0, 1, 1], [], []>} : vector<48x48xf32>, vector<48x32xf32>, vector<48x32xf32> -> vector<48x32xf32>
    %c1 = arith.constant 1 : index
    %c0_43 = arith.constant 0 : index
    %c0_44 = arith.constant 0 : index
    %88 = vector.load %arg11[%c1, %c0_43, %c0_44] : memref<4x3x32xf32, #tpu.memory_space<vmem>>, vector<1x3x32xf32>
    %89 = vector.shape_cast %88 : vector<1x3x32xf32> to vector<3x32xf32>
    %90 = vector.extract_strided_slice %89 {offsets = [0, 0], sizes = [1, 32], strides = [1, 1]} : vector<3x32xf32> to vector<1x32xf32>
    %91 = vector.broadcast %90 : vector<1x32xf32> to vector<48x32xf32>
    %92 = arith.mulf %86, %91 : vector<48x32xf32>
    %93 = vector.extract_strided_slice %89 {offsets = [1, 0], sizes = [1, 32], strides = [1, 1]} : vector<3x32xf32> to vector<1x32xf32>
    %94 = vector.broadcast %93 : vector<1x32xf32> to vector<48x32xf32>
    %95 = arith.mulf %85, %94 : vector<48x32xf32>
    %96 = arith.addf %92, %95 : vector<48x32xf32>
    %97 = vector.extract_strided_slice %89 {offsets = [2, 0], sizes = [1, 32], strides = [1, 1]} : vector<3x32xf32> to vector<1x32xf32>
    %98 = vector.broadcast %97 : vector<1x32xf32> to vector<48x32xf32>
    %99 = arith.mulf %87, %98 : vector<48x32xf32>
    %100 = arith.addf %96, %99 : vector<48x32xf32>
    %c1_45 = arith.constant 1 : index
    %c0_46 = arith.constant 0 : index
    %c0_47 = arith.constant 0 : index
    %101 = vector.load %arg12[%c1_45, %c0_46, %c0_47] : memref<4x1x32xf32, #tpu.memory_space<vmem>>, vector<1x1x32xf32>
    %102 = vector.shape_cast %101 : vector<1x1x32xf32> to vector<1x32xf32>
    %103 = vector.broadcast %102 : vector<1x32xf32> to vector<48x32xf32>
    %104 = arith.addf %100, %103 : vector<48x32xf32>
    %105 = arith.truncf %104 : vector<48x32xf32> to vector<48x32xbf16>
    %c1_48 = arith.constant 1 : index
    %c0_49 = arith.constant 0 : index
    %c0_50 = arith.constant 0 : index
    %106 = vector.load %arg13[%c1_48, %c0_49, %c0_50] : memref<4x32x32xbf16, #tpu.memory_space<vmem>>, vector<1x32x32xbf16>
    %107 = vector.shape_cast %106 : vector<1x32x32xbf16> to vector<32x32xbf16>
    %cst_51 = arith.constant dense<0.000000e+00> : vector<48x32xf32>
    %108 = tpu.matmul %105, %107, %cst_51 {dimension_numbers = #tpu.dot_dimension_numbers<[1], [0], [0], [1], [0, 0, 1, 1], [], []>} : vector<48x32xbf16>, vector<32x32xbf16>, vector<48x32xf32> -> vector<48x32xf32>
    %c1_52 = arith.constant 1 : index
    %c0_53 = arith.constant 0 : index
    %c0_54 = arith.constant 0 : index
    %109 = vector.load %arg14[%c1_52, %c0_53, %c0_54] : memref<4x1x32xf32, #tpu.memory_space<vmem>>, vector<1x1x32xf32>
    %110 = vector.shape_cast %109 : vector<1x1x32xf32> to vector<1x32xf32>
    %111 = vector.broadcast %110 : vector<1x32xf32> to vector<48x32xf32>
    %112 = arith.addf %108, %111 : vector<48x32xf32>
    %113 = arith.addf %112, %67 : vector<48x32xf32>
    %cst_55 = arith.constant dense<0.000000e+00> : vector<48xf32>
    %114 = vector.multi_reduction <add>, %113, %cst_55 [1] : vector<48x32xf32> to vector<48xf32>
    %115 = vector.shape_cast %114 : vector<48xf32> to vector<48x1xf32>
    %cst_56 = arith.constant 3.200000e+01 : f32
    %116 = vector.broadcast %cst_56 : f32 to vector<48x1xf32>
    %117 = arith.divf %115, %116 : vector<48x1xf32>
    %118 = vector.broadcast %117 : vector<48x1xf32> to vector<48x32xf32>
    %119 = arith.subf %113, %118 : vector<48x32xf32>
    %120 = arith.mulf %119, %119 : vector<48x32xf32>
    %cst_57 = arith.constant dense<0.000000e+00> : vector<48xf32>
    %121 = vector.multi_reduction <add>, %120, %cst_57 [1] : vector<48x32xf32> to vector<48xf32>
    %122 = vector.shape_cast %121 : vector<48xf32> to vector<48x1xf32>
    %cst_58 = arith.constant 3.200000e+01 : f32
    %123 = vector.broadcast %cst_58 : f32 to vector<48x1xf32>
    %124 = arith.divf %122, %123 : vector<48x1xf32>
    %125 = vector.broadcast %117 : vector<48x1xf32> to vector<48x32xf32>
    %126 = arith.subf %113, %125 : vector<48x32xf32>
    %cst_59 = arith.constant 9.99999997E-7 : f32
    %127 = vector.broadcast %cst_59 : f32 to vector<48x1xf32>
    %128 = arith.addf %124, %127 : vector<48x1xf32>
    %129 = math.rsqrt %128 : vector<48x1xf32>
    %130 = vector.broadcast %129 : vector<48x1xf32> to vector<48x32xf32>
    %131 = arith.mulf %126, %130 : vector<48x32xf32>
    %132 = arith.truncf %131 : vector<48x32xf32> to vector<48x32xbf16>
    %cst_60 = arith.constant dense<0.000000e+00> : vector<48x48xf32>
    %133 = tpu.matmul %132, %132, %cst_60 {dimension_numbers = #tpu.dot_dimension_numbers<[1], [1], [0], [0], [0, 0, 1, 0], [], []>} : vector<48x32xbf16>, vector<48x32xbf16>, vector<48x48xf32> -> vector<48x48xf32>
    %134 = arith.addf %133, %8 : vector<48x48xf32>
    %cst_61 = arith.constant dense<0xFF800000> : vector<48xf32>
    %135 = vector.multi_reduction <maximumf>, %134, %cst_61 [1] : vector<48x48xf32> to vector<48xf32>
    %136 = vector.shape_cast %135 : vector<48xf32> to vector<48x1xf32>
    %137 = vector.broadcast %136 : vector<48x1xf32> to vector<48x48xf32>
    %138 = arith.subf %134, %137 : vector<48x48xf32>
    %139 = math.exp %138 : vector<48x48xf32>
    %cst_62 = arith.constant dense<0.000000e+00> : vector<48xf32>
    %140 = vector.multi_reduction <add>, %139, %cst_62 [1] : vector<48x48xf32> to vector<48xf32>
    %141 = vector.shape_cast %140 : vector<48xf32> to vector<48x1xf32>
    %142 = tpu.reciprocal %141 {approx = true} : vector<48x1xf32> -> vector<48x1xf32>
    %143 = vector.broadcast %142 : vector<48x1xf32> to vector<48x48xf32>
    %144 = arith.mulf %139, %143 : vector<48x48xf32>
    %145 = arith.truncf %144 : vector<48x48xf32> to vector<48x48xbf16>
    %cst_63 = arith.constant dense<0.000000e+00> : vector<48x32xf32>
    %146 = tpu.matmul %145, %132, %cst_63 {dimension_numbers = #tpu.dot_dimension_numbers<[1], [0], [0], [1], [0, 0, 1, 1], [], []>} : vector<48x48xbf16>, vector<48x32xbf16>, vector<48x32xf32> -> vector<48x32xf32>
    %147 = arith.addf %146, %113 : vector<48x32xf32>
    %cst_64 = arith.constant dense<0.000000e+00> : vector<48xf32>
    %148 = vector.multi_reduction <add>, %147, %cst_64 [1] : vector<48x32xf32> to vector<48xf32>
    %149 = vector.shape_cast %148 : vector<48xf32> to vector<48x1xf32>
    %cst_65 = arith.constant 3.200000e+01 : f32
    %150 = vector.broadcast %cst_65 : f32 to vector<48x1xf32>
    %151 = arith.divf %149, %150 : vector<48x1xf32>
    %152 = vector.broadcast %151 : vector<48x1xf32> to vector<48x32xf32>
    %153 = arith.subf %147, %152 : vector<48x32xf32>
    %154 = arith.mulf %153, %153 : vector<48x32xf32>
    %cst_66 = arith.constant dense<0.000000e+00> : vector<48xf32>
    %155 = vector.multi_reduction <add>, %154, %cst_66 [1] : vector<48x32xf32> to vector<48xf32>
    %156 = vector.shape_cast %155 : vector<48xf32> to vector<48x1xf32>
    %cst_67 = arith.constant 3.200000e+01 : f32
    %157 = vector.broadcast %cst_67 : f32 to vector<48x1xf32>
    %158 = arith.divf %156, %157 : vector<48x1xf32>
    %159 = vector.broadcast %151 : vector<48x1xf32> to vector<48x32xf32>
    %160 = arith.subf %147, %159 : vector<48x32xf32>
    %cst_68 = arith.constant 9.99999997E-7 : f32
    %161 = vector.broadcast %cst_68 : f32 to vector<48x1xf32>
    %162 = arith.addf %158, %161 : vector<48x1xf32>
    %163 = math.rsqrt %162 : vector<48x1xf32>
    %164 = vector.broadcast %163 : vector<48x1xf32> to vector<48x32xf32>
    %165 = arith.mulf %160, %164 : vector<48x32xf32>
    %166 = arith.truncf %165 : vector<48x32xf32> to vector<48x32xbf16>
    %c0_69 = arith.constant 0 : index
    %c0_70 = arith.constant 0 : index
    %c0_71 = arith.constant 0 : index
    %167 = vector.load %arg15[%c0_69, %c0_70, %c0_71] : memref<2x32x64xbf16, #tpu.memory_space<vmem>>, vector<1x32x64xbf16>
    %168 = vector.shape_cast %167 : vector<1x32x64xbf16> to vector<32x64xbf16>
    %cst_72 = arith.constant dense<0.000000e+00> : vector<48x64xf32>
    %169 = tpu.matmul %166, %168, %cst_72 {dimension_numbers = #tpu.dot_dimension_numbers<[1], [0], [0], [1], [0, 0, 1, 1], [], []>} : vector<48x32xbf16>, vector<32x64xbf16>, vector<48x64xf32> -> vector<48x64xf32>
    %c0_73 = arith.constant 0 : index
    %c0_74 = arith.constant 0 : index
    %c0_75 = arith.constant 0 : index
    %170 = vector.load %arg16[%c0_73, %c0_74, %c0_75] : memref<2x1x64xf32, #tpu.memory_space<vmem>>, vector<1x1x64xf32>
    %171 = vector.shape_cast %170 : vector<1x1x64xf32> to vector<1x64xf32>
    %172 = vector.broadcast %171 : vector<1x64xf32> to vector<48x64xf32>
    %173 = arith.addf %169, %172 : vector<48x64xf32>
    %cst_76 = arith.constant 0.000000e+00 : f32
    %174 = vector.broadcast %cst_76 : f32 to vector<48x64xf32>
    %175 = arith.maximumf %173, %174 : vector<48x64xf32>
    %176 = arith.truncf %175 : vector<48x64xf32> to vector<48x64xbf16>
    %c0_77 = arith.constant 0 : index
    %c0_78 = arith.constant 0 : index
    %c0_79 = arith.constant 0 : index
    %177 = vector.load %arg17[%c0_77, %c0_78, %c0_79] : memref<2x64x32xbf16, #tpu.memory_space<vmem>>, vector<1x64x32xbf16>
    %178 = vector.shape_cast %177 : vector<1x64x32xbf16> to vector<64x32xbf16>
    %cst_80 = arith.constant dense<0.000000e+00> : vector<48x32xf32>
    %179 = tpu.matmul %176, %178, %cst_80 {dimension_numbers = #tpu.dot_dimension_numbers<[1], [0], [0], [1], [0, 0, 1, 1], [], []>} : vector<48x64xbf16>, vector<64x32xbf16>, vector<48x32xf32> -> vector<48x32xf32>
    %c0_81 = arith.constant 0 : index
    %c0_82 = arith.constant 0 : index
    %c0_83 = arith.constant 0 : index
    %180 = vector.load %arg18[%c0_81, %c0_82, %c0_83] : memref<2x1x32xf32, #tpu.memory_space<vmem>>, vector<1x1x32xf32>
    %181 = vector.shape_cast %180 : vector<1x1x32xf32> to vector<1x32xf32>
    %182 = vector.broadcast %181 : vector<1x32xf32> to vector<48x32xf32>
    %183 = arith.addf %179, %182 : vector<48x32xf32>
    %184 = arith.addf %183, %147 : vector<48x32xf32>
    %185 = arith.truncf %184 : vector<48x32xf32> to vector<48x32xbf16>
    %cst_84 = arith.constant dense<0.000000e+00> : vector<48x48xf32>
    %186 = tpu.matmul %185, %185, %cst_84 {dimension_numbers = #tpu.dot_dimension_numbers<[1], [1], [0], [0], [0, 0, 1, 0], [], []>} : vector<48x32xbf16>, vector<48x32xbf16>, vector<48x48xf32> -> vector<48x48xf32>
    %187 = arith.addf %186, %19 : vector<48x48xf32>
    %cst_85 = arith.constant dense<0xFF800000> : vector<48xf32>
    %188 = vector.multi_reduction <maximumf>, %187, %cst_85 [1] : vector<48x48xf32> to vector<48xf32>
    %189 = vector.shape_cast %188 : vector<48xf32> to vector<48x1xf32>
    %190 = vector.broadcast %189 : vector<48x1xf32> to vector<48x48xf32>
    %191 = arith.subf %187, %190 : vector<48x48xf32>
    %192 = math.exp %191 : vector<48x48xf32>
    %cst_86 = arith.constant dense<0.000000e+00> : vector<48xf32>
    %193 = vector.multi_reduction <add>, %192, %cst_86 [1] : vector<48x48xf32> to vector<48xf32>
    %194 = vector.shape_cast %193 : vector<48xf32> to vector<48x1xf32>
    %195 = tpu.reciprocal %194 {approx = true} : vector<48x1xf32> -> vector<48x1xf32>
    %196 = vector.broadcast %195 : vector<48x1xf32> to vector<48x48xf32>
    %197 = arith.mulf %192, %196 : vector<48x48xf32>
    %198 = arith.truncf %197 : vector<48x48xf32> to vector<48x48xbf16>
    %cst_87 = arith.constant dense<0.000000e+00> : vector<48x32xf32>
    %199 = tpu.matmul %198, %185, %cst_87 {dimension_numbers = #tpu.dot_dimension_numbers<[1], [0], [0], [1], [0, 0, 1, 1], [], []>} : vector<48x48xbf16>, vector<48x32xbf16>, vector<48x32xf32> -> vector<48x32xf32>
    %200 = arith.truncf %184 : vector<48x32xf32> to vector<48x32xbf16>
    %c1_88 = arith.constant 1 : index
    %c0_89 = arith.constant 0 : index
    %c0_90 = arith.constant 0 : index
    %201 = vector.load %arg8[%c1_88, %c0_89, %c0_90] : memref<2x32x32xbf16, #tpu.memory_space<vmem>>, vector<1x32x32xbf16>
    %202 = vector.shape_cast %201 : vector<1x32x32xbf16> to vector<32x32xbf16>
    %cst_91 = arith.constant dense<0.000000e+00> : vector<48x32xf32>
    %203 = tpu.matmul %200, %202, %cst_91 {dimension_numbers = #tpu.dot_dimension_numbers<[1], [0], [0], [1], [0, 0, 1, 1], [], []>} : vector<48x32xbf16>, vector<32x32xbf16>, vector<48x32xf32> -> vector<48x32xf32>
    %204 = arith.truncf %199 : vector<48x32xf32> to vector<48x32xbf16>
    %c1_92 = arith.constant 1 : index
    %c0_93 = arith.constant 0 : index
    %c0_94 = arith.constant 0 : index
    %205 = vector.load %arg9[%c1_92, %c0_93, %c0_94] : memref<2x32x32xbf16, #tpu.memory_space<vmem>>, vector<1x32x32xbf16>
    %206 = vector.shape_cast %205 : vector<1x32x32xbf16> to vector<32x32xbf16>
    %cst_95 = arith.constant dense<0.000000e+00> : vector<48x32xf32>
    %207 = tpu.matmul %204, %206, %cst_95 {dimension_numbers = #tpu.dot_dimension_numbers<[1], [0], [0], [1], [0, 0, 1, 1], [], []>} : vector<48x32xbf16>, vector<32x32xbf16>, vector<48x32xf32> -> vector<48x32xf32>
    %208 = arith.addf %203, %207 : vector<48x32xf32>
    %c1_96 = arith.constant 1 : index
    %c0_97 = arith.constant 0 : index
    %c0_98 = arith.constant 0 : index
    %209 = vector.load %arg10[%c1_96, %c0_97, %c0_98] : memref<2x1x32xf32, #tpu.memory_space<vmem>>, vector<1x1x32xf32>
    %210 = vector.shape_cast %209 : vector<1x1x32xf32> to vector<1x32xf32>
    %211 = vector.broadcast %210 : vector<1x32xf32> to vector<48x32xf32>
    %212 = arith.addf %208, %211 : vector<48x32xf32>
    %cst_99 = arith.constant dense<0.000000e+00> : vector<48xf32>
    %213 = vector.multi_reduction <add>, %212, %cst_99 [1] : vector<48x32xf32> to vector<48xf32>
    %214 = vector.shape_cast %213 : vector<48xf32> to vector<48x1xf32>
    %cst_100 = arith.constant 3.200000e+01 : f32
    %215 = vector.broadcast %cst_100 : f32 to vector<48x1xf32>
    %216 = arith.divf %214, %215 : vector<48x1xf32>
    %217 = vector.broadcast %216 : vector<48x1xf32> to vector<48x32xf32>
    %218 = arith.subf %212, %217 : vector<48x32xf32>
    %219 = arith.mulf %218, %218 : vector<48x32xf32>
    %cst_101 = arith.constant dense<0.000000e+00> : vector<48xf32>
    %220 = vector.multi_reduction <add>, %219, %cst_101 [1] : vector<48x32xf32> to vector<48xf32>
    %221 = vector.shape_cast %220 : vector<48xf32> to vector<48x1xf32>
    %cst_102 = arith.constant 3.200000e+01 : f32
    %222 = vector.broadcast %cst_102 : f32 to vector<48x1xf32>
    %223 = arith.divf %221, %222 : vector<48x1xf32>
    %224 = vector.broadcast %216 : vector<48x1xf32> to vector<48x32xf32>
    %225 = arith.subf %212, %224 : vector<48x32xf32>
    %cst_103 = arith.constant 9.99999997E-7 : f32
    %226 = vector.broadcast %cst_103 : f32 to vector<48x1xf32>
    %227 = arith.addf %223, %226 : vector<48x1xf32>
    %228 = math.rsqrt %227 : vector<48x1xf32>
    %229 = vector.broadcast %228 : vector<48x1xf32> to vector<48x32xf32>
    %230 = arith.mulf %225, %229 : vector<48x32xf32>
    %cst_104 = arith.constant dense<0.000000e+00> : vector<48xf32>
    %231 = vector.multi_reduction <add>, %230, %cst_104 [1] : vector<48x32xf32> to vector<48xf32>
    %232 = vector.shape_cast %231 : vector<48xf32> to vector<48x1xf32>
    %cst_105 = arith.constant 3.200000e+01 : f32
    %233 = vector.broadcast %cst_105 : f32 to vector<48x1xf32>
    %234 = arith.divf %232, %233 : vector<48x1xf32>
    %235 = vector.broadcast %234 : vector<48x1xf32> to vector<48x32xf32>
    %236 = arith.subf %230, %235 : vector<48x32xf32>
    %237 = arith.mulf %236, %236 : vector<48x32xf32>
    %cst_106 = arith.constant dense<0.000000e+00> : vector<48xf32>
    %238 = vector.multi_reduction <add>, %237, %cst_106 [1] : vector<48x32xf32> to vector<48xf32>
    %239 = vector.shape_cast %238 : vector<48xf32> to vector<48x1xf32>
    %cst_107 = arith.constant 3.200000e+01 : f32
    %240 = vector.broadcast %cst_107 : f32 to vector<48x1xf32>
    %241 = arith.divf %239, %240 : vector<48x1xf32>
    %242 = vector.broadcast %234 : vector<48x1xf32> to vector<48x32xf32>
    %243 = arith.subf %230, %242 : vector<48x32xf32>
    %cst_108 = arith.constant 9.99999997E-7 : f32
    %244 = vector.broadcast %cst_108 : f32 to vector<48x1xf32>
    %245 = arith.addf %241, %244 : vector<48x1xf32>
    %246 = math.rsqrt %245 : vector<48x1xf32>
    %247 = vector.broadcast %246 : vector<48x1xf32> to vector<48x32xf32>
    %248 = arith.mulf %243, %247 : vector<48x32xf32>
    %cst_109 = arith.constant dense<0.000000e+00> : vector<48x32xf32>
    %249 = tpu.matmul %20, %248, %cst_109 {dimension_numbers = #tpu.dot_dimension_numbers<[1], [0], [0], [1], [0, 0, 1, 1], [], []>} : vector<48x48xf32>, vector<48x32xf32>, vector<48x32xf32> -> vector<48x32xf32>
    %cst_110 = arith.constant dense<0.000000e+00> : vector<48x32xf32>
    %250 = tpu.matmul %21, %248, %cst_110 {dimension_numbers = #tpu.dot_dimension_numbers<[1], [0], [0], [1], [0, 0, 1, 1], [], []>} : vector<48x48xf32>, vector<48x32xf32>, vector<48x32xf32> -> vector<48x32xf32>
    %c2 = arith.constant 2 : index
    %c0_111 = arith.constant 0 : index
    %c0_112 = arith.constant 0 : index
    %251 = vector.load %arg11[%c2, %c0_111, %c0_112] : memref<4x3x32xf32, #tpu.memory_space<vmem>>, vector<1x3x32xf32>
    %252 = vector.shape_cast %251 : vector<1x3x32xf32> to vector<3x32xf32>
    %253 = vector.extract_strided_slice %252 {offsets = [0, 0], sizes = [1, 32], strides = [1, 1]} : vector<3x32xf32> to vector<1x32xf32>
    %254 = vector.broadcast %253 : vector<1x32xf32> to vector<48x32xf32>
    %255 = arith.mulf %249, %254 : vector<48x32xf32>
    %256 = vector.extract_strided_slice %252 {offsets = [1, 0], sizes = [1, 32], strides = [1, 1]} : vector<3x32xf32> to vector<1x32xf32>
    %257 = vector.broadcast %256 : vector<1x32xf32> to vector<48x32xf32>
    %258 = arith.mulf %248, %257 : vector<48x32xf32>
    %259 = arith.addf %255, %258 : vector<48x32xf32>
    %260 = vector.extract_strided_slice %252 {offsets = [2, 0], sizes = [1, 32], strides = [1, 1]} : vector<3x32xf32> to vector<1x32xf32>
    %261 = vector.broadcast %260 : vector<1x32xf32> to vector<48x32xf32>
    %262 = arith.mulf %250, %261 : vector<48x32xf32>
    %263 = arith.addf %259, %262 : vector<48x32xf32>
    %c2_113 = arith.constant 2 : index
    %c0_114 = arith.constant 0 : index
    %c0_115 = arith.constant 0 : index
    %264 = vector.load %arg12[%c2_113, %c0_114, %c0_115] : memref<4x1x32xf32, #tpu.memory_space<vmem>>, vector<1x1x32xf32>
    %265 = vector.shape_cast %264 : vector<1x1x32xf32> to vector<1x32xf32>
    %266 = vector.broadcast %265 : vector<1x32xf32> to vector<48x32xf32>
    %267 = arith.addf %263, %266 : vector<48x32xf32>
    %268 = arith.truncf %267 : vector<48x32xf32> to vector<48x32xbf16>
    %c2_116 = arith.constant 2 : index
    %c0_117 = arith.constant 0 : index
    %c0_118 = arith.constant 0 : index
    %269 = vector.load %arg13[%c2_116, %c0_117, %c0_118] : memref<4x32x32xbf16, #tpu.memory_space<vmem>>, vector<1x32x32xbf16>
    %270 = vector.shape_cast %269 : vector<1x32x32xbf16> to vector<32x32xbf16>
    %cst_119 = arith.constant dense<0.000000e+00> : vector<48x32xf32>
    %271 = tpu.matmul %268, %270, %cst_119 {dimension_numbers = #tpu.dot_dimension_numbers<[1], [0], [0], [1], [0, 0, 1, 1], [], []>} : vector<48x32xbf16>, vector<32x32xbf16>, vector<48x32xf32> -> vector<48x32xf32>
    %c2_120 = arith.constant 2 : index
    %c0_121 = arith.constant 0 : index
    %c0_122 = arith.constant 0 : index
    %272 = vector.load %arg14[%c2_120, %c0_121, %c0_122] : memref<4x1x32xf32, #tpu.memory_space<vmem>>, vector<1x1x32xf32>
    %273 = vector.shape_cast %272 : vector<1x1x32xf32> to vector<1x32xf32>
    %274 = vector.broadcast %273 : vector<1x32xf32> to vector<48x32xf32>
    %275 = arith.addf %271, %274 : vector<48x32xf32>
    %276 = arith.addf %275, %230 : vector<48x32xf32>
    %cst_123 = arith.constant dense<0.000000e+00> : vector<48xf32>
    %277 = vector.multi_reduction <add>, %276, %cst_123 [1] : vector<48x32xf32> to vector<48xf32>
    %278 = vector.shape_cast %277 : vector<48xf32> to vector<48x1xf32>
    %cst_124 = arith.constant 3.200000e+01 : f32
    %279 = vector.broadcast %cst_124 : f32 to vector<48x1xf32>
    %280 = arith.divf %278, %279 : vector<48x1xf32>
    %281 = vector.broadcast %280 : vector<48x1xf32> to vector<48x32xf32>
    %282 = arith.subf %276, %281 : vector<48x32xf32>
    %283 = arith.mulf %282, %282 : vector<48x32xf32>
    %cst_125 = arith.constant dense<0.000000e+00> : vector<48xf32>
    %284 = vector.multi_reduction <add>, %283, %cst_125 [1] : vector<48x32xf32> to vector<48xf32>
    %285 = vector.shape_cast %284 : vector<48xf32> to vector<48x1xf32>
    %cst_126 = arith.constant 3.200000e+01 : f32
    %286 = vector.broadcast %cst_126 : f32 to vector<48x1xf32>
    %287 = arith.divf %285, %286 : vector<48x1xf32>
    %288 = vector.broadcast %280 : vector<48x1xf32> to vector<48x32xf32>
    %289 = arith.subf %276, %288 : vector<48x32xf32>
    %cst_127 = arith.constant 9.99999997E-7 : f32
    %290 = vector.broadcast %cst_127 : f32 to vector<48x1xf32>
    %291 = arith.addf %287, %290 : vector<48x1xf32>
    %292 = math.rsqrt %291 : vector<48x1xf32>
    %293 = vector.broadcast %292 : vector<48x1xf32> to vector<48x32xf32>
    %294 = arith.mulf %289, %293 : vector<48x32xf32>
    %cst_128 = arith.constant dense<0.000000e+00> : vector<48x32xf32>
    %295 = tpu.matmul %20, %294, %cst_128 {dimension_numbers = #tpu.dot_dimension_numbers<[1], [0], [0], [1], [0, 0, 1, 1], [], []>} : vector<48x48xf32>, vector<48x32xf32>, vector<48x32xf32> -> vector<48x32xf32>
    %cst_129 = arith.constant dense<0.000000e+00> : vector<48x32xf32>
    %296 = tpu.matmul %21, %294, %cst_129 {dimension_numbers = #tpu.dot_dimension_numbers<[1], [0], [0], [1], [0, 0, 1, 1], [], []>} : vector<48x48xf32>, vector<48x32xf32>, vector<48x32xf32> -> vector<48x32xf32>
    %c3 = arith.constant 3 : index
    %c0_130 = arith.constant 0 : index
    %c0_131 = arith.constant 0 : index
    %297 = vector.load %arg11[%c3, %c0_130, %c0_131] : memref<4x3x32xf32, #tpu.memory_space<vmem>>, vector<1x3x32xf32>
    %298 = vector.shape_cast %297 : vector<1x3x32xf32> to vector<3x32xf32>
    %299 = vector.extract_strided_slice %298 {offsets = [0, 0], sizes = [1, 32], strides = [1, 1]} : vector<3x32xf32> to vector<1x32xf32>
    %300 = vector.broadcast %299 : vector<1x32xf32> to vector<48x32xf32>
    %301 = arith.mulf %295, %300 : vector<48x32xf32>
    %302 = vector.extract_strided_slice %298 {offsets = [1, 0], sizes = [1, 32], strides = [1, 1]} : vector<3x32xf32> to vector<1x32xf32>
    %303 = vector.broadcast %302 : vector<1x32xf32> to vector<48x32xf32>
    %304 = arith.mulf %294, %303 : vector<48x32xf32>
    %305 = arith.addf %301, %304 : vector<48x32xf32>
    %306 = vector.extract_strided_slice %298 {offsets = [2, 0], sizes = [1, 32], strides = [1, 1]} : vector<3x32xf32> to vector<1x32xf32>
    %307 = vector.broadcast %306 : vector<1x32xf32> to vector<48x32xf32>
    %308 = arith.mulf %296, %307 : vector<48x32xf32>
    %309 = arith.addf %305, %308 : vector<48x32xf32>
    %c3_132 = arith.constant 3 : index
    %c0_133 = arith.constant 0 : index
    %c0_134 = arith.constant 0 : index
    %310 = vector.load %arg12[%c3_132, %c0_133, %c0_134] : memref<4x1x32xf32, #tpu.memory_space<vmem>>, vector<1x1x32xf32>
    %311 = vector.shape_cast %310 : vector<1x1x32xf32> to vector<1x32xf32>
    %312 = vector.broadcast %311 : vector<1x32xf32> to vector<48x32xf32>
    %313 = arith.addf %309, %312 : vector<48x32xf32>
    %314 = arith.truncf %313 : vector<48x32xf32> to vector<48x32xbf16>
    %c3_135 = arith.constant 3 : index
    %c0_136 = arith.constant 0 : index
    %c0_137 = arith.constant 0 : index
    %315 = vector.load %arg13[%c3_135, %c0_136, %c0_137] : memref<4x32x32xbf16, #tpu.memory_space<vmem>>, vector<1x32x32xbf16>
    %316 = vector.shape_cast %315 : vector<1x32x32xbf16> to vector<32x32xbf16>
    %cst_138 = arith.constant dense<0.000000e+00> : vector<48x32xf32>
    %317 = tpu.matmul %314, %316, %cst_138 {dimension_numbers = #tpu.dot_dimension_numbers<[1], [0], [0], [1], [0, 0, 1, 1], [], []>} : vector<48x32xbf16>, vector<32x32xbf16>, vector<48x32xf32> -> vector<48x32xf32>
    %c3_139 = arith.constant 3 : index
    %c0_140 = arith.constant 0 : index
    %c0_141 = arith.constant 0 : index
    %318 = vector.load %arg14[%c3_139, %c0_140, %c0_141] : memref<4x1x32xf32, #tpu.memory_space<vmem>>, vector<1x1x32xf32>
    %319 = vector.shape_cast %318 : vector<1x1x32xf32> to vector<1x32xf32>
    %320 = vector.broadcast %319 : vector<1x32xf32> to vector<48x32xf32>
    %321 = arith.addf %317, %320 : vector<48x32xf32>
    %322 = arith.addf %321, %276 : vector<48x32xf32>
    %cst_142 = arith.constant dense<0.000000e+00> : vector<48xf32>
    %323 = vector.multi_reduction <add>, %322, %cst_142 [1] : vector<48x32xf32> to vector<48xf32>
    %324 = vector.shape_cast %323 : vector<48xf32> to vector<48x1xf32>
    %cst_143 = arith.constant 3.200000e+01 : f32
    %325 = vector.broadcast %cst_143 : f32 to vector<48x1xf32>
    %326 = arith.divf %324, %325 : vector<48x1xf32>
    %327 = vector.broadcast %326 : vector<48x1xf32> to vector<48x32xf32>
    %328 = arith.subf %322, %327 : vector<48x32xf32>
    %329 = arith.mulf %328, %328 : vector<48x32xf32>
    %cst_144 = arith.constant dense<0.000000e+00> : vector<48xf32>
    %330 = vector.multi_reduction <add>, %329, %cst_144 [1] : vector<48x32xf32> to vector<48xf32>
    %331 = vector.shape_cast %330 : vector<48xf32> to vector<48x1xf32>
    %cst_145 = arith.constant 3.200000e+01 : f32
    %332 = vector.broadcast %cst_145 : f32 to vector<48x1xf32>
    %333 = arith.divf %331, %332 : vector<48x1xf32>
    %334 = vector.broadcast %326 : vector<48x1xf32> to vector<48x32xf32>
    %335 = arith.subf %322, %334 : vector<48x32xf32>
    %cst_146 = arith.constant 9.99999997E-7 : f32
    %336 = vector.broadcast %cst_146 : f32 to vector<48x1xf32>
    %337 = arith.addf %333, %336 : vector<48x1xf32>
    %338 = math.rsqrt %337 : vector<48x1xf32>
    %339 = vector.broadcast %338 : vector<48x1xf32> to vector<48x32xf32>
    %340 = arith.mulf %335, %339 : vector<48x32xf32>
    %341 = arith.truncf %340 : vector<48x32xf32> to vector<48x32xbf16>
    %cst_147 = arith.constant dense<0.000000e+00> : vector<48x48xf32>
    %342 = tpu.matmul %341, %341, %cst_147 {dimension_numbers = #tpu.dot_dimension_numbers<[1], [1], [0], [0], [0, 0, 1, 0], [], []>} : vector<48x32xbf16>, vector<48x32xbf16>, vector<48x48xf32> -> vector<48x48xf32>
    %343 = arith.addf %342, %8 : vector<48x48xf32>
    %cst_148 = arith.constant dense<0xFF800000> : vector<48xf32>
    %344 = vector.multi_reduction <maximumf>, %343, %cst_148 [1] : vector<48x48xf32> to vector<48xf32>
    %345 = vector.shape_cast %344 : vector<48xf32> to vector<48x1xf32>
    %346 = vector.broadcast %345 : vector<48x1xf32> to vector<48x48xf32>
    %347 = arith.subf %343, %346 : vector<48x48xf32>
    %348 = math.exp %347 : vector<48x48xf32>
    %cst_149 = arith.constant dense<0.000000e+00> : vector<48xf32>
    %349 = vector.multi_reduction <add>, %348, %cst_149 [1] : vector<48x48xf32> to vector<48xf32>
    %350 = vector.shape_cast %349 : vector<48xf32> to vector<48x1xf32>
    %351 = tpu.reciprocal %350 {approx = true} : vector<48x1xf32> -> vector<48x1xf32>
    %352 = vector.broadcast %351 : vector<48x1xf32> to vector<48x48xf32>
    %353 = arith.mulf %348, %352 : vector<48x48xf32>
    %354 = arith.truncf %353 : vector<48x48xf32> to vector<48x48xbf16>
    %cst_150 = arith.constant dense<0.000000e+00> : vector<48x32xf32>
    %355 = tpu.matmul %354, %341, %cst_150 {dimension_numbers = #tpu.dot_dimension_numbers<[1], [0], [0], [1], [0, 0, 1, 1], [], []>} : vector<48x48xbf16>, vector<48x32xbf16>, vector<48x32xf32> -> vector<48x32xf32>
    %356 = arith.addf %355, %322 : vector<48x32xf32>
    %cst_151 = arith.constant dense<0.000000e+00> : vector<48xf32>
    %357 = vector.multi_reduction <add>, %356, %cst_151 [1] : vector<48x32xf32> to vector<48xf32>
    %358 = vector.shape_cast %357 : vector<48xf32> to vector<48x1xf32>
    %cst_152 = arith.constant 3.200000e+01 : f32
    %359 = vector.broadcast %cst_152 : f32 to vector<48x1xf32>
    %360 = arith.divf %358, %359 : vector<48x1xf32>
    %361 = vector.broadcast %360 : vector<48x1xf32> to vector<48x32xf32>
    %362 = arith.subf %356, %361 : vector<48x32xf32>
    %363 = arith.mulf %362, %362 : vector<48x32xf32>
    %cst_153 = arith.constant dense<0.000000e+00> : vector<48xf32>
    %364 = vector.multi_reduction <add>, %363, %cst_153 [1] : vector<48x32xf32> to vector<48xf32>
    %365 = vector.shape_cast %364 : vector<48xf32> to vector<48x1xf32>
    %cst_154 = arith.constant 3.200000e+01 : f32
    %366 = vector.broadcast %cst_154 : f32 to vector<48x1xf32>
    %367 = arith.divf %365, %366 : vector<48x1xf32>
    %368 = vector.broadcast %360 : vector<48x1xf32> to vector<48x32xf32>
    %369 = arith.subf %356, %368 : vector<48x32xf32>
    %cst_155 = arith.constant 9.99999997E-7 : f32
    %370 = vector.broadcast %cst_155 : f32 to vector<48x1xf32>
    %371 = arith.addf %367, %370 : vector<48x1xf32>
    %372 = math.rsqrt %371 : vector<48x1xf32>
    %373 = vector.broadcast %372 : vector<48x1xf32> to vector<48x32xf32>
    %374 = arith.mulf %369, %373 : vector<48x32xf32>
    %375 = arith.truncf %374 : vector<48x32xf32> to vector<48x32xbf16>
    %c1_156 = arith.constant 1 : index
    %c0_157 = arith.constant 0 : index
    %c0_158 = arith.constant 0 : index
    %376 = vector.load %arg15[%c1_156, %c0_157, %c0_158] : memref<2x32x64xbf16, #tpu.memory_space<vmem>>, vector<1x32x64xbf16>
    %377 = vector.shape_cast %376 : vector<1x32x64xbf16> to vector<32x64xbf16>
    %cst_159 = arith.constant dense<0.000000e+00> : vector<48x64xf32>
    %378 = tpu.matmul %375, %377, %cst_159 {dimension_numbers = #tpu.dot_dimension_numbers<[1], [0], [0], [1], [0, 0, 1, 1], [], []>} : vector<48x32xbf16>, vector<32x64xbf16>, vector<48x64xf32> -> vector<48x64xf32>
    %c1_160 = arith.constant 1 : index
    %c0_161 = arith.constant 0 : index
    %c0_162 = arith.constant 0 : index
    %379 = vector.load %arg16[%c1_160, %c0_161, %c0_162] : memref<2x1x64xf32, #tpu.memory_space<vmem>>, vector<1x1x64xf32>
    %380 = vector.shape_cast %379 : vector<1x1x64xf32> to vector<1x64xf32>
    %381 = vector.broadcast %380 : vector<1x64xf32> to vector<48x64xf32>
    %382 = arith.addf %378, %381 : vector<48x64xf32>
    %cst_163 = arith.constant 0.000000e+00 : f32
    %383 = vector.broadcast %cst_163 : f32 to vector<48x64xf32>
    %384 = arith.maximumf %382, %383 : vector<48x64xf32>
    %385 = arith.truncf %384 : vector<48x64xf32> to vector<48x64xbf16>
    %c1_164 = arith.constant 1 : index
    %c0_165 = arith.constant 0 : index
    %c0_166 = arith.constant 0 : index
    %386 = vector.load %arg17[%c1_164, %c0_165, %c0_166] : memref<2x64x32xbf16, #tpu.memory_space<vmem>>, vector<1x64x32xbf16>
    %387 = vector.shape_cast %386 : vector<1x64x32xbf16> to vector<64x32xbf16>
    %cst_167 = arith.constant dense<0.000000e+00> : vector<48x32xf32>
    %388 = tpu.matmul %385, %387, %cst_167 {dimension_numbers = #tpu.dot_dimension_numbers<[1], [0], [0], [1], [0, 0, 1, 1], [], []>} : vector<48x64xbf16>, vector<64x32xbf16>, vector<48x32xf32> -> vector<48x32xf32>
    %c1_168 = arith.constant 1 : index
    %c0_169 = arith.constant 0 : index
    %c0_170 = arith.constant 0 : index
    %389 = vector.load %arg18[%c1_168, %c0_169, %c0_170] : memref<2x1x32xf32, #tpu.memory_space<vmem>>, vector<1x1x32xf32>
    %390 = vector.shape_cast %389 : vector<1x1x32xf32> to vector<1x32xf32>
    %391 = vector.broadcast %390 : vector<1x32xf32> to vector<48x32xf32>
    %392 = arith.addf %388, %391 : vector<48x32xf32>
    %393 = arith.addf %392, %356 : vector<48x32xf32>
    %394 = arith.truncf %393 : vector<48x32xf32> to vector<48x32xbf16>
    %cst_171 = arith.constant dense<0.000000e+00> : vector<48x48xf32>
    %395 = tpu.matmul %394, %394, %cst_171 {dimension_numbers = #tpu.dot_dimension_numbers<[1], [1], [0], [0], [0, 0, 1, 0], [], []>} : vector<48x32xbf16>, vector<48x32xbf16>, vector<48x48xf32> -> vector<48x48xf32>
    %396 = arith.addf %395, %19 : vector<48x48xf32>
    %cst_172 = arith.constant dense<0xFF800000> : vector<48xf32>
    %397 = vector.multi_reduction <maximumf>, %396, %cst_172 [1] : vector<48x48xf32> to vector<48xf32>
    %398 = vector.shape_cast %397 : vector<48xf32> to vector<48x1xf32>
    %399 = vector.broadcast %398 : vector<48x1xf32> to vector<48x48xf32>
    %400 = arith.subf %396, %399 : vector<48x48xf32>
    %401 = math.exp %400 : vector<48x48xf32>
    %cst_173 = arith.constant dense<0.000000e+00> : vector<48xf32>
    %402 = vector.multi_reduction <add>, %401, %cst_173 [1] : vector<48x48xf32> to vector<48xf32>
    %403 = vector.shape_cast %402 : vector<48xf32> to vector<48x1xf32>
    %404 = tpu.reciprocal %403 {approx = true} : vector<48x1xf32> -> vector<48x1xf32>
    %405 = vector.broadcast %404 : vector<48x1xf32> to vector<48x48xf32>
    %406 = arith.mulf %401, %405 : vector<48x48xf32>
    %407 = arith.truncf %406 : vector<48x48xf32> to vector<48x48xbf16>
    %cst_174 = arith.constant dense<0.000000e+00> : vector<48x32xf32>
    %408 = tpu.matmul %407, %394, %cst_174 {dimension_numbers = #tpu.dot_dimension_numbers<[1], [0], [0], [1], [0, 0, 1, 1], [], []>} : vector<48x48xbf16>, vector<48x32xbf16>, vector<48x32xf32> -> vector<48x32xf32>
    %409 = arith.truncf %393 : vector<48x32xf32> to vector<48x32xbf16>
    %c0_175 = arith.constant 0 : index
    %c0_176 = arith.constant 0 : index
    %410 = vector.load %arg19[%c0_175, %c0_176] : memref<32x128xbf16, #tpu.memory_space<vmem>>, vector<32x128xbf16>
    %cst_177 = arith.constant dense<0.000000e+00> : vector<48x128xf32>
    %411 = tpu.matmul %409, %410, %cst_177 {dimension_numbers = #tpu.dot_dimension_numbers<[1], [0], [0], [1], [0, 0, 1, 1], [], []>} : vector<48x32xbf16>, vector<32x128xbf16>, vector<48x128xf32> -> vector<48x128xf32>
    %412 = arith.truncf %408 : vector<48x32xf32> to vector<48x32xbf16>
    %c0_178 = arith.constant 0 : index
    %c0_179 = arith.constant 0 : index
    %413 = vector.load %arg20[%c0_178, %c0_179] : memref<32x128xbf16, #tpu.memory_space<vmem>>, vector<32x128xbf16>
    %cst_180 = arith.constant dense<0.000000e+00> : vector<48x128xf32>
    %414 = tpu.matmul %412, %413, %cst_180 {dimension_numbers = #tpu.dot_dimension_numbers<[1], [0], [0], [1], [0, 0, 1, 1], [], []>} : vector<48x32xbf16>, vector<32x128xbf16>, vector<48x128xf32> -> vector<48x128xf32>
    %415 = arith.addf %411, %414 : vector<48x128xf32>
    %c0_181 = arith.constant 0 : index
    %c0_182 = arith.constant 0 : index
    %416 = vector.load %arg21[%c0_181, %c0_182] : memref<1x128xf32, #tpu.memory_space<vmem>>, vector<1x128xf32>
    %417 = vector.broadcast %416 : vector<1x128xf32> to vector<48x128xf32>
    %418 = arith.addf %415, %417 : vector<48x128xf32>
    %c0_183 = arith.constant 0 : index
    %c0_184 = arith.constant 0 : index
    %419 = vector.load %arg22[%c0_183, %c0_184] : memref<48x128xf32, #tpu.memory_space<vmem>>, vector<48x128xf32>
    tpu.vector_store %arg22[%c0_183, %c0_184], %418 {strides = array<i32>} : memref<48x128xf32, #tpu.memory_space<vmem>>, vector<48x128xf32>,
    return
  }
  func.func @transform_0(%arg0: i32) -> (i32, i32) {
    %c0_i32 = arith.constant 0 : i32
    %c0_i32_0 = arith.constant 0 : i32
    %c0_i32_1 = arith.constant 0 : i32
    return %c0_i32, %c0_i32_0 : i32, i32
  }
  func.func @transform_1(%arg0: i32) -> (i32, i32) {
    %c0_i32 = arith.constant 0 : i32
    %c0_i32_0 = arith.constant 0 : i32
    %c0_i32_1 = arith.constant 0 : i32
    return %c0_i32, %c0_i32_0 : i32, i32
  }
  func.func @transform_2(%arg0: i32) -> (i32, i32) {
    %c0_i32 = arith.constant 0 : i32
    %c0_i32_0 = arith.constant 0 : i32
    %c0_i32_1 = arith.constant 0 : i32
    return %c0_i32, %c0_i32_0 : i32, i32
  }
  func.func @transform_3(%arg0: i32) -> (i32, i32) {
    %c0_i32 = arith.constant 0 : i32
    %c0_i32_0 = arith.constant 0 : i32
    %c0_i32_1 = arith.constant 0 : i32
    return %c0_i32, %c0_i32_0 : i32, i32
  }
  func.func @transform_4(%arg0: i32) -> (i32, i32) {
    %c0_i32 = arith.constant 0 : i32
    %c0_i32_0 = arith.constant 0 : i32
    %c0_i32_1 = arith.constant 0 : i32
    return %c0_i32, %c0_i32_0 : i32, i32
  }
  func.func @transform_5(%arg0: i32) -> (i32, i32) {
    %c0_i32 = arith.constant 0 : i32
    %c0_i32_0 = arith.constant 0 : i32
    %c0_i32_1 = arith.constant 0 : i32
    return %c0_i32, %c0_i32_0 : i32, i32
  }
  func.func @transform_6(%arg0: i32) -> (i32, i32) {
    %c0_i32 = arith.constant 0 : i32
    %c0_i32_0 = arith.constant 0 : i32
    %c0_i32_1 = arith.constant 0 : i32
    return %c0_i32, %c0_i32_0 : i32, i32
  }
  func.func @transform_7(%arg0: i32) -> (i32, i32, i32) {
    %c0_i32 = arith.constant 0 : i32
    %c0_i32_0 = arith.constant 0 : i32
    %c0_i32_1 = arith.constant 0 : i32
    %c0_i32_2 = arith.constant 0 : i32
    return %c0_i32, %c0_i32_0, %c0_i32_1 : i32, i32, i32
  }
  func.func @transform_8(%arg0: i32) -> (i32, i32, i32) {
    %c0_i32 = arith.constant 0 : i32
    %c0_i32_0 = arith.constant 0 : i32
    %c0_i32_1 = arith.constant 0 : i32
    %c0_i32_2 = arith.constant 0 : i32
    return %c0_i32, %c0_i32_0, %c0_i32_1 : i32, i32, i32
  }
  func.func @transform_9(%arg0: i32) -> (i32, i32, i32) {
    %c0_i32 = arith.constant 0 : i32
    %c0_i32_0 = arith.constant 0 : i32
    %c0_i32_1 = arith.constant 0 : i32
    %c0_i32_2 = arith.constant 0 : i32
    return %c0_i32, %c0_i32_0, %c0_i32_1 : i32, i32, i32
  }
  func.func @transform_10(%arg0: i32) -> (i32, i32, i32) {
    %c0_i32 = arith.constant 0 : i32
    %c0_i32_0 = arith.constant 0 : i32
    %c0_i32_1 = arith.constant 0 : i32
    %c0_i32_2 = arith.constant 0 : i32
    return %c0_i32, %c0_i32_0, %c0_i32_1 : i32, i32, i32
  }
  func.func @transform_11(%arg0: i32) -> (i32, i32, i32) {
    %c0_i32 = arith.constant 0 : i32
    %c0_i32_0 = arith.constant 0 : i32
    %c0_i32_1 = arith.constant 0 : i32
    %c0_i32_2 = arith.constant 0 : i32
    return %c0_i32, %c0_i32_0, %c0_i32_1 : i32, i32, i32
  }
  func.func @transform_12(%arg0: i32) -> (i32, i32, i32) {
    %c0_i32 = arith.constant 0 : i32
    %c0_i32_0 = arith.constant 0 : i32
    %c0_i32_1 = arith.constant 0 : i32
    %c0_i32_2 = arith.constant 0 : i32
    return %c0_i32, %c0_i32_0, %c0_i32_1 : i32, i32, i32
  }
  func.func @transform_13(%arg0: i32) -> (i32, i32, i32) {
    %c0_i32 = arith.constant 0 : i32
    %c0_i32_0 = arith.constant 0 : i32
    %c0_i32_1 = arith.constant 0 : i32
    %c0_i32_2 = arith.constant 0 : i32
    return %c0_i32, %c0_i32_0, %c0_i32_1 : i32, i32, i32
  }
  func.func @transform_14(%arg0: i32) -> (i32, i32, i32) {
    %c0_i32 = arith.constant 0 : i32
    %c0_i32_0 = arith.constant 0 : i32
    %c0_i32_1 = arith.constant 0 : i32
    %c0_i32_2 = arith.constant 0 : i32
    return %c0_i32, %c0_i32_0, %c0_i32_1 : i32, i32, i32
  }
  func.func @transform_15(%arg0: i32) -> (i32, i32, i32) {
    %c0_i32 = arith.constant 0 : i32
    %c0_i32_0 = arith.constant 0 : i32
    %c0_i32_1 = arith.constant 0 : i32
    %c0_i32_2 = arith.constant 0 : i32
    return %c0_i32, %c0_i32_0, %c0_i32_1 : i32, i32, i32
  }
  func.func @transform_16(%arg0: i32) -> (i32, i32, i32) {
    %c0_i32 = arith.constant 0 : i32
    %c0_i32_0 = arith.constant 0 : i32
    %c0_i32_1 = arith.constant 0 : i32
    %c0_i32_2 = arith.constant 0 : i32
    return %c0_i32, %c0_i32_0, %c0_i32_1 : i32, i32, i32
  }
  func.func @transform_17(%arg0: i32) -> (i32, i32, i32) {
    %c0_i32 = arith.constant 0 : i32
    %c0_i32_0 = arith.constant 0 : i32
    %c0_i32_1 = arith.constant 0 : i32
    %c0_i32_2 = arith.constant 0 : i32
    return %c0_i32, %c0_i32_0, %c0_i32_1 : i32, i32, i32
  }
  func.func @transform_18(%arg0: i32) -> (i32, i32) {
    %c0_i32 = arith.constant 0 : i32
    %c0_i32_0 = arith.constant 0 : i32
    %c0_i32_1 = arith.constant 0 : i32
    return %c0_i32, %c0_i32_0 : i32, i32
  }
  func.func @transform_19(%arg0: i32) -> (i32, i32) {
    %c0_i32 = arith.constant 0 : i32
    %c0_i32_0 = arith.constant 0 : i32
    %c0_i32_1 = arith.constant 0 : i32
    return %c0_i32, %c0_i32_0 : i32, i32
  }
  func.func @transform_20(%arg0: i32) -> (i32, i32) {
    %c0_i32 = arith.constant 0 : i32
    %c0_i32_0 = arith.constant 0 : i32
    %c0_i32_1 = arith.constant 0 : i32
    return %c0_i32, %c0_i32_0 : i32, i32
  }
  func.func @transform_21(%arg0: i32) -> (i32, i32) {
    %c0_i32 = arith.constant 0 : i32
    %c0_i32_0 = arith.constant 0 : i32
    %c0_i32_1 = arith.constant 0 : i32
    return %c0_i32, %c0_i32_0 : i32, i32
  }
}

</mosaic_0001>

<bundles_post_ra>
// kernel: my_model_forward.1
= control target key start
LH: loop header
LB: loop body
LE: loop exit
PB: predicated region body
PF: predicated region fallthrough
CT: control target
= control target key end

     0   :  { %s7076_s0 = inlined_call_operand.vmem [shape: s32[48,1], index: 0, kind: input, shape index: {}]   ;;  %s7077_s1 = inlined_call_operand.vmem [shape: s32[1,48], index: 1, kind: input, shape index: {}]   ;;  %s7078_s2 = inlined_call_operand.vmem [shape: f32[128,32], index: 2, kind: input, shape index: {}]   ;;  %s7079_s3 = inlined_call_operand.vmem [shape: f32[48,48], index: 3, kind: input, shape index: {}]   ;;  %s7080_s4 = inlined_call_operand.vmem [shape: f32[48,48], index: 4, kind: input, shape index: {}]   ;;  %s7081_s5 = inlined_call_operand.vmem [shape: f32[48,48], index: 5, kind: input, shape index: {}]   ;;  %s7082_s6 = inlined_call_operand.vmem [shape: f32[48,48], index: 6, kind: input, shape index: {}]   ;;  %s7083_s7 = inlined_call_operand.vmem [shape: bf16[2,32,32], index: 7, kind: input, shape index: {}]   ;;  %s7084_s8 = inlined_call_operand.hbm [shape: bf16[2,32,32], index: 8, kind: input, shape index: {}]   ;;  %s7085_s9 = inlined_call_operand.hbm [shape: f32[2,1,32], index: 9, kind: input, shape index: {}]   ;;  %s7086_s10 = inlined_call_operand.vmem [shape: f32[4,3,32], index: 10, kind: input, shape index: {}]   ;;  %s7087_s11 = inlined_call_operand.hbm [shape: f32[4,1,32], index: 11, kind: input, shape index: {}]   ;;  %s7088_s12 = inlined_call_operand.vmem [shape: bf16[4,32,32], index: 12, kind: input, shape index: {}]   ;;  %s7089_s13 = inlined_call_operand.vmem [shape: f32[4,1,32], index: 13, kind: input, shape index: {}]   ;;  %s7090_s14 = inlined_call_operand.hbm [shape: bf16[2,32,64], index: 14, kind: input, shape index: {}]   ;;  %s7091_s15 = inlined_call_operand.hbm [shape: f32[2,1,64], index: 15, kind: input, shape index: {}]   ;;  %s7092_s16 = inlined_call_operand.vmem [shape: bf16[2,64,32], index: 16, kind: input, shape index: {}]   ;;  %s7093_s17 = inlined_call_operand.hbm [shape: f32[2,1,32], index: 17, kind: input, shape index: {}]   ;;  %s7094_s18 = inlined_call_operand.hbm [shape: bf16[32,128], index: 18, kind: input, shape index: {}]   ;;  %s7095_s19 = inlined_call_operand.hbm [shape: bf16[32,128], index: 19, kind: input, shape index: {}]   ;;  %s7096_s20 = inlined_call_operand.vmem [shape: f32[1,128], index: 20, kind: input, shape index: {}]   ;;  %s7097_s21 = inlined_call_operand.vmem [shape: f32[48,128], index: 21, kind: output, shape index: {}]  }
   0x1   :  { %7103 = sst [smem:[#allocation20_spill]] %s7076_s0 }
   0x2   :  { %7104 = sst [smem:[#allocation21_spill]] %s7077_s1 }
   0x3   :  { %7105 = sst [smem:[#allocation22_spill]] %s7078_s2 }
   0x4   :  { %7106 = sst [smem:[#allocation23_spill]] %s7079_s3 }
   0x5   :  { %7107 = sst [smem:[#allocation24_spill]] %s7080_s4 }
   0x6   :  { %7108 = sst [smem:[#allocation25_spill]] %s7081_s5 }
   0x7   :  { %26 = vsyncpa [#allocation3], 0 }
   0x8   :  { %27 = vsyncpa [#allocation5], 0 }
   0x9   :  { %28 = vsyncpa [#allocation8], 0 }
   0xa   :  { %29 = vsyncpa [#allocation11], 0 }
   0xb   :  { %30 = vsyncpa [#allocation14], 0  ;;  %s5531_s2 = smov [#allocation4]  }
   0xc   :  { %s64_s25 = sshll.u32 %s5531_s2, 4  ;;  %s65_s25 = int_to_ptr.vmem [resolvable:$true] %s64_s25 }
   0xd   :  { %s5369_s26 = scalar_lea.vmem %s65_s25, 32  ;;  %p5374_p1 = scmp.lt.s32.totalorder %s65_s25, %s65_s25 }
   0xe   :  { %p5370_p0 = scmp.ne.s32.totalorder %s65_s25, %s5369_s26  ;;  %p5375_p2 = scmp.lt.s32.totalorder %s5369_s26, %s5369_s26 }
  0x10   :  { %p5376_p3 = por %p5375_p2, %p5374_p1 }
  0x12   :  { %p5377_p4 = pnand %p5376_p3, %p5370_p0 }
  0x14   :  { %5380 = shalt.err (!%p5377_p4)
}
  0x15   :  { %s5532_s27 = smov 16   ;;  %s5533_s3 = smov 1  }
  0x16   :  { %70 = dma.hbm_to_vmem [thread:$0]  %s7085_s9, 32, %s65_s25, [#allocation5], %s5532_s27, %s5532_s27, %s5533_s3  }
  0x17   :  { %s5534_s0 = smov [#allocation7]   ;;  %s5535_s30 = smov [#allocation10]  }
  0x18   :  { %s94_s4 = sshll.u32 %s5534_s0, 4  ;;  %s120_s5 = sshll.u32 %s5535_s30, 4  ;;  %s95_s4 = int_to_ptr.vmem [resolvable:$true] %s94_s4  ;;  %s121_s5 = int_to_ptr.vmem [resolvable:$true] %s120_s5 }
  0x19   :  { %s5389_s22 = scalar_lea.vmem %s95_s4, 512  ;;  %p5394_p6 = scmp.lt.s32.totalorder %s95_s4, %s95_s4 }
  0x1a   :  { %p5390_p5 = scmp.ne.s32.totalorder %s95_s4, %s5389_s22  ;;  %p5395_p7 = scmp.lt.s32.totalorder %s5389_s22, %s5389_s22 }
  0x1c   :  { %p5396_p8 = por %p5395_p7, %p5394_p6 }
  0x1e   :  { %p5397_p9 = pnand %p5396_p8, %p5390_p5 }
  0x20   :  { %5400 = shalt.err (!%p5397_p9)
}
  0x21   :  { %s5536_s23 = smov 64   ;;  %s5537_s1 = smov 4  }
  0x22   :  { %100 = dma.hbm_to_vmem [thread:$0]  %s7090_s14, 512, %s95_s4, [#allocation8], %s5536_s23, %s5536_s23, %s5537_s1  }
  0x23   :  { %s5409_s9 = scalar_lea.vmem %s121_s5, 32  ;;  %p5414_p11 = scmp.lt.s32.totalorder %s121_s5, %s121_s5 }
  0x24   :  { %p5410_p10 = scmp.ne.s32.totalorder %s121_s5, %s5409_s9  ;;  %p5415_p12 = scmp.lt.s32.totalorder %s5409_s9, %s5409_s9 }
  0x26   :  { %p5416_p13 = por %p5415_p12, %p5414_p11 }
  0x28   :  { %p5417_p0 = pnand %p5416_p13, %p5410_p10 }
  0x2a   :  { %5420 = shalt.err (!%p5417_p0)
}
  0x2b   :  { %126 = dma.hbm_to_vmem [thread:$0]  %s7093_s17, 32, %s121_s5, [#allocation11], %s5532_s27, %s5532_s27, %s5533_s3  }
  0x2c   :  { %s5538_s28 = smov [#allocation2]   ;;  %s5539_s0 = smov [#allocation6]  }
  0x2d   :  { %s52_s29 = sshll.u32 %s5538_s28, 4  ;;  %s78_s14 = sshll.u32 %s5539_s0, 4  ;;  %s53_s29 = int_to_ptr.vmem [resolvable:$true] %s52_s29  ;;  %s79_s14 = int_to_ptr.vmem [resolvable:$true] %s78_s14 }
  0x2e   :  { %s5429_s4 = scalar_lea.vmem %s53_s29, 512  ;;  %p5434_p2 = scmp.lt.s32.totalorder %s53_s29, %s53_s29 }
  0x2f   :  { %p5430_p1 = scmp.ne.s32.totalorder %s53_s29, %s5429_s4  ;;  %p5435_p3 = scmp.lt.s32.totalorder %s5429_s4, %s5429_s4 }
  0x31   :  { %p5436_p4 = por %p5435_p3, %p5434_p2 }
  0x33   :  { %p5437_p5 = pnand %p5436_p4, %p5430_p1 }
  0x35   :  { %5440 = shalt.err (!%p5437_p5)
}
  0x36   :  { %58 = dma.hbm_to_vmem [thread:$0]  %s7084_s8, 512, %s53_s29, [#allocation3], %s5536_s23, %s5536_s23, %s5537_s1  }
  0x37   :  { %s5449_s17 = scalar_lea.vmem %s79_s14, 64  ;;  %p5454_p7 = scmp.lt.s32.totalorder %s79_s14, %s79_s14 }
  0x38   :  { %p5450_p6 = scmp.ne.s32.totalorder %s79_s14, %s5449_s17  ;;  %p5455_p8 = scmp.lt.s32.totalorder %s5449_s17, %s5449_s17 }
  0x3a   :  { %p5456_p9 = por %p5455_p8, %p5454_p7 }
  0x3c   :  { %p5457_p10 = pnand %p5456_p9, %p5450_p6 }
  0x3e   :  { %5460 = shalt.err (!%p5457_p10)
}
  0x3f   :  { %84 = dma.hbm_to_vmem [thread:$0]  %s7087_s11, 64, %s79_s14, [#allocation5], %s5532_s27, %s5532_s27, %s5533_s3  }
  0x40   :  { %s5540_s2 = smov [#allocation9]   ;;  %s5541_s25 = smov [#allocation12]  }
  0x41   :  { %s106_s9 = sshll.u32 %s5540_s2, 4  ;;  %s132_s8 = sshll.u32 %s5541_s25, 4  ;;  %s107_s9 = int_to_ptr.vmem [resolvable:$true] %s106_s9  ;;  %s133_s8 = int_to_ptr.vmem [resolvable:$true] %s132_s8 }
  0x42   :  { %s5469_s26 = scalar_lea.vmem %s107_s9, 32  ;;  %p5474_p12 = scmp.lt.s32.totalorder %s107_s9, %s107_s9 }
  0x43   :  { %p5470_p11 = scmp.ne.s32.totalorder %s107_s9, %s5469_s26  ;;  %p5475_p13 = scmp.lt.s32.totalorder %s5469_s26, %s5469_s26 }
  0x45   :  { %p5476_p0 = por %p5475_p13, %p5474_p12 }
  0x47   :  { %p5477_p1 = pnand %p5476_p0, %p5470_p11 }
  0x49   :  { %5480 = shalt.err (!%p5477_p1)
}
  0x4a   :  { %112 = dma.hbm_to_vmem [thread:$0]  %s7091_s15, 32, %s107_s9, [#allocation8], %s5532_s27, %s5532_s27, %s5533_s3  }
  0x4b   :  { %s5489_s11 = scalar_lea.vmem %s133_s8, 256  ;;  %p5494_p3 = scmp.lt.s32.totalorder %s133_s8, %s133_s8 }
  0x4c   :  { %p5490_p2 = scmp.ne.s32.totalorder %s133_s8, %s5489_s11  ;;  %p5495_p4 = scmp.lt.s32.totalorder %s5489_s11, %s5489_s11 }
  0x4e   :  { %p5496_p5 = por %p5495_p4, %p5494_p3 }
  0x50   :  { %p5497_p6 = pnand %p5496_p5, %p5490_p2 }
  0x52   :  { %5500 = shalt.err (!%p5497_p6)
}
  0x53   :  { %138 = dma.hbm_to_vmem [thread:$0]  %s7094_s18, 256, %s133_s8, [#allocation11], %s5536_s23, %s5536_s23, %s5537_s1  }
  0x54   :  { %s5542_s4 = smov [#allocation13]  }
  0x55   :  { %s144_s30 = sshll.u32 %s5542_s4, 4  ;;  %s145_s30 = int_to_ptr.vmem [resolvable:$true] %s144_s30 }
  0x56   :  { %s5509_s22 = scalar_lea.vmem %s145_s30, 256  ;;  %p5514_p8 = scmp.lt.s32.totalorder %s145_s30, %s145_s30 }
  0x57   :  { %p5510_p7 = scmp.ne.s32.totalorder %s145_s30, %s5509_s22  ;;  %p5515_p9 = scmp.lt.s32.totalorder %s5509_s22, %s5509_s22 }
  0x59   :  { %p5516_p10 = por %p5515_p9, %p5514_p8 }
  0x5b   :  { %p5517_p11 = pnand %p5516_p10, %p5510_p7 }
  0x5d   :  { %5520 = shalt.err (!%p5517_p11)
}
  0x5e   :  { %150 = dma.hbm_to_vmem [thread:$0]  %s7095_s19, 256, %s145_s30, [#allocation14], %s5536_s23, %s5536_s23, %s5537_s1  }
  0x5f   :  { %5521 = dma.done.wait [#allocation3], 512  }
  0x60   :  { %5522 = vsyncadd [#allocation3], 4294966784 }
  0x61   :  { %5523 = dma.done.wait [#allocation5], 96  }
  0x62   :  { %5524 = vsyncadd [#allocation5], 4294967200 }
  0x63   :  { %5525 = dma.done.wait [#allocation8], 544  }
  0x64   :  { %5526 = vsyncadd [#allocation8], 4294966752 }
  0x65   :  { %5527 = dma.done.wait [#allocation11], 288  }
  0x66   :  { %5528 = vsyncadd [#allocation11], 4294967008 }
  0x67   :  { %5529 = dma.done.wait [#allocation14], 256  }
  0x68   :  { %5530 = vsyncadd [#allocation14], 4294967040  ;;  %v5543_v0 = vmov 0   ;;  %s7109_s17 = sld [smem:[#allocation20_spill]]  ;;  %v184_v23 = vlaneseq  ;;  %v5544_v27 = vmov 1.0   ;;  %vm383_vm6 = vcmask 261120  }
  0x69   :  { %5110 = vset.pattern.permute.xlu1 %v5543_v0  ;;  %5109 = vset.pattern.permute.xlu0 %v5543_v0  ;;  %s7110_s8 = sld [smem:[#allocation22_spill]]  ;;  %vm463_vm7 = vcmask 392192   ;;  %vm5546_vm8 = vmmov 0   ;;  %vm1770_vm9 = vcmask 523264  }
  0x6a   :  { %v185_v24 = vand.u32 127, %v184_v23  ;;  %s7111_s19 = sld [smem:[#allocation23_spill]] }
  0x6b   :  { %s7112_s0 = sld [smem:[#allocation24_spill]] }
  0x6c   :  { %s7114_s3 = sld [smem:[#allocation21_spill]] }
  0x6e   :  { %v180_v1 = vld [vmem:[%s7109_s17 + $0x10] sm:$0xff]  ;;  %v178_v2 = vld [vmem:[%s7109_s17] sm:$0xff]  ;;  %v181_v3 = vld [vmem:[%s7109_s17 + $0x18] sm:$0xff] }
  0x6f   :  { %193 = vperm.xlu1 %5110, %v180_v1   ;;  %187 = vperm.xlu0 %5109, %v178_v2   ;;  %v179_v4 = vld [vmem:[%s7109_s17 + $0x8] sm:$0xff]  ;;  %v237_v5 = vld [vmem:[%s7110_s8 + $0x78] sm:$0xff]  ;;  %v236_v6 = vld [vmem:[%s7110_s8 + $0x70] sm:$0xff] }
  0x70   :  { %4539 = vmatprep.subr.mxu0 %v237_v5  ;;  %v235_v7 = vld [vmem:[%s7110_s8 + $0x68] sm:$0xff]  ;;  %v182_v9 = vld [vmem:[%s7109_s17 + $0x20] sm:$0xff]  ;;  %v233_v11 = vld [vmem:[%s7110_s8 + $0x58] sm:$0xff] }
  0x71   :  { %4540 = vmatpush3.msra.mxu0 %v237_v5  ;;  %v183_v8 = vld [vmem:[%s7109_s17 + $0x28] sm:$0xff]  ;;  %v234_v10 = vld [vmem:[%s7110_s8 + $0x60] sm:$0xff]  ;;  %v232_v12 = vld [vmem:[%s7110_s8 + $0x50] sm:$0xff] }
  0x72   :  { %4541 = vmatprep.subr.mxu0 %v236_v6  ;;  %v231_v13 = vld [vmem:[%s7110_s8 + $0x48] sm:$0xff]  ;;  %v230_v14 = vld [vmem:[%s7110_s8 + $0x40] sm:$0xff]  ;;  %v229_v15 = vld [vmem:[%s7110_s8 + $0x38] sm:$0xff] }
  0x73   :  { %196 = vperm.xlu1 %5110, %v181_v3   ;;  %190 = vperm.xlu0 %5109, %v179_v4   ;;  %v228_v16 = vld [vmem:[%s7110_s8 + $0x30] sm:$0xff]  ;;  %v227_v17 = vld [vmem:[%s7110_s8 + $0x28] sm:$0xff]  ;;  %v226_v18 = vld [vmem:[%s7110_s8 + $0x20] sm:$0xff] }
  0x74   :  { %4542 = vmatpush3.msra.mxu0 %v236_v6  ;;  %v225_v19 = vld [vmem:[%s7110_s8 + $0x18] sm:$0xff]  ;;  %v224_v20 = vld [vmem:[%s7110_s8 + $0x10] sm:$0xff]  ;;  %v223_v21 = vld [vmem:[%s7110_s8 + $0x8] sm:$0xff] }
  0x75   :  { %4543 = vmatprep.subr.mxu0 %v235_v7  ;;  %v222_v22 = vld [vmem:[%s7110_s8] sm:$0xff]  ;;  %s7113_s8 = sld [smem:[#allocation25_spill]] }
  0x76   :  { %4544 = vmatpush3.msra.mxu0 %v235_v7 }
  0x77   :  { %202 = vperm.xlu1 %5110, %v183_v8   ;;  %199 = vperm.xlu0 %5109, %v182_v9  }
  0x78   :  { %4545 = vmatprep.subr.mxu0 %v234_v10 }
  0x79   :  { %4546 = vmatpush3.msra.mxu0 %v234_v10 }
  0x7a   :  { %4547 = vmatprep.subr.mxu0 %v233_v11 }
  0x7b   :  { %4548 = vmatpush3.msra.mxu0 %v233_v11  ;;  %v371_v11 = vld [vmem:[%s7111_s19] sm:$0xff] }
  0x7c   :  { %4549 = vmatprep.subr.mxu0 %v232_v12  ;;  %4592 = vmatprep.mubr.msk.f32.mxu1 %vm463_vm7, %v371_v11 }
  0x7d   :  { %4550 = vmatpush3.msra.mxu0 %v232_v12 }
  0x7e   :  { %4551 = vmatprep.subr.mxu0 %v231_v13 }
  0x7f   :  { %4552 = vmatpush3.msra.mxu0 %v231_v13 }
  0x80   :  { %4553 = vmatprep.subr.mxu0 %v230_v14 }
  0x81   :  { %4554 = vmatpush3.msra.mxu0 %v230_v14 }
  0x82   :  { %4555 = vmatprep.subr.mxu0 %v229_v15 }
  0x83   :  { %4556 = vmatpush3.msra.mxu0 %v229_v15 }
  0x84   :  { %4557 = vmatprep.subr.mxu0 %v228_v16 }
  0x85   :  { %4558 = vmatpush3.msra.mxu0 %v228_v16 }
  0x86   :  { %4559 = vmatprep.subr.mxu0 %v227_v17 }
  0x87   :  { %4560 = vmatpush3.msra.mxu0 %v227_v17 }
  0x88   :  { %4561 = vmatprep.subr.mxu0 %v226_v18 }
  0x89   :  { %4562 = vmatpush3.msra.mxu0 %v226_v18 }
  0x8a   :  { %4563 = vmatprep.subr.mxu0 %v225_v19 }
  0x8b   :  { %4564 = vmatpush3.msra.mxu0 %v225_v19 }
  0x8c   :  { %4565 = vmatprep.subr.mxu0 %v224_v20 }
  0x8d   :  { %4566 = vmatpush3.msra.mxu0 %v224_v20 }
  0x8e   :  { %4567 = vmatprep.subr.mxu0 %v223_v21 }
  0x8f   :  { %4568 = vmatpush3.msra.mxu0 %v223_v21 }
  0x90   :  { %4569 = vmatprep.subr.mxu0 %v222_v22 }
  0x91   :  { %4570 = vmatpush3.msra.mxu0 %v222_v22 }
  0xea   :  { %v194_v25 = vpop.permute.xlu1 %193  ;;  %v188_v26 = vpop.permute.xlu0 %187 }
  0xeb   :  { %vm204_vm0 = vcmp.eq.s32.totalorder %v188_v26, %v185_v24  ;;  %vm206_vm1 = vcmp.eq.s32.totalorder %v194_v25, %v185_v24 }
  0xec   :  { %4571 = vmatprep.mubr.msk.f32.mxu0 %vm204_vm0, %v5544_v27 }
  0xee   :  { %v197_v28 = vpop.permute.xlu1 %196  ;;  %v191_v29 = vpop.permute.xlu0 %190 }
  0xef   :  { %vm205_vm2 = vcmp.eq.s32.totalorder %v191_v29, %v185_v24  ;;  %vm207_vm3 = vcmp.eq.s32.totalorder %v197_v28, %v185_v24 }
  0xf0   :  { %4572 = vmatmul.mubr.msk.f32.vlgmr.msra.gmra.mxu0 %vm205_vm2, %v5544_v27 }
  0xf1   :  { %4574 = vmatprep.mubr.msk.f32.mxu0 %vm206_vm1, %v5544_v27 }
  0xf2   :  { %v200_v30 = vpop.permute.xlu0 %199  ;;  %v203_v31 = vpop.permute.xlu1 %202 }
  0xf3   :  { %vm208_vm4 = vcmp.eq.s32.totalorder %v200_v30, %v185_v24  ;;  %vm209_vm5 = vcmp.eq.s32.totalorder %v203_v31, %v185_v24 }
  0xf4   :  { %4575 = vmatmul.mubr.msk.f32.gmra.mxu0 %vm207_vm3, %v5544_v27 }
  0xf5   :  { %4577 = vmatprep.mubr.msk.f32.mxu0 %vm208_vm4, %v5544_v27 }
  0xf8   :  { %4578 = vmatmul.mubr.msk.f32.gmra.mxu0 %vm209_vm5, %v5544_v27 }
  0xf9   :  { %4650 = vmatprep.mubr.msk.f32.mxu0 %vm463_vm7, %v371_v11 }
 0x1b0   :  { %v5775_v32 = vpop.f32.mrf.mxu0 }
 0x1b1   :  { %v387_v41 = vsel %vm383_vm6, %v5775_v32, 0.0 }
 0x1b2   :  { %v5777_v33 = vpop.f32.mrf.mxu0 }
 0x1b3   :  { %v384_v43 = vsel %vm383_vm6, %v5777_v33, 0.0 }
 0x1b4   :  { %v5779_v34 = vpop.f32.mrf.mxu0 }
 0x1b5   :  { %v393_v40 = vsel %vm383_vm6, %v5779_v34, 0.0 }
 0x1b6   :  { %v5781_v35 = vpop.f32.mrf.mxu0 }
 0x1b7   :  { %v390_v42 = vsel %vm383_vm6, %v5781_v35, 0.0 }
 0x1b8   :  { %v5783_v36 = vpop.f32.mrf.mxu0 }
 0x1b9   :  { %v399_v37 = vsel %vm383_vm6, %v5783_v36, 0.0 }
 0x1ba   :  { %400 = vadd.xlane.f32.xlu0 %v399_v37  ;;  %v5787_v38 = vpop.f32.mrf.mxu0 }
 0x1bb   :  { %v396_v39 = vsel %vm383_vm6, %v5787_v38, 0.0 }
 0x1bc   :  { %397 = vadd.xlane.f32.xlu1 %v396_v39 }
 0x1be   :  { %394 = vadd.xlane.f32.xlu0 %v393_v40 }
 0x1c0   :  { %388 = vadd.xlane.f32.xlu1 %v387_v41 }
 0x1c2   :  { %391 = vadd.xlane.f32.xlu0 %v390_v42 }
 0x1c6   :  { %385 = vadd.xlane.f32.xlu0 %v384_v43 }
 0x243   :  { %v401_v44 = vpop.xlane.xlu0 %400 }
 0x244   :  { %v408_v45 = vmul.f32 0.03125, %v401_v44 }
 0x245   :  { %v398_v46 = vpop.xlane.xlu1 %397 }
 0x246   :  { %v414_v47 = vsub.f32 %v5783_v36, %v408_v45  ;;  %v407_v48 = vmul.f32 0.03125, %v398_v46 }
 0x247   :  { %v395_v49 = vpop.xlane.xlu0 %394 }
 0x248   :  { %v413_v50 = vsub.f32 %v5787_v38, %v407_v48  ;;  %v406_v51 = vmul.f32 0.03125, %v395_v49  ;;  %v420_v52 = vmul.f32 %v414_v47, %v414_v47  ;;  %v5846_v49 = vld [vmem:[%s7111_s19 + $0x8] sm:$0xff] }
 0x249   :  { %v389_v53 = vpop.xlane.xlu1 %388 }
 0x24a   :  { %v412_v54 = vsub.f32 %v5779_v34, %v406_v51  ;;  %v404_v55 = vmul.f32 0.03125, %v389_v53  ;;  %v436_v56 = vsel %vm383_vm6, %v420_v52, 0.0  ;;  %v419_v57 = vmul.f32 %v413_v50, %v413_v50  ;;  %v5864_v51 = vld [vmem:[%s7111_s19 + $0x18] sm:$0xff]  ;;  %v5870_v52 = vld [vmem:[%s7111_s19 + $0x20] sm:$0xff]  ;;  %v5882_v53 = vld [vmem:[%s7111_s19 + $0x28] sm:$0xff] }
 0x24b   :  { %v392_v58 = vpop.xlane.xlu0 %391  ;;  %437 = vadd.xlane.f32.xlu1 %v436_v56  ;;  %v5906_v56 = vld [vmem:[%s7112_s0 + $0x10] sm:$0xff] }
 0x24c   :  { %v5804_v59 = vsub.f32 %v5775_v32, %v404_v55  ;;  %v405_v60 = vmul.f32 0.03125, %v392_v58  ;;  %v433_v61 = vsel %vm383_vm6, %v419_v57, 0.0  ;;  %v418_v62 = vmul.f32 %v412_v54, %v412_v54  ;;  %v5900_v55 = vld [vmem:[%s7112_s0 + $0x8] sm:$0xff]  ;;  %v5916_v57 = vld [vmem:[%s7112_s0 + $0x18] sm:$0xff]  ;;  %v5921_v58 = vld [vmem:[%s7112_s0 + $0x20] sm:$0xff] }
 0x24d   :  { %434 = vadd.xlane.f32.xlu0 %v433_v61  ;;  %v5545_v61 = vmov 0.0  }
 0x24e   :  { %v411_v63 = vsub.f32 %v5781_v35, %v405_v60  ;;  %v430_v1 = vsel %vm383_vm6, %v418_v62, 0.0  ;;  %v416_v2 = vmul.f32 %v5804_v59, %v5804_v59  ;;  %v5111_v60 = vld [vmem:[%s7088_s12 + $0x8] sm:$0xff]   ;;  %v5112_v62 = vld [vmem:[%s7088_s12] sm:$0xff]  }
 0x24f   :  { %v386_v3 = vpop.xlane.xlu0 %385  ;;  %431 = vadd.xlane.f32.xlu1 %v430_v1 }
 0x250   :  { %v403_v4 = vmul.f32 0.03125, %v386_v3  ;;  %v417_v5 = vmul.f32 %v411_v63, %v411_v63  ;;  %v424_v8 = vsel %vm383_vm6, %v416_v2, 0.0 }
 0x252   :  { %v409_v6 = vsub.f32 %v5777_v33, %v403_v4  ;;  %v427_v7 = vsel %vm383_vm6, %v417_v5, 0.0  ;;  %v690_v4 = vld [vmem:[%s7086_s10] sm:$0x7] }
 0x253   :  { %428 = vadd.xlane.f32.xlu0 %v427_v7  ;;  %425 = vadd.xlane.f32.xlu1 %v424_v8 }
 0x254   :  { %v415_v9 = vmul.f32 %v409_v6, %v409_v6 }
 0x256   :  { %v421_v10 = vsel %vm383_vm6, %v415_v9, 0.0 }
 0x257   :  { %422 = vadd.xlane.f32.xlu0 %v421_v10 }
 0x2d4   :  { %v438_v12 = vpop.xlane.xlu1 %437 }
 0x2d5   :  { %v444_v13 = vmul.f32 0.03125, %v438_v12 }
 0x2d6   :  { %v435_v14 = vpop.xlane.xlu0 %434 }
 0x2d7   :  { %v450_v15 = vadd.f32 1e-06, %v444_v13  ;;  %v443_v16 = vmul.f32 0.03125, %v435_v14 }
 0x2d8   :  { %v432_v17 = vpop.xlane.xlu1 %431 }
 0x2d9   :  { %5139 = vrsqrt.f32 %v450_v15  ;;  %v449_v18 = vadd.f32 1e-06, %v443_v16  ;;  %v442_v19 = vmul.f32 0.03125, %v432_v17 }
 0x2db   :  { %5141 = vrsqrt.f32 %v449_v18  ;;  %v448_v20 = vadd.f32 1e-06, %v442_v19 }
 0x2dc   :  { %v429_v21 = vpop.xlane.xlu0 %428  ;;  %v426_v22 = vpop.xlane.xlu1 %425 }
 0x2dd   :  { %5143 = vrsqrt.f32 %v448_v20  ;;  %v441_v24 = vmul.f32 0.03125, %v429_v21  ;;  %v440_v25 = vmul.f32 0.03125, %v426_v22 }
 0x2df   :  { %v447_v26 = vadd.f32 1e-06, %v441_v24  ;;  %v446_v27 = vadd.f32 1e-06, %v440_v25 }
 0x2e0   :  { %v423_v28 = vpop.xlane.xlu0 %422 }
 0x2e1   :  { %5145 = vrsqrt.f32 %v447_v26  ;;  %v439_v29 = vmul.f32 0.03125, %v423_v28 }
 0x2e2   :  { %5147 = vrsqrt.f32 %v446_v27 }
 0x2e3   :  { %v445_v30 = vadd.f32 1e-06, %v439_v29  ;;  %v4141_v29 = vld [vmem:[#allocation6] ss:$0 sm:$0xff] }
 0x2e5   :  { %5149 = vrsqrt.f32 %v445_v30 }
 0x2e6   :  { %v5140_v31 = vpop.eup %5139 }
 0x2e7   :  { %v5820_v37 = vmul.f32 %v5140_v31, %v414_v47 }
 0x2e8   :  { %v5142_v39 = vpop.eup %5141 }
 0x2e9   :  { %4580 = vmatprep.subr.mxu1 %v5820_v37  ;;  %v5823_v40 = vmul.f32 %v5142_v39, %v413_v50  ;;  %v5852_v50 = vld [vmem:[%s7111_s19 + $0x10] sm:$0xff] }
 0x2ea   :  { %v5144_v41 = vpop.eup %5143  ;;  %4581 = vmatpush3.msra.mxu1 %v5820_v37 }
 0x2eb   :  { %4582 = vmatprep.subr.mxu1 %v5823_v40  ;;  %v5827_v42 = vmul.f32 %v5144_v41, %v412_v54  ;;  %v5888_v54 = vld [vmem:[%s7112_s0] sm:$0xff] }
 0x2ec   :  { %4583 = vmatpush3.msra.mxu1 %v5823_v40 }
 0x2ed   :  { %4584 = vmatprep.subr.mxu1 %v5827_v42 }
 0x2ee   :  { %v5146_v43 = vpop.eup %5145  ;;  %4585 = vmatpush3.msra.mxu1 %v5827_v42 }
 0x2ef   :  { %v5148_v44 = vpop.eup %5147  ;;  %v5832_v45 = vmul.f32 %v5146_v43, %v411_v63  ;;  %v355_v63 = vshrl.u32 %v184_v23, 7 }
 0x2f0   :  { %v5836_v46 = vmul.f32 %v5148_v44, %v5804_v59  ;;  %v5930_v59 = vld [vmem:[%s7112_s0 + $0x28] sm:$0xff] }
 0x2f1   :  { %4586 = vmatprep.subr.mxu1 %v5832_v45  ;;  %v5946_v2 = vsub.s32 0, %v355_v63  ;;  %v5954_v8 = vsub.s32 2, %v355_v63 }
 0x2f2   :  { %v5150_v47 = vpop.eup %5149  ;;  %4587 = vmatpush3.msra.mxu1 %v5832_v45 }
 0x2f3   :  { %4588 = vmatprep.subr.mxu1 %v5836_v46  ;;  %v5840_v48 = vmul.f32 %v5150_v47, %v409_v6  ;;  %v5951_v6 = vsub.s32 1, %v355_v63  ;;  %v694_v7 = vrot.slane %v690_v4, %v5946_v2  ;;  %v720_v12 = vrot.slane %v690_v4, %v5954_v8 }
 0x2f4   :  { %4589 = vmatpush3.msra.mxu1 %v5836_v46 }
 0x2f5   :  { %4590 = vmatprep.subr.mxu1 %v5840_v48  ;;  %v704_v23 = vrot.slane %v690_v4, %v5951_v6 }
 0x2f6   :  { %4591 = vmatpush3.msra.mxu1 %v5840_v48 }
 0x2f7   :  { %4593 = vmatmul.mubr.msk.f32.vlgmr.msra.gmra.mxu1 %vm463_vm7, %v5846_v49  ;;  %4601 = vmatprep.subr.mxu1 %v5820_v37  ;;  %v706_v14 = vmul.f32 %v704_v23, %v5836_v46  ;;  %v705_v18 = vmul.f32 %v704_v23, %v5840_v48  ;;  %v708_v25 = vmul.f32 %v704_v23, %v5827_v42 }
 0x2f8   :  { %4602 = vmatpush3.msra.mxu1 %v5820_v37  ;;  %4595 = vmatprep.mubr.msk.f32.mxu1 %vm463_vm7, %v5852_v50  ;;  %v707_v28 = vmul.f32 %v704_v23, %v5832_v45 }
 0x2f9   :  { %4603 = vmatprep.subr.mxu1 %v5823_v40 }
 0x2fa   :  { %4604 = vmatpush3.msra.mxu1 %v5823_v40 }
 0x2fb   :  { %4596 = vmatmul.mubr.msk.f32.gmra.mxu1 %vm463_vm7, %v5864_v51  ;;  %4605 = vmatprep.subr.mxu1 %v5827_v42 }
 0x2fc   :  { %4606 = vmatpush3.msra.mxu1 %v5827_v42  ;;  %4598 = vmatprep.mubr.msk.f32.mxu1 %vm463_vm7, %v5870_v52  ;;  %v709_v42 = vmul.f32 %v704_v23, %v5823_v40 }
 0x2fd   :  { %4607 = vmatprep.subr.mxu1 %v5832_v45 }
 0x2fe   :  { %4608 = vmatpush3.msra.mxu1 %v5832_v45 }
 0x2ff   :  { %4599 = vmatmul.mubr.msk.f32.gmra.mxu1 %vm463_vm7, %v5882_v53  ;;  %4609 = vmatprep.subr.mxu1 %v5836_v46 }
 0x300   :  { %4610 = vmatpush3.msra.mxu1 %v5836_v46  ;;  %4613 = vmatprep.mubr.msk.f32.mxu1 %vm463_vm7, %v5888_v54  ;;  %v710_v46 = vmul.f32 %v704_v23, %v5820_v37 }
 0x301   :  { %4611 = vmatprep.subr.mxu1 %v5840_v48 }
 0x302   :  { %4612 = vmatpush3.msra.mxu1 %v5840_v48 }
 0x303   :  { %4614 = vmatmul.mubr.msk.f32.vlgmr.msra.gmra.mxu1 %vm463_vm7, %v5900_v55  ;;  %4622 = vmatprep.subr.bf16.mxu1 %v5545_v61 }
 0x304   :  { %4616 = vmatprep.mubr.msk.f32.mxu1 %vm463_vm7, %v5906_v56  ;;  %4623 = vmatpush3.bf16.msra.mxu1 %v5111_v60 }
 0x305   :  { %4624 = vmatprep.subr.bf16.mxu1 %v5545_v61 }
 0x307   :  { %4617 = vmatmul.mubr.msk.f32.gmra.mxu1 %vm463_vm7, %v5916_v57 }
 0x308   :  { %4619 = vmatprep.mubr.msk.f32.mxu1 %vm463_vm7, %v5921_v58  ;;  %4625 = vmatpush3.bf16.msra.mxu1 %v5112_v62 }
 0x309   :  { %4680 = vmatprep.subr.bf16.mxu1 %v5545_v61 }
 0x30b   :  { %4620 = vmatmul.mubr.msk.f32.gmra.mxu1 %vm463_vm7, %v5930_v59 }
 0x30c   :  { %4626 = vmatprep.mubr.msk.bf16.mxu1 %vm5546_vm8, %v5545_v61 }
 0x3b7   :  { %v4594_v1 = vpop.f32.mrf.mxu1 }
 0x3b8   :  { %v696_v11 = vmul.f32 %v4594_v1, %v694_v7 }
 0x3b9   :  { %v548_v3 = vpop.f32.mrf.mxu1 }
 0x3ba   :  { %v695_v15 = vmul.f32 %v694_v7, %v548_v3  ;;  %v712_v17 = vadd.f32 %v706_v14, %v696_v11 }
 0x3bb   :  { %v4597_v5 = vpop.f32.mrf.mxu1 }
 0x3bc   :  { %v698_v19 = vmul.f32 %v4597_v5, %v694_v7  ;;  %v711_v24 = vadd.f32 %v705_v18, %v695_v15 }
 0x3bd   :  { %v558_v9 = vpop.f32.mrf.mxu1 }
 0x3be   :  { %v697_v21 = vmul.f32 %v694_v7, %v558_v9  ;;  %v714_v31 = vadd.f32 %v708_v25, %v698_v19 }
 0x3bf   :  { %v4600_v10 = vpop.f32.mrf.mxu1 }
 0x3c0   :  { %v700_v39 = vmul.f32 %v4600_v10, %v694_v7  ;;  %v713_v44 = vadd.f32 %v707_v28, %v697_v21 }
 0x3c1   :  { %v568_v13 = vpop.f32.mrf.mxu1 }
 0x3c2   :  { %v699_v47 = vmul.f32 %v694_v7, %v568_v13  ;;  %v716_v4 = vadd.f32 %v710_v46, %v700_v39 }
 0x3c3   :  { %v4615_v16 = vpop.f32.mrf.mxu1 }
 0x3c4   :  { %v722_v20 = vmul.f32 %v4615_v16, %v720_v12  ;;  %v715_v11 = vadd.f32 %v709_v42, %v699_v47 }
 0x3c5   :  { %v661_v22 = vpop.f32.mrf.mxu1 }
 0x3c6   :  { %v728_v26 = vadd.f32 %v722_v20, %v712_v17  ;;  %v721_v27 = vmul.f32 %v720_v12, %v661_v22 }
 0x3c7   :  { %v4618_v30 = vpop.f32.mrf.mxu1 }
 0x3c8   :  { %v727_v41 = vadd.f32 %v721_v27, %v711_v24  ;;  %v724_v43 = vmul.f32 %v4618_v30, %v720_v12  ;;  %v741_v60 = vadd.f32 %v4141_v29, %v728_v26  ;;  %v4142_v26 = vld [vmem:[%s7089_s13] ss:$0 sm:$0xff] }
 0x3c9   :  { %v671_v48 = vpop.f32.mrf.mxu1 }
 0x3ca   :  { %v740_v62 = vadd.f32 %v4141_v29, %v727_v41  ;;  %v730_v63 = vadd.f32 %v724_v43, %v714_v31  ;;  %v723_v1 = vmul.f32 %v720_v12, %v671_v48 }
 0x3cb   :  { %v4621_v3 = vpop.f32.mrf.mxu1 }
 0x3cc   :  { %v746_v45 = vpack.c.bf16 %v741_v60, %v740_v62  ;;  %v729_v5 = vadd.f32 %v723_v1, %v713_v44  ;;  %v726_v9 = vmul.f32 %v4621_v3, %v720_v12  ;;  %v743_v14 = vadd.f32 %v4141_v29, %v730_v63 }
 0x3cd   :  { %v681_v10 = vpop.f32.mrf.mxu1 }
 0x3ce   :  { %v742_v15 = vadd.f32 %v4141_v29, %v729_v5  ;;  %v732_v16 = vadd.f32 %v726_v9, %v716_v4  ;;  %v725_v17 = vmul.f32 %v720_v12, %v681_v10  ;;  %4627 = vmatmul.mubr.msk.bf16.vlgmr.msra.gmra.mxu1 %vm383_vm6, %v746_v45 }
 0x3cf   :  { %4630 = vmatprep.mubr.msk.bf16.mxu1 %vm5546_vm8, %v5545_v61 }
 0x3d0   :  { %v731_v37 = vadd.f32 %v725_v17, %v715_v11  ;;  %v747_v7 = vpack.c.bf16 %v743_v14, %v742_v15  ;;  %v745_v13 = vadd.f32 %v4141_v29, %v732_v16 }
 0x3d2   :  { %v744_v40 = vadd.f32 %v4141_v29, %v731_v37 }
 0x3d4   :  { %v748_v23 = vpack.c.bf16 %v745_v13, %v744_v40 }
 0x3d6   :  { %4631 = vmatmul.mubr.msk.bf16.gmra.mxu1 %vm383_vm6, %v747_v7 }
 0x3d7   :  { %4634 = vmatprep.mubr.msk.bf16.mxu1 %vm5546_vm8, %v5545_v61 }
 0x3de   :  { %4635 = vmatmul.mubr.msk.bf16.gmra.mxu1 %vm383_vm6, %v748_v23 }
 0x3df   :  { %4684 = vmatprep.mubr.msk.bf16.mxu1 %vm5546_vm8, %v5545_v61 }
 0x48e   :  { %v815_v12 = vpop.f32.mrf.mxu1 }
 0x48f   :  { %v816_v39 = vadd.f32 %v4142_v26, %v815_v12 }
 0x490   :  { %v4628_v18 = vpop.f32.mrf.mxu1 }
 0x491   :  { %v5988_v62 = vadd.f32 %v816_v39, %v5777_v33 }
 0x492   :  { %v818_v19 = vpop.f32.mrf.mxu1 }
 0x494   :  { %v4629_v20 = vpop.f32.mrf.mxu1 }
 0x496   :  { %v823_v21 = vpop.f32.mrf.mxu1 }
 0x497   :  { %v824_v28 = vadd.f32 %v4142_v26, %v823_v21 }
 0x498   :  { %v4632_v22 = vpop.f32.mrf.mxu1 }
 0x499   :  { %v5980_v43 = vadd.f32 %v824_v28, %v5781_v35 }
 0x49a   :  { %v826_v24 = vpop.f32.mrf.mxu1 }
 0x49b   :  { %v827_v44 = vadd.f32 %v4142_v26, %v826_v24  ;;  %v850_v35 = vsel %vm383_vm6, %v5980_v43, 0.0 }
 0x49c   :  { %v4633_v25 = vpop.f32.mrf.mxu1 }
 0x49d   :  { %v5991_v63 = vadd.f32 %v5779_v34, %v827_v44 }
 0x49e   :  { %v831_v27 = vpop.f32.mrf.mxu1 }
 0x49f   :  { %v832_v29 = vadd.f32 %v4142_v26, %v831_v27  ;;  %v853_v33 = vsel %vm383_vm6, %v5991_v63, 0.0 }
 0x4a0   :  { %v4636_v30 = vpop.f32.mrf.mxu1 }
 0x4a1   :  { %v5977_v31 = vadd.f32 %v832_v29, %v5787_v38  ;;  %v819_v38 = vadd.f32 %v4142_v26, %v818_v19 }
 0x4a2   :  { %v834_v41 = vpop.f32.mrf.mxu1 }
 0x4a3   :  { %v835_v46 = vadd.f32 %v4142_v26, %v834_v41  ;;  %v856_v47 = vsel %vm383_vm6, %v5977_v31, 0.0  ;;  %v5998_v42 = vadd.f32 %v5775_v32, %v819_v38 }
 0x4a4   :  { %857 = vadd.xlane.f32.xlu0 %v856_v47  ;;  %v4637_v48 = vpop.f32.mrf.mxu1 }
 0x4a5   :  { %v5985_v60 = vadd.f32 %v5783_v36, %v835_v46  ;;  %v844_v36 = vsel %vm383_vm6, %v5988_v62, 0.0  ;;  %v847_v34 = vsel %vm383_vm6, %v5998_v42, 0.0 }
 0x4a7   :  { %v859_v1 = vsel %vm383_vm6, %v5985_v60, 0.0 }
 0x4a8   :  { %851 = vadd.xlane.f32.xlu0 %v850_v35  ;;  %860 = vadd.xlane.f32.xlu1 %v859_v1 }
 0x4ac   :  { %845 = vadd.xlane.f32.xlu0 %v844_v36  ;;  %854 = vadd.xlane.f32.xlu1 %v853_v33 }
 0x4b0   :  { %848 = vadd.xlane.f32.xlu1 %v847_v34 }
 0x52d   :  { %v858_v3 = vpop.xlane.xlu0 %857 }
 0x52e   :  { %v866_v4 = vmul.f32 0.03125, %v858_v3 }
 0x530   :  { %v6007_v45 = vsub.f32 %v5977_v31, %v866_v4 }
 0x531   :  { %v852_v5 = vpop.xlane.xlu0 %851  ;;  %v861_v32 = vpop.xlane.xlu1 %860 }
 0x532   :  { %v864_v9 = vmul.f32 0.03125, %v852_v5  ;;  %v867_v11 = vmul.f32 0.03125, %v861_v32  ;;  %v878_v10 = vmul.f32 %v6007_v45, %v6007_v45 }
 0x534   :  { %v6012_v14 = vsub.f32 %v5980_v43, %v864_v9  ;;  %v873_v15 = vsub.f32 %v5985_v60, %v867_v11  ;;  %v892_v16 = vsel %vm383_vm6, %v878_v10, 0.0 }
 0x535   :  { %893 = vadd.xlane.f32.xlu0 %v892_v16  ;;  %v846_v17 = vpop.xlane.xlu0 %845  ;;  %v855_v37 = vpop.xlane.xlu1 %854 }
 0x536   :  { %v862_v7 = vmul.f32 0.03125, %v846_v17  ;;  %v865_v13 = vmul.f32 0.03125, %v855_v37  ;;  %v876_v40 = vmul.f32 %v6012_v14, %v6012_v14  ;;  %v879_v23 = vmul.f32 %v873_v15, %v873_v15 }
 0x538   :  { %v868_v12 = vsub.f32 %v5988_v62, %v862_v7  ;;  %v871_v18 = vsub.f32 %v5991_v63, %v865_v13  ;;  %v886_v19 = vsel %vm383_vm6, %v876_v40, 0.0  ;;  %v895_v20 = vsel %vm383_vm6, %v879_v23, 0.0 }
 0x539   :  { %887 = vadd.xlane.f32.xlu0 %v886_v19  ;;  %896 = vadd.xlane.f32.xlu1 %v895_v20  ;;  %v849_v21 = vpop.xlane.xlu1 %848 }
 0x53a   :  { %v863_v22 = vmul.f32 0.03125, %v849_v21  ;;  %v874_v24 = vmul.f32 %v868_v12, %v868_v12  ;;  %v877_v25 = vmul.f32 %v871_v18, %v871_v18 }
 0x53c   :  { %v869_v26 = vsub.f32 %v5998_v42, %v863_v22  ;;  %v880_v27 = vsel %vm383_vm6, %v874_v24, 0.0  ;;  %v889_v28 = vsel %vm383_vm6, %v877_v25, 0.0 }
 0x53d   :  { %881 = vadd.xlane.f32.xlu0 %v880_v27  ;;  %890 = vadd.xlane.f32.xlu1 %v889_v28 }
 0x53e   :  { %v875_v29 = vmul.f32 %v869_v26, %v869_v26 }
 0x540   :  { %v883_v30 = vsel %vm383_vm6, %v875_v29, 0.0 }
 0x541   :  { %884 = vadd.xlane.f32.xlu1 %v883_v30 }
 0x5be   :  { %v894_v39 = vpop.xlane.xlu0 %893 }
 0x5bf   :  { %v902_v41 = vmul.f32 0.03125, %v894_v39 }
 0x5c1   :  { %v908_v47 = vadd.f32 1e-06, %v902_v41 }
 0x5c2   :  { %v888_v44 = vpop.xlane.xlu0 %887  ;;  %v897_v46 = vpop.xlane.xlu1 %896 }
 0x5c3   :  { %v900_v48 = vmul.f32 0.03125, %v888_v44  ;;  %v903_v38 = vmul.f32 0.03125, %v897_v46  ;;  %5151 = vrsqrt.f32 %v908_v47  ;;  %v4161_v47 = vld [vmem:[#allocation6 + $0x1] ss:$0 sm:$0xff] }
 0x5c5   :  { %v909_v35 = vadd.f32 1e-06, %v903_v38  ;;  %v906_v33 = vadd.f32 1e-06, %v900_v48 }
 0x5c6   :  { %v882_v1 = vpop.xlane.xlu0 %881  ;;  %v891_v36 = vpop.xlane.xlu1 %890 }
 0x5c7   :  { %v901_v34 = vmul.f32 0.03125, %v891_v36  ;;  %5153 = vrsqrt.f32 %v909_v35  ;;  %v898_v3 = vmul.f32 0.03125, %v882_v1 }
 0x5c8   :  { %5155 = vrsqrt.f32 %v906_v33 }
 0x5c9   :  { %v907_v4 = vadd.f32 1e-06, %v901_v34  ;;  %v904_v9 = vadd.f32 1e-06, %v898_v3 }
 0x5ca   :  { %v885_v5 = vpop.xlane.xlu1 %884 }
 0x5cb   :  { %v899_v32 = vmul.f32 0.03125, %v885_v5  ;;  %5157 = vrsqrt.f32 %v907_v4 }
 0x5cd   :  { %v905_v11 = vadd.f32 1e-06, %v899_v32 }
 0x5cf   :  { %5159 = vrsqrt.f32 %v905_v11 }
 0x5d0   :  { %5161 = vrsqrt.f32 %v904_v9  ;;  %v5152_v10 = vpop.eup %5151 }
 0x5d1   :  { %v6030_v7 = vmul.f32 %v5152_v10, %v6007_v45 }
 0x5d4   :  { %v5154_v16 = vpop.eup %5153 }
 0x5d5   :  { %v6026_v17 = vmul.f32 %v5154_v16, %v873_v15  ;;  %v5156_v37 = vpop.eup %5155 }
 0x5d6   :  { %v6039_v15 = vmul.f32 %v5156_v37, %v6012_v14 }
 0x5d7   :  { %4638 = vmatprep.subr.mxu0 %v6026_v17 }
 0x5d8   :  { %v5158_v13 = vpop.eup %5157  ;;  %4639 = vmatpush3.msra.mxu0 %v6026_v17 }
 0x5d9   :  { %4640 = vmatprep.subr.mxu0 %v6030_v7  ;;  %v6034_v40 = vmul.f32 %v5158_v13, %v871_v18 }
 0x5da   :  { %4641 = vmatpush3.msra.mxu0 %v6030_v7 }
 0x5db   :  { %4642 = vmatprep.subr.mxu0 %v6034_v40 }
 0x5dc   :  { %v5160_v23 = vpop.eup %5159  ;;  %4643 = vmatpush3.msra.mxu0 %v6034_v40 }
 0x5dd   :  { %v5162_v19 = vpop.eup %5161  ;;  %v917_v45 = vmul.f32 %v5160_v23, %v869_v26  ;;  %4644 = vmatprep.subr.mxu0 %v6039_v15 }
 0x5de   :  { %4645 = vmatpush3.msra.mxu0 %v6039_v15  ;;  %v916_v20 = vmul.f32 %v5162_v19, %v868_v12 }
 0x5df   :  { %4646 = vmatprep.subr.mxu0 %v917_v45 }
 0x5e0   :  { %4647 = vmatpush3.msra.mxu0 %v917_v45 }
 0x5e1   :  { %4648 = vmatprep.subr.mxu0 %v916_v20 }
 0x5e2   :  { %4649 = vmatpush3.msra.mxu0 %v916_v20 }
 0x5e3   :  { %4651 = vmatmul.mubr.msk.f32.vlgmr.msra.gmra.mxu0 %vm463_vm7, %v5846_v49  ;;  %4659 = vmatprep.subr.mxu0 %v6026_v17  ;;  %v5113_v49 = vld [vmem:[%s7088_s12 + $0x18] sm:$0xff]  }
 0x5e4   :  { %4660 = vmatpush3.msra.mxu0 %v6026_v17  ;;  %4653 = vmatprep.mubr.msk.f32.mxu0 %vm463_vm7, %v5852_v50  ;;  %v5114_v50 = vld [vmem:[%s7088_s12 + $0x10] sm:$0xff]  }
 0x5e5   :  { %4661 = vmatprep.subr.mxu0 %v6030_v7  ;;  %4681 = vmatpush3.bf16.msra.mxu1 %v5113_v49 }
 0x5e6   :  { %4662 = vmatpush3.msra.mxu0 %v6030_v7  ;;  %4682 = vmatprep.subr.bf16.mxu1 %v5545_v61 }
 0x5e7   :  { %4654 = vmatmul.mubr.msk.f32.gmra.mxu0 %vm463_vm7, %v5864_v51  ;;  %4663 = vmatprep.subr.mxu0 %v6034_v40 }
 0x5e8   :  { %4664 = vmatpush3.msra.mxu0 %v6034_v40  ;;  %4656 = vmatprep.mubr.msk.f32.mxu0 %vm463_vm7, %v5870_v52 }
 0x5e9   :  { %4665 = vmatprep.subr.mxu0 %v6039_v15  ;;  %4683 = vmatpush3.bf16.msra.mxu1 %v5114_v50 }
 0x5ea   :  { %4666 = vmatpush3.msra.mxu0 %v6039_v15  ;;  %4714 = vmatprep.subr.bf16.mxu1 %v5545_v61 }
 0x5eb   :  { %4657 = vmatmul.mubr.msk.f32.gmra.mxu0 %vm463_vm7, %v5882_v53  ;;  %4667 = vmatprep.subr.mxu0 %v917_v45  ;;  %v4160_v53 = vld [vmem:[%s7086_s10 + $0x4] sm:$0x7] }
 0x5ec   :  { %4668 = vmatpush3.msra.mxu0 %v917_v45  ;;  %4671 = vmatprep.mubr.msk.f32.mxu0 %vm463_vm7, %v5888_v54  ;;  %v1143_v14 = vrot.slane %v4160_v53, %v5954_v8 }
 0x5ed   :  { %4669 = vmatprep.subr.mxu0 %v916_v20 }
 0x5ee   :  { %4670 = vmatpush3.msra.mxu0 %v916_v20 }
 0x5ef   :  { %4672 = vmatmul.mubr.msk.f32.vlgmr.msra.gmra.mxu0 %vm463_vm7, %v5900_v55  ;;  %4696 = vmatprep.subr.bf16.mxu0 %v5545_v61  ;;  %v1117_v55 = vrot.slane %v4160_v53, %v5946_v2 }
 0x5f0   :  { %4674 = vmatprep.mubr.msk.f32.mxu0 %vm463_vm7, %v5906_v56 }
 0x5f3   :  { %4675 = vmatmul.mubr.msk.f32.gmra.mxu0 %vm463_vm7, %v5916_v57 }
 0x5f4   :  { %4677 = vmatprep.mubr.msk.f32.mxu0 %vm463_vm7, %v5921_v58 }
 0x5f7   :  { %4678 = vmatmul.mubr.msk.f32.gmra.mxu0 %vm463_vm7, %v5930_v59  ;;  %v1127_v59 = vrot.slane %v4160_v53, %v5951_v6 }
 0x5f8   :  { %4702 = vmatprep.mubr.msk.bf16.mxu0 %vm5546_vm8, %v5545_v61 }
 0x5f9   :  { %v1129_v18 = vmul.f32 %v1127_v59, %v917_v45  ;;  %v1128_v25 = vmul.f32 %v1127_v59, %v916_v20  ;;  %v1131_v39 = vmul.f32 %v1127_v59, %v6034_v40  ;;  %v1130_v46 = vmul.f32 %v1127_v59, %v6039_v15 }
 0x5fa   :  { %v1133_v34 = vmul.f32 %v1127_v59, %v6026_v17  ;;  %v1132_v10 = vmul.f32 %v1127_v59, %v6030_v7 }
 0x6a3   :  { %v4652_v51 = vpop.f32.mrf.mxu0 }
 0x6a4   :  { %v1119_v58 = vmul.f32 %v4652_v51, %v1117_v55 }
 0x6a5   :  { %v988_v52 = vpop.f32.mrf.mxu0 }
 0x6a6   :  { %v1118_v21 = vmul.f32 %v1117_v55, %v988_v52  ;;  %v1135_v24 = vadd.f32 %v1129_v18, %v1119_v58  ;;  %v4167_v18 = vld [vmem:[%s7089_s13 + $0x1] ss:$0 sm:$0xff] }
 0x6a7   :  { %v4655_v54 = vpop.f32.mrf.mxu0 }
 0x6a8   :  { %v1121_v26 = vmul.f32 %v4655_v54, %v1117_v55  ;;  %v1134_v30 = vadd.f32 %v1128_v25, %v1118_v21 }
 0x6a9   :  { %v998_v56 = vpop.f32.mrf.mxu0 }
 0x6aa   :  { %v1120_v28 = vmul.f32 %v1117_v55, %v998_v56  ;;  %v1137_v38 = vadd.f32 %v1131_v39, %v1121_v26 }
 0x6ab   :  { %v4658_v57 = vpop.f32.mrf.mxu0 }
 0x6ac   :  { %v1123_v35 = vmul.f32 %v4658_v57, %v1117_v55  ;;  %v1136_v33 = vadd.f32 %v1130_v46, %v1120_v28 }
 0x6ad   :  { %v1008_v12 = vpop.f32.mrf.mxu0 }
 0x6ae   :  { %v1122_v3 = vmul.f32 %v1117_v55, %v1008_v12  ;;  %v1139_v37 = vadd.f32 %v1133_v34, %v1123_v35 }
 0x6af   :  { %v4673_v22 = vpop.f32.mrf.mxu0 }
 0x6b0   :  { %v1145_v27 = vmul.f32 %v4673_v22, %v1143_v14  ;;  %v1138_v15 = vadd.f32 %v1132_v10, %v1122_v3 }
 0x6b1   :  { %v1083_v29 = vpop.f32.mrf.mxu0 }
 0x6b2   :  { %v1151_v41 = vadd.f32 %v1145_v27, %v1135_v24  ;;  %v1144_v44 = vmul.f32 %v1143_v14, %v1083_v29 }
 0x6b3   :  { %v4676_v48 = vpop.f32.mrf.mxu0 }
 0x6b4   :  { %v1150_v1 = vadd.f32 %v1144_v44, %v1134_v30  ;;  %v1147_v36 = vmul.f32 %v4676_v48, %v1143_v14  ;;  %v1165_v5 = vadd.f32 %v4161_v47, %v1151_v41 }
 0x6b5   :  { %v1093_v4 = vpop.f32.mrf.mxu0 }
 0x6b6   :  { %v1164_v32 = vadd.f32 %v4161_v47, %v1150_v1  ;;  %v1153_v9 = vadd.f32 %v1147_v36, %v1137_v38  ;;  %v1146_v11 = vmul.f32 %v1143_v14, %v1093_v4 }
 0x6b7   :  { %v4679_v16 = vpop.f32.mrf.mxu0 }
 0x6b8   :  { %v1170_v13 = vpack.c.bf16 %v1165_v5, %v1164_v32  ;;  %v1152_v40 = vadd.f32 %v1146_v11, %v1136_v33  ;;  %v1149_v23 = vmul.f32 %v4679_v16, %v1143_v14  ;;  %v1167_v45 = vadd.f32 %v4161_v47, %v1153_v9 }
 0x6b9   :  { %v1103_v19 = vpop.f32.mrf.mxu0 }
 0x6ba   :  { %v1166_v20 = vadd.f32 %v4161_v47, %v1152_v40  ;;  %v1155_v49 = vadd.f32 %v1149_v23, %v1139_v37  ;;  %v1148_v50 = vmul.f32 %v1143_v14, %v1103_v19  ;;  %4685 = vmatmul.mubr.msk.bf16.vlgmr.msra.gmra.mxu1 %vm383_vm6, %v1170_v13 }
 0x6bb   :  { %4688 = vmatprep.mubr.msk.bf16.mxu1 %vm5546_vm8, %v5545_v61 }
 0x6bc   :  { %v1154_v17 = vadd.f32 %v1148_v50, %v1138_v15  ;;  %v1171_v51 = vpack.c.bf16 %v1167_v45, %v1166_v20  ;;  %v1169_v52 = vadd.f32 %v4161_v47, %v1155_v49 }
 0x6be   :  { %v1168_v7 = vadd.f32 %v4161_v47, %v1154_v17 }
 0x6c0   :  { %v1172_v53 = vpack.c.bf16 %v1169_v52, %v1168_v7 }
 0x6c2   :  { %4689 = vmatmul.mubr.msk.bf16.gmra.mxu1 %vm383_vm6, %v1171_v51 }
 0x6c3   :  { %4692 = vmatprep.mubr.msk.bf16.mxu1 %vm5546_vm8, %v5545_v61 }
 0x6ca   :  { %4693 = vmatmul.mubr.msk.bf16.gmra.mxu1 %vm383_vm6, %v1172_v53 }
 0x6cb   :  { %4720 = vmatprep.mubr.msk.bf16.mxu1 %vm5546_vm8, %v5545_v61 }
 0x77a   :  { %v1241_v54 = vpop.f32.mrf.mxu1 }
 0x77b   :  { %v1242_v27 = vadd.f32 %v4167_v18, %v1241_v54 }
 0x77c   :  { %v4686_v55 = vpop.f32.mrf.mxu1 }
 0x77d   :  { %v6119_v47 = vadd.f32 %v1242_v27, %v5988_v62 }
 0x77e   :  { %v1244_v56 = vpop.f32.mrf.mxu1 }
 0x780   :  { %v4687_v57 = vpop.f32.mrf.mxu1 }
 0x782   :  { %v1249_v58 = vpop.f32.mrf.mxu1 }
 0x783   :  { %v1250_v22 = vadd.f32 %v4167_v18, %v1249_v58 }
 0x784   :  { %v4690_v59 = vpop.f32.mrf.mxu1 }
 0x785   :  { %v6111_v29 = vadd.f32 %v1250_v22, %v5980_v43 }
 0x786   :  { %v1252_v14 = vpop.f32.mrf.mxu1 }
 0x787   :  { %v1253_v30 = vadd.f32 %v4167_v18, %v1252_v14  ;;  %v1276_v43 = vsel %vm383_vm6, %v6111_v29, 0.0 }
 0x788   :  { %v4691_v12 = vpop.f32.mrf.mxu1 }
 0x789   :  { %v6122_v48 = vadd.f32 %v1253_v30, %v5991_v63 }
 0x78a   :  { %v1257_v21 = vpop.f32.mrf.mxu1 }
 0x78b   :  { %v1258_v24 = vadd.f32 %v4167_v18, %v1257_v21  ;;  %v1279_v62 = vsel %vm383_vm6, %v6122_v48, 0.0 }
 0x78c   :  { %v4694_v25 = vpop.f32.mrf.mxu1 }
 0x78d   :  { %v6108_v26 = vadd.f32 %v1258_v24, %v5977_v31  ;;  %v1245_v31 = vadd.f32 %v4167_v18, %v1244_v56 }
 0x78e   :  { %v1260_v28 = vpop.f32.mrf.mxu1 }
 0x78f   :  { %v1261_v39 = vadd.f32 %v4167_v18, %v1260_v28  ;;  %v1282_v41 = vsel %vm383_vm6, %v6108_v26, 0.0  ;;  %v6129_v35 = vadd.f32 %v1245_v31, %v5998_v42 }
 0x790   :  { %1283 = vadd.xlane.f32.xlu1 %v1282_v41  ;;  %v4695_v44 = vpop.f32.mrf.mxu1 }
 0x791   :  { %v6116_v46 = vadd.f32 %v1261_v39, %v5985_v60  ;;  %v1270_v60 = vsel %vm383_vm6, %v6119_v47, 0.0  ;;  %v1273_v63 = vsel %vm383_vm6, %v6129_v35, 0.0 }
 0x793   :  { %v1285_v38 = vsel %vm383_vm6, %v6116_v46, 0.0 }
 0x794   :  { %1277 = vadd.xlane.f32.xlu1 %v1276_v43  ;;  %1286 = vadd.xlane.f32.xlu0 %v1285_v38 }
 0x798   :  { %1271 = vadd.xlane.f32.xlu1 %v1270_v60  ;;  %1280 = vadd.xlane.f32.xlu0 %v1279_v62 }
 0x79c   :  { %1274 = vadd.xlane.f32.xlu0 %v1273_v63 }
 0x819   :  { %v1284_v1 = vpop.xlane.xlu1 %1283 }
 0x81a   :  { %v1292_v36 = vmul.f32 0.03125, %v1284_v1 }
 0x81c   :  { %v1298_v33 = vsub.f32 %v6108_v26, %v1292_v36 }
 0x81d   :  { %v1278_v34 = vpop.xlane.xlu1 %1277  ;;  %v1287_v3 = vpop.xlane.xlu0 %1286 }
 0x81e   :  { %v1290_v42 = vmul.f32 0.03125, %v1278_v34  ;;  %v1293_v4 = vmul.f32 0.03125, %v1287_v3  ;;  %v1304_v5 = vmul.f32 %v1298_v33, %v1298_v33 }
 0x820   :  { %v1296_v32 = vsub.f32 %v6111_v29, %v1290_v42  ;;  %v1299_v9 = vsub.f32 %v6116_v46, %v1293_v4  ;;  %v1318_v11 = vsel %vm383_vm6, %v1304_v5, 0.0 }
 0x821   :  { %1319 = vadd.xlane.f32.xlu1 %v1318_v11  ;;  %v1272_v10 = vpop.xlane.xlu1 %1271  ;;  %v1281_v16 = vpop.xlane.xlu0 %1280 }
 0x822   :  { %v1288_v37 = vmul.f32 0.03125, %v1272_v10  ;;  %v1291_v13 = vmul.f32 0.03125, %v1281_v16  ;;  %v1302_v40 = vmul.f32 %v1296_v32, %v1296_v32  ;;  %v1305_v23 = vmul.f32 %v1299_v9, %v1299_v9 }
 0x824   :  { %v1294_v15 = vsub.f32 %v6119_v47, %v1288_v37  ;;  %v1297_v19 = vsub.f32 %v6122_v48, %v1291_v13  ;;  %v1312_v45 = vsel %vm383_vm6, %v1302_v40, 0.0  ;;  %v1321_v20 = vsel %vm383_vm6, %v1305_v23, 0.0  ;;  %v333_v37 = vld [vmem:[%s7113_s8] sm:$0xff] }
 0x825   :  { %1313 = vadd.xlane.f32.xlu1 %v1312_v45  ;;  %1322 = vadd.xlane.f32.xlu0 %v1321_v20  ;;  %v1275_v49 = vpop.xlane.xlu0 %1274 }
 0x826   :  { %v1289_v50 = vmul.f32 0.03125, %v1275_v49  ;;  %v1300_v17 = vmul.f32 %v1294_v15, %v1294_v15  ;;  %v1303_v51 = vmul.f32 %v1297_v19, %v1297_v19 }
 0x828   :  { %v1295_v52 = vsub.f32 %v6129_v35, %v1289_v50  ;;  %v1306_v7 = vsel %vm383_vm6, %v1300_v17, 0.0  ;;  %v1315_v53 = vsel %vm383_vm6, %v1303_v51, 0.0  ;;  %v335_v50 = vld [vmem:[%s7113_s8 + $0x10] sm:$0xff] }
 0x829   :  { %1307 = vadd.xlane.f32.xlu1 %v1306_v7  ;;  %1316 = vadd.xlane.f32.xlu0 %v1315_v53  ;;  %v336_v53 = vld [vmem:[%s7113_s8 + $0x18] sm:$0xff] }
 0x82a   :  { %v1301_v54 = vmul.f32 %v1295_v52, %v1295_v52 }
 0x82c   :  { %v1309_v55 = vsel %vm383_vm6, %v1301_v54, 0.0 }
 0x82d   :  { %1310 = vadd.xlane.f32.xlu0 %v1309_v55 }
 0x8aa   :  { %v1320_v56 = vpop.xlane.xlu1 %1319 }
 0x8ab   :  { %v1328_v57 = vmul.f32 0.03125, %v1320_v56 }
 0x8ad   :  { %v1334_v58 = vadd.f32 1e-06, %v1328_v57 }
 0x8ae   :  { %v1314_v59 = vpop.xlane.xlu1 %1313  ;;  %v1323_v14 = vpop.xlane.xlu0 %1322 }
 0x8af   :  { %v1326_v12 = vmul.f32 0.03125, %v1314_v59  ;;  %v1329_v18 = vmul.f32 0.03125, %v1323_v14  ;;  %5163 = vrsqrt.f32 %v1334_v58  ;;  %v337_v58 = vld [vmem:[%s7113_s8 + $0x20] sm:$0xff] }
 0x8b1   :  { %v1335_v21 = vadd.f32 1e-06, %v1329_v18  ;;  %v1332_v22 = vadd.f32 1e-06, %v1326_v12 }
 0x8b2   :  { %v1308_v24 = vpop.xlane.xlu1 %1307  ;;  %v1317_v25 = vpop.xlane.xlu0 %1316 }
 0x8b3   :  { %v1324_v27 = vmul.f32 0.03125, %v1308_v24  ;;  %v1327_v28 = vmul.f32 0.03125, %v1317_v25  ;;  %5165 = vrsqrt.f32 %v1335_v21  ;;  %v338_v21 = vld [vmem:[%s7113_s8 + $0x28] sm:$0xff] }
 0x8b4   :  { %5167 = vrsqrt.f32 %v1332_v22 }
 0x8b5   :  { %v1330_v30 = vadd.f32 1e-06, %v1324_v27  ;;  %v1333_v39 = vadd.f32 1e-06, %v1327_v28 }
 0x8b6   :  { %v1311_v41 = vpop.xlane.xlu0 %1310 }
 0x8b7   :  { %v1325_v44 = vmul.f32 0.03125, %v1311_v41  ;;  %5169 = vrsqrt.f32 %v1333_v39 }
 0x8b8   :  { %5171 = vrsqrt.f32 %v1330_v30 }
 0x8b9   :  { %v1331_v31 = vadd.f32 1e-06, %v1325_v44 }
 0x8bb   :  { %5173 = vrsqrt.f32 %v1331_v31 }
 0x8bc   :  { %v5164_v43 = vpop.eup %5163 }
 0x8bd   :  { %v1346_v60 = vmul.f32 %v5164_v43, %v1298_v33 }
 0x8c0   :  { %v5166_v38 = vpop.eup %5165 }
 0x8c1   :  { %v1347_v62 = vmul.f32 %v5166_v38, %v1299_v9  ;;  %v5168_v63 = vpop.eup %5167 }
 0x8c2   :  { %v1344_v42 = vmul.f32 %v5168_v63, %v1296_v32 }
 0x8c3   :  { %v1350_v1 = vpack.c.bf16 %v1347_v62, %v1346_v60 }
 0x8c4   :  { %v5170_v36 = vpop.eup %5169 }
 0x8c5   :  { %v5172_v34 = vpop.eup %5171  ;;  %4715 = vmatpush3.bf16.msra.mxu1 %v1350_v1  ;;  %v1358_v3 = vsel %vm383_vm6, %v1350_v1, 0  ;;  %v1345_v4 = vmul.f32 %v5170_v36, %v1297_v19 }
 0x8c6   :  { %4697 = vmatpush3.bf16.xpose.msra.mxu0 %v1358_v3  ;;  %4716 = vmatprep.subr.bf16.mxu1 %v5545_v61  ;;  %v1342_v10 = vmul.f32 %v5172_v34, %v1294_v15  ;;  %v334_v15 = vld [vmem:[%s7113_s8 + $0x8] sm:$0xff] }
 0x8c7   :  { %v1349_v11 = vpack.c.bf16 %v1345_v4, %v1344_v42  ;;  %4698 = vmatprep.subr.bf16.mxu0 %v5545_v61 }
 0x8c8   :  { %v5174_v5 = vpop.eup %5173 }
 0x8c9   :  { %v1343_v16 = vmul.f32 %v5174_v5, %v1295_v52  ;;  %4717 = vmatpush3.bf16.msra.mxu1 %v1349_v11  ;;  %v1355_v9 = vsel %vm383_vm6, %v1349_v11, 0 }
 0x8ca   :  { %4718 = vmatprep.subr.bf16.mxu1 %v5545_v61 }
 0x8cb   :  { %v1348_v33 = vpack.c.bf16 %v1343_v16, %v1342_v10 }
 0x8cd   :  { %4719 = vmatpush3.bf16.msra.mxu1 %v1348_v33  ;;  %v1352_v32 = vsel %vm383_vm6, %v1348_v33, 0 }
 0x8ce   :  { %4699 = vmatpush3.bf16.xpose.msra.mxu0 %v1355_v9  ;;  %4748 = vmatprep.subr.bf16.mxu1 %v5545_v61 }
 0x8cf   :  { %4700 = vmatprep.subr.bf16.mxu0 %v5545_v61 }
 0x8d6   :  { %4701 = vmatpush3.bf16.xpose.msra.mxu0 %v1352_v32 }
 0x8d7   :  { %4732 = vmatprep.subr.bf16.mxu0 %v5545_v61 }
 0x8dd   :  { %4703 = vmatmul.mubr.msk.bf16.vlgmr.msra.gmra.mxu0 %vm383_vm6, %v1348_v33 }
 0x8de   :  { %4706 = vmatprep.mubr.msk.bf16.mxu0 %vm5546_vm8, %v5545_v61 }
 0x8e5   :  { %4707 = vmatmul.mubr.msk.bf16.gmra.mxu0 %vm383_vm6, %v1349_v11 }
 0x8e6   :  { %4710 = vmatprep.mubr.msk.bf16.mxu0 %vm5546_vm8, %v5545_v61 }
 0x8ed   :  { %4711 = vmatmul.mubr.msk.bf16.gmra.mxu0 %vm383_vm6, %v1350_v1 }
 0x8ee   :  { %4736 = vmatprep.mubr.msk.bf16.mxu0 %vm5546_vm8, %v5545_v61 }
 0x99d   :  { %v1394_v13 = vpop.f32.mrf.mxu0 }
 0x99e   :  { %v1395_v40 = vadd.f32 %v1394_v13, %v333_v37 }
 0x99f   :  { %v4704_v23 = vpop.f32.mrf.mxu0 }
 0x9a0   :  { %v1417_v19 = vsel %vm463_vm7, %v1395_v40, -inf }
 0x9a1   :  { %1418 = vmax.xlane.f32.xlu1 %v1417_v19  ;;  %v1397_v45 = vpop.f32.mrf.mxu0 }
 0x9a2   :  { %v1398_v20 = vadd.f32 %v1397_v45, %v334_v15 }
 0x9a3   :  { %v4705_v49 = vpop.f32.mrf.mxu0 }
 0x9a4   :  { %v1420_v17 = vsel %vm463_vm7, %v1398_v20, -inf }
 0x9a5   :  { %1421 = vmax.xlane.f32.xlu0 %v1420_v17  ;;  %v1402_v51 = vpop.f32.mrf.mxu0 }
 0x9a6   :  { %v1403_v52 = vadd.f32 %v1402_v51, %v335_v50 }
 0x9a7   :  { %v4708_v7 = vpop.f32.mrf.mxu0 }
 0x9a8   :  { %v1423_v54 = vsel %vm463_vm7, %v1403_v52, -inf }
 0x9a9   :  { %1424 = vmax.xlane.f32.xlu1 %v1423_v54  ;;  %v1405_v55 = vpop.f32.mrf.mxu0 }
 0x9aa   :  { %v1406_v56 = vadd.f32 %v1405_v55, %v336_v53 }
 0x9ab   :  { %v4709_v57 = vpop.f32.mrf.mxu0 }
 0x9ac   :  { %v1426_v59 = vsel %vm463_vm7, %v1406_v56, -inf }
 0x9ad   :  { %1427 = vmax.xlane.f32.xlu0 %v1426_v59  ;;  %v1410_v14 = vpop.f32.mrf.mxu0 }
 0x9ae   :  { %v1411_v12 = vadd.f32 %v1410_v14, %v337_v58 }
 0x9af   :  { %v4712_v18 = vpop.f32.mrf.mxu0 }
 0x9b0   :  { %v1429_v22 = vsel %vm463_vm7, %v1411_v12, -inf }
 0x9b1   :  { %1430 = vmax.xlane.f32.xlu1 %v1429_v22  ;;  %v1413_v24 = vpop.f32.mrf.mxu0 }
 0x9b2   :  { %v1414_v25 = vadd.f32 %v1413_v24, %v338_v21 }
 0x9b3   :  { %v4713_v27 = vpop.f32.mrf.mxu0 }
 0x9b4   :  { %v1432_v28 = vsel %vm463_vm7, %v1414_v25, -inf }
 0x9b5   :  { %1433 = vmax.xlane.f32.xlu0 %v1432_v28 }
 0xa2a   :  { %v1419_v30 = vpop.xlane.xlu1 %1418 }
 0xa2b   :  { %v1435_v39 = vsub.f32 %v1395_v40, %v1419_v30 }
 0xa2d   :  { %v1441_v41 = vmul.f32 1.442695, %v1435_v39 }
 0xa2e   :  { %v1422_v44 = vpop.xlane.xlu0 %1421 }
 0xa2f   :  { %5175 = vpow2.f32 %v1441_v41  ;;  %v1436_v31 = vsub.f32 %v1398_v20, %v1422_v44 }
 0xa31   :  { %v1443_v43 = vmul.f32 1.442695, %v1436_v31 }
 0xa32   :  { %v1425_v38 = vpop.xlane.xlu1 %1424 }
 0xa33   :  { %5177 = vpow2.f32 %v1443_v43  ;;  %v1437_v60 = vsub.f32 %v1403_v52, %v1425_v38 }
 0xa35   :  { %v1445_v62 = vmul.f32 1.442695, %v1437_v60 }
 0xa36   :  { %v1428_v63 = vpop.xlane.xlu0 %1427 }
 0xa37   :  { %5179 = vpow2.f32 %v1445_v62  ;;  %v1438_v1 = vsub.f32 %v1406_v56, %v1428_v63 }
 0xa39   :  { %v1447_v36 = vmul.f32 1.442695, %v1438_v1 }
 0xa3a   :  { %v1431_v34 = vpop.xlane.xlu1 %1430 }
 0xa3b   :  { %5181 = vpow2.f32 %v1447_v36  ;;  %v1439_v3 = vsub.f32 %v1411_v12, %v1431_v34 }
 0xa3c   :  { %v5176_v42 = vpop.eup %5175 }
 0xa3d   :  { %v1449_v4 = vmul.f32 1.442695, %v1439_v3  ;;  %v1453_v5 = vsel %vm463_vm7, %v5176_v42, 0.0 }
 0xa3e   :  { %1454 = vadd.xlane.f32.xlu1 %v1453_v5  ;;  %v1434_v11 = vpop.xlane.xlu0 %1433 }
 0xa3f   :  { %5183 = vpow2.f32 %v1449_v4  ;;  %v1440_v10 = vsub.f32 %v1414_v25, %v1434_v11 }
 0xa40   :  { %v5178_v16 = vpop.eup %5177 }
 0xa41   :  { %v1451_v33 = vmul.f32 1.442695, %v1440_v10  ;;  %v1456_v9 = vsel %vm463_vm7, %v5178_v16, 0.0 }
 0xa42   :  { %1457 = vadd.xlane.f32.xlu0 %v1456_v9 }
 0xa43   :  { %5185 = vpow2.f32 %v1451_v33 }
 0xa44   :  { %v5180_v32 = vpop.eup %5179 }
 0xa45   :  { %v1459_v37 = vsel %vm463_vm7, %v5180_v32, 0.0 }
 0xa46   :  { %1460 = vadd.xlane.f32.xlu1 %v1459_v37 }
 0xa48   :  { %v5182_v13 = vpop.eup %5181 }
 0xa49   :  { %v1462_v40 = vsel %vm463_vm7, %v5182_v13, 0.0 }
 0xa4a   :  { %1463 = vadd.xlane.f32.xlu0 %v1462_v40 }
 0xa4c   :  { %v5184_v23 = vpop.eup %5183 }
 0xa4d   :  { %v1465_v15 = vsel %vm463_vm7, %v5184_v23, 0.0 }
 0xa4e   :  { %1466 = vadd.xlane.f32.xlu1 %v1465_v15 }
 0xa50   :  { %v5186_v19 = vpop.eup %5185 }
 0xa51   :  { %v1468_v45 = vsel %vm463_vm7, %v5186_v19, 0.0 }
 0xa52   :  { %1469 = vadd.xlane.f32.xlu0 %v1468_v45 }
 0xac7   :  { %v1455_v20 = vpop.xlane.xlu1 %1454 }
 0xac8   :  { %5187 = vrcp.f32 %v1455_v20 }
 0xacb   :  { %v1458_v49 = vpop.xlane.xlu0 %1457 }
 0xacc   :  { %5189 = vrcp.f32 %v1458_v49 }
 0xacf   :  { %v1461_v50 = vpop.xlane.xlu1 %1460 }
 0xad0   :  { %5191 = vrcp.f32 %v1461_v50 }
 0xad3   :  { %v1464_v17 = vpop.xlane.xlu0 %1463 }
 0xad4   :  { %5193 = vrcp.f32 %v1464_v17 }
 0xad5   :  { %v5188_v51 = vpop.eup %5187 }
 0xad6   :  { %v1477_v53 = vmul.f32 %v5188_v51, %v5176_v42 }
 0xad7   :  { %v1467_v52 = vpop.xlane.xlu1 %1466 }
 0xad8   :  { %5195 = vrcp.f32 %v1467_v52 }
 0xad9   :  { %v5190_v7 = vpop.eup %5189 }
 0xada   :  { %v1478_v54 = vmul.f32 %v5190_v7, %v5178_v16 }
 0xadb   :  { %v1470_v55 = vpop.xlane.xlu0 %1469 }
 0xadc   :  { %5197 = vrcp.f32 %v1470_v55  ;;  %v1483_v56 = vpack.c.bf16 %v1478_v54, %v1477_v53 }
 0xadd   :  { %v5192_v57 = vpop.eup %5191 }
 0xade   :  { %4721 = vmatmul.mubr.msk.bf16.vlgmr.msra.gmra.mxu1 %vm463_vm7, %v1483_v56  ;;  %v1479_v59 = vmul.f32 %v5192_v57, %v5180_v32 }
 0xadf   :  { %4724 = vmatprep.mubr.msk.bf16.mxu1 %vm5546_vm8, %v5545_v61 }
 0xae1   :  { %v5194_v58 = vpop.eup %5193 }
 0xae2   :  { %v1480_v14 = vmul.f32 %v5194_v58, %v5182_v13 }
 0xae4   :  { %v1484_v12 = vpack.c.bf16 %v1480_v14, %v1479_v59 }
 0xae5   :  { %v5196_v18 = vpop.eup %5195 }
 0xae6   :  { %4725 = vmatmul.mubr.msk.bf16.gmra.mxu1 %vm463_vm7, %v1484_v12  ;;  %v1481_v22 = vmul.f32 %v5196_v18, %v5184_v23  ;;  %v5115_v18 = vld [vmem:[#allocation7 + $0x8] sm:$0xff]  }
 0xae7   :  { %4728 = vmatprep.mubr.msk.bf16.mxu1 %vm5546_vm8, %v5545_v61  ;;  %4733 = vmatpush3.bf16.msra.mxu0 %v5115_v18 }
 0xae8   :  { %4734 = vmatprep.subr.bf16.mxu0 %v5545_v61 }
 0xae9   :  { %v5198_v21 = vpop.eup %5197 }
 0xaea   :  { %v1482_v24 = vmul.f32 %v5198_v21, %v5186_v19  ;;  %v5116_v21 = vld [vmem:[#allocation7] sm:$0xff]  }
 0xaeb   :  { %4735 = vmatpush3.bf16.msra.mxu0 %v5116_v21 }
 0xaec   :  { %v1485_v25 = vpack.c.bf16 %v1482_v24, %v1481_v22  ;;  %4768 = vmatprep.subr.bf16.mxu0 %v5545_v61  ;;  %v5117_v22 = vld [vmem:[%s7092_s16 + $0x18] sm:$0xff]  }
 0xaed   :  { %4749 = vmatpush3.bf16.msra.mxu1 %v5117_v22 }
 0xaee   :  { %4729 = vmatmul.mubr.msk.bf16.gmra.mxu1 %vm463_vm7, %v1485_v25  ;;  %4750 = vmatprep.subr.bf16.mxu1 %v5545_v61 }
 0xaef   :  { %4756 = vmatprep.mubr.msk.bf16.mxu1 %vm5546_vm8, %v5545_v61 }
 0xb9e   :  { %v1529_v27 = vpop.f32.mrf.mxu1 }
 0xb9f   :  { %v6207_v28 = vadd.f32 %v1529_v27, %v6119_v47 }
 0xba0   :  { %v4722_v30 = vpop.f32.mrf.mxu1 }
 0xba1   :  { %v1552_v39 = vsel %vm383_vm6, %v6207_v28, 0.0 }
 0xba2   :  { %1553 = vadd.xlane.f32.xlu1 %v1552_v39  ;;  %v1532_v41 = vpop.f32.mrf.mxu1 }
 0xba3   :  { %v6212_v44 = vadd.f32 %v1532_v41, %v6129_v35 }
 0xba4   :  { %v4723_v31 = vpop.f32.mrf.mxu1 }
 0xba5   :  { %v1555_v43 = vsel %vm383_vm6, %v6212_v44, 0.0 }
 0xba6   :  { %1556 = vadd.xlane.f32.xlu0 %v1555_v43  ;;  %v1537_v38 = vpop.f32.mrf.mxu1 }
 0xba7   :  { %v6217_v60 = vadd.f32 %v1537_v38, %v6111_v29 }
 0xba8   :  { %v4726_v47 = vpop.f32.mrf.mxu1 }
 0xba9   :  { %v1558_v62 = vsel %vm383_vm6, %v6217_v60, 0.0 }
 0xbaa   :  { %1559 = vadd.xlane.f32.xlu1 %v1558_v62  ;;  %v1540_v63 = vpop.f32.mrf.mxu1 }
 0xbab   :  { %v6222_v1 = vadd.f32 %v1540_v63, %v6122_v48 }
 0xbac   :  { %v4727_v35 = vpop.f32.mrf.mxu1 }
 0xbad   :  { %v1561_v36 = vsel %vm383_vm6, %v6222_v1, 0.0 }
 0xbae   :  { %1562 = vadd.xlane.f32.xlu0 %v1561_v36  ;;  %v1545_v34 = vpop.f32.mrf.mxu1 }
 0xbaf   :  { %v6227_v3 = vadd.f32 %v1545_v34, %v6108_v26 }
 0xbb0   :  { %v4730_v29 = vpop.f32.mrf.mxu1 }
 0xbb1   :  { %v1564_v42 = vsel %vm383_vm6, %v6227_v3, 0.0 }
 0xbb2   :  { %1565 = vadd.xlane.f32.xlu1 %v1564_v42  ;;  %v1548_v4 = vpop.f32.mrf.mxu1 }
 0xbb3   :  { %v6232_v5 = vadd.f32 %v1548_v4, %v6116_v46 }
 0xbb4   :  { %v4731_v48 = vpop.f32.mrf.mxu1 }
 0xbb5   :  { %v1567_v11 = vsel %vm383_vm6, %v6232_v5, 0.0 }
 0xbb6   :  { %1568 = vadd.xlane.f32.xlu0 %v1567_v11 }
 0xc2b   :  { %v1554_v10 = vpop.xlane.xlu1 %1553 }
 0xc2c   :  { %v1570_v16 = vmul.f32 0.03125, %v1554_v10 }
 0xc2e   :  { %v6237_v33 = vsub.f32 %v6207_v28, %v1570_v16 }
 0xc2f   :  { %v1557_v26 = vpop.xlane.xlu0 %1556 }
 0xc30   :  { %v1571_v9 = vmul.f32 0.03125, %v1557_v26  ;;  %v1582_v32 = vmul.f32 %v6237_v33, %v6237_v33 }
 0xc32   :  { %v6242_v37 = vsub.f32 %v6212_v44, %v1571_v9  ;;  %v1588_v46 = vsel %vm383_vm6, %v1582_v32, 0.0 }
 0xc33   :  { %v1560_v13 = vpop.xlane.xlu1 %1559  ;;  %1589 = vadd.xlane.f32.xlu1 %v1588_v46 }
 0xc34   :  { %v1572_v40 = vmul.f32 0.03125, %v1560_v13  ;;  %v1583_v23 = vmul.f32 %v6242_v37, %v6242_v37 }
 0xc36   :  { %v6248_v15 = vsub.f32 %v6217_v60, %v1572_v40  ;;  %v1591_v19 = vsel %vm383_vm6, %v1583_v23, 0.0 }
 0xc37   :  { %v1563_v45 = vpop.xlane.xlu0 %1562  ;;  %1592 = vadd.xlane.f32.xlu0 %v1591_v19 }
 0xc38   :  { %v1573_v20 = vmul.f32 0.03125, %v1563_v45  ;;  %v1584_v49 = vmul.f32 %v6248_v15, %v6248_v15 }
 0xc3a   :  { %v1579_v50 = vsub.f32 %v6222_v1, %v1573_v20  ;;  %v1594_v17 = vsel %vm383_vm6, %v1584_v49, 0.0  ;;  %v5119_v20 = vld [vmem:[%s7092_s16 + $0x8] sm:$0xff]   ;;  %v5120_v49 = vld [vmem:[%s7092_s16] sm:$0xff]  }
 0xc3b   :  { %1595 = vadd.xlane.f32.xlu1 %v1594_v17  ;;  %v1566_v51 = vpop.xlane.xlu1 %1565 }
 0xc3c   :  { %v1574_v52 = vmul.f32 0.03125, %v1566_v51  ;;  %v1585_v7 = vmul.f32 %v1579_v50, %v1579_v50 }
 0xc3e   :  { %v1580_v53 = vsub.f32 %v6227_v3, %v1574_v52  ;;  %v1597_v54 = vsel %vm383_vm6, %v1585_v7, 0.0 }
 0xc3f   :  { %1598 = vadd.xlane.f32.xlu0 %v1597_v54  ;;  %v1569_v55 = vpop.xlane.xlu0 %1568 }
 0xc40   :  { %v1575_v56 = vmul.f32 0.03125, %v1569_v55  ;;  %v1586_v57 = vmul.f32 %v1580_v53, %v1580_v53 }
 0xc42   :  { %v1581_v58 = vsub.f32 %v6232_v5, %v1575_v56  ;;  %v1600_v59 = vsel %vm383_vm6, %v1586_v57, 0.0 }
 0xc43   :  { %1601 = vadd.xlane.f32.xlu1 %v1600_v59 }
 0xc44   :  { %v1587_v14 = vmul.f32 %v1581_v58, %v1581_v58 }
 0xc46   :  { %v1603_v12 = vsel %vm383_vm6, %v1587_v14, 0.0 }
 0xc47   :  { %1604 = vadd.xlane.f32.xlu0 %v1603_v12 }
 0xcbc   :  { %v1590_v24 = vpop.xlane.xlu1 %1589 }
 0xcbd   :  { %v1606_v25 = vmul.f32 0.03125, %v1590_v24 }
 0xcbf   :  { %v1612_v27 = vadd.f32 1e-06, %v1606_v25 }
 0xcc0   :  { %v1593_v30 = vpop.xlane.xlu0 %1592 }
 0xcc1   :  { %v1607_v39 = vmul.f32 0.03125, %v1593_v30  ;;  %5199 = vrsqrt.f32 %v1612_v27 }
 0xcc3   :  { %v1613_v41 = vadd.f32 1e-06, %v1607_v39 }
 0xcc4   :  { %v1596_v31 = vpop.xlane.xlu1 %1595 }
 0xcc5   :  { %5201 = vrsqrt.f32 %v1613_v41  ;;  %v1608_v43 = vmul.f32 0.03125, %v1596_v31 }
 0xcc7   :  { %v1614_v38 = vadd.f32 1e-06, %v1608_v43 }
 0xcc8   :  { %v1599_v47 = vpop.xlane.xlu0 %1598 }
 0xcc9   :  { %v1609_v62 = vmul.f32 0.03125, %v1599_v47  ;;  %5203 = vrsqrt.f32 %v1614_v38 }
 0xccb   :  { %v1615_v63 = vadd.f32 1e-06, %v1609_v62 }
 0xccc   :  { %v1602_v35 = vpop.xlane.xlu1 %1601 }
 0xccd   :  { %5205 = vrsqrt.f32 %v1615_v63  ;;  %v1610_v36 = vmul.f32 0.03125, %v1602_v35 }
 0xcce   :  { %v5200_v29 = vpop.eup %5199 }
 0xccf   :  { %v1616_v34 = vadd.f32 1e-06, %v1610_v36  ;;  %v1624_v11 = vmul.f32 %v5200_v29, %v6237_v33 }
 0xcd0   :  { %v1605_v42 = vpop.xlane.xlu0 %1604 }
 0xcd1   :  { %v1611_v4 = vmul.f32 0.03125, %v1605_v42  ;;  %5207 = vrsqrt.f32 %v1616_v34 }
 0xcd2   :  { %v5202_v48 = vpop.eup %5201 }
 0xcd3   :  { %v1625_v10 = vmul.f32 %v5202_v48, %v6242_v37  ;;  %v1617_v16 = vadd.f32 1e-06, %v1611_v4 }
 0xcd5   :  { %5209 = vrsqrt.f32 %v1617_v16  ;;  %v1630_v26 = vpack.c.bf16 %v1625_v10, %v1624_v11  ;;  %v4185_v10 = vld [vmem:[#allocation10] ss:$0 sm:$0xff] }
 0xcd6   :  { %v5204_v9 = vpop.eup %5203 }
 0xcd7   :  { %4737 = vmatmul.mubr.msk.bf16.vlgmr.msra.gmra.mxu0 %vm383_vm6, %v1630_v26  ;;  %v1626_v46 = vmul.f32 %v5204_v9, %v6248_v15  ;;  %v5118_v15 = vld [vmem:[%s7092_s16 + $0x10] sm:$0xff]  }
 0xcd8   :  { %4740 = vmatprep.mubr.msk.bf16.mxu0 %vm5546_vm8, %v5545_v61  ;;  %4751 = vmatpush3.bf16.msra.mxu1 %v5118_v15 }
 0xcd9   :  { %4752 = vmatprep.subr.bf16.mxu1 %v5545_v61 }
 0xcda   :  { %v5206_v32 = vpop.eup %5205 }
 0xcdb   :  { %v1627_v13 = vmul.f32 %v5206_v32, %v1579_v50  ;;  %v4179_v50 = vld [vmem:[#allocation9] ss:$0 sm:$0xff] }
 0xcdc   :  { %4753 = vmatpush3.bf16.msra.mxu1 %v5119_v20 }
 0xcdd   :  { %v1631_v40 = vpack.c.bf16 %v1627_v13, %v1626_v46  ;;  %4754 = vmatprep.subr.bf16.mxu1 %v5545_v61 }
 0xcde   :  { %v5208_v33 = vpop.eup %5207 }
 0xcdf   :  { %4741 = vmatmul.mubr.msk.bf16.gmra.mxu0 %vm383_vm6, %v1631_v40  ;;  %v1628_v23 = vmul.f32 %v5208_v33, %v1580_v53 }
 0xce0   :  { %4744 = vmatprep.mubr.msk.bf16.mxu0 %vm5546_vm8, %v5545_v61  ;;  %4755 = vmatpush3.bf16.msra.mxu1 %v5120_v49 }
 0xce1   :  { %4786 = vmatprep.subr.bf16.mxu1 %v5545_v61 }
 0xce2   :  { %v5210_v37 = vpop.eup %5209 }
 0xce3   :  { %v1629_v19 = vmul.f32 %v5210_v37, %v1581_v58 }
 0xce5   :  { %v1632_v45 = vpack.c.bf16 %v1629_v19, %v1628_v23 }
 0xce7   :  { %4745 = vmatmul.mubr.msk.bf16.gmra.mxu0 %vm383_vm6, %v1632_v45 }
 0xce8   :  { %4774 = vmatprep.mubr.msk.bf16.mxu0 %vm5546_vm8, %v5545_v61 }
 0xd97   :  { %v1699_v17 = vpop.f32.mrf.mxu0 }
 0xd98   :  { %v1700_v52 = vadd.f32 %v4179_v50, %v1699_v17 }
 0xd99   :  { %v4738_v51 = vpop.f32.mrf.mxu0 }
 0xd9a   :  { %v1722_v55 = vmax.f32 %v1700_v52, 0.0  ;;  %v341_v52 = vld [vmem:[%s7082_s6] sm:$0xff] }
 0xd9b   :  { %v1702_v7 = vpop.f32.mrf.mxu0  ;;  %vm347_vm12 = vcmp.gt.f32.partialorder %v341_v52, 0.0 }
 0xd9c   :  { %v1703_v53 = vadd.f32 %v4179_v50, %v1702_v7 }
 0xd9d   :  { %v4739_v54 = vpop.f32.mrf.mxu0 }
 0xd9e   :  { %v1723_v56 = vmax.f32 %v1703_v53, 0.0  ;;  %v342_v53 = vld [vmem:[%s7082_s6 + $0x8] sm:$0xff]  ;;  %v5547_v54 = vmov -1e+30  }
 0xd9f   :  { %v1707_v57 = vpop.f32.mrf.mxu0  ;;  %vm348_vm14 = vcmp.gt.f32.partialorder %v342_v53, 0.0 }
 0xda0   :  { %v1728_v58 = vpack.c.bf16 %v1723_v56, %v1722_v55  ;;  %v1708_v14 = vadd.f32 %v4179_v50, %v1707_v57 }
 0xda1   :  { %v4742_v59 = vpop.f32.mrf.mxu0 }
 0xda2   :  { %4757 = vmatmul.mubr.msk.bf16.vlgmr.msra.gmra.mxu1 %vm1770_vm9, %v1728_v58  ;;  %v1724_v22 = vmax.f32 %v1708_v14, 0.0  ;;  %v344_v58 = vld [vmem:[%s7082_s6 + $0x18] sm:$0xff] }
 0xda3   :  { %v1710_v12 = vpop.f32.mrf.mxu0  ;;  %4760 = vmatprep.mubr.msk.bf16.mxu1 %vm5546_vm8, %v5545_v61  ;;  %vm350_vm2 = vcmp.gt.f32.partialorder %v344_v58, 0.0 }
 0xda4   :  { %v1711_v18 = vadd.f32 %v4179_v50, %v1710_v12 }
 0xda5   :  { %v4743_v21 = vpop.f32.mrf.mxu0 }
 0xda6   :  { %v1725_v24 = vmax.f32 %v1711_v18, 0.0 }
 0xda7   :  { %v1715_v25 = vpop.f32.mrf.mxu0 }
 0xda8   :  { %v1729_v27 = vpack.c.bf16 %v1725_v24, %v1724_v22  ;;  %v1716_v39 = vadd.f32 %v4179_v50, %v1715_v25  ;;  %v345_v22 = vld [vmem:[%s7082_s6 + $0x20] sm:$0xff] }
 0xda9   :  { %v4746_v30 = vpop.f32.mrf.mxu0  ;;  %vm351_vm4 = vcmp.gt.f32.partialorder %v345_v22, 0.0 }
 0xdaa   :  { %4761 = vmatmul.mubr.msk.bf16.gmra.mxu1 %vm1770_vm9, %v1729_v27  ;;  %v1726_v38 = vmax.f32 %v1716_v39, 0.0 }
 0xdab   :  { %v1718_v41 = vpop.f32.mrf.mxu0  ;;  %4764 = vmatprep.mubr.msk.bf16.mxu1 %vm5546_vm8, %v5545_v61 }
 0xdac   :  { %v1719_v31 = vadd.f32 %v4179_v50, %v1718_v41  ;;  %v346_v41 = vld [vmem:[%s7082_s6 + $0x28] sm:$0xff] }
 0xdad   :  { %v4747_v43 = vpop.f32.mrf.mxu0 }
 0xdae   :  { %v1727_v47 = vmax.f32 %v1719_v31, 0.0 }
 0xdb0   :  { %v1730_v62 = vpack.c.bf16 %v1727_v47, %v1726_v38 }
 0xdb2   :  { %4765 = vmatmul.mubr.msk.bf16.gmra.mxu1 %vm1770_vm9, %v1730_v62 }
 0xdb3   :  { %4792 = vmatprep.mubr.msk.bf16.mxu1 %vm5546_vm8, %v5545_v61 }
 0xe62   :  { %v1814_v63 = vpop.f32.mrf.mxu1 }
 0xe63   :  { %v1815_v15 = vadd.f32 %v4185_v10, %v1814_v63 }
 0xe64   :  { %v4758_v35 = vpop.f32.mrf.mxu1 }
 0xe66   :  { %v1817_v36 = vpop.f32.mrf.mxu1 }
 0xe67   :  { %v1818_v23 = vadd.f32 %v4185_v10, %v1817_v36 }
 0xe68   :  { %v4759_v34 = vpop.f32.mrf.mxu1 }
 0xe6a   :  { %v1822_v29 = vpop.f32.mrf.mxu1 }
 0xe6b   :  { %v1823_v40 = vadd.f32 %v4185_v10, %v1822_v29 }
 0xe6c   :  { %v4762_v42 = vpop.f32.mrf.mxu1 }
 0xe6d   :  { %v1839_v20 = vadd.f32 %v1823_v40, %v6217_v60 }
 0xe6e   :  { %v1825_v4 = vpop.f32.mrf.mxu1 }
 0xe6f   :  { %v1826_v32 = vadd.f32 %v4185_v10, %v1825_v4 }
 0xe70   :  { %v4763_v48 = vpop.f32.mrf.mxu1 }
 0xe71   :  { %v1840_v19 = vadd.f32 %v1826_v32, %v6222_v1  ;;  %v1837_v1 = vadd.f32 %v1815_v15, %v6207_v28  ;;  %v339_v28 = vld [vmem:[%s7114_s3] sm:$0x1] }
 0xe72   :  { %v1830_v11 = vpop.f32.mrf.mxu1  ;;  %vm340_vm10 = vcmp.ne.s32.totalorder %v339_v28, 0 }
 0xe73   :  { %v1831_v26 = vadd.f32 %v4185_v10, %v1830_v11  ;;  %v6310_v50 = vpack.c.bf16 %v1840_v19, %v1839_v20  ;;  %v353_v17 = vsel %vm340_vm10, 1, %v5543_v0  ;;  %v343_v0 = vld [vmem:[%s7082_s6 + $0x10] sm:$0xff]  ;;  %vm352_vm10 = vcmp.gt.f32.partialorder %v346_v41, 0.0 }
 0xe74   :  { %v4766_v16 = vpop.f32.mrf.mxu1  ;;  %v357_v51 = vrot.slane %v353_v17, %v5946_v2  ;;  %vm349_vm0 = vcmp.gt.f32.partialorder %v343_v0, 0.0 }
 0xe75   :  { %v1841_v33 = vadd.f32 %v1831_v26, %v6227_v3  ;;  %v1838_v3 = vadd.f32 %v1818_v23, %v6212_v44 }
 0xe76   :  { %v1833_v9 = vpop.f32.mrf.mxu1  ;;  %vm6346_vm11 = vcmp.eq.s32.totalorder %v357_v51, 1 }
 0xe77   :  { %v1834_v46 = vadd.f32 %v4185_v10, %v1833_v9  ;;  %v6316_v60 = vpack.c.bf16 %v1838_v3, %v1837_v1  ;;  %vm359_vm13 = vmand %vm347_vm12, %vm6346_vm11 }
 0xe78   :  { %v4767_v13 = vpop.f32.mrf.mxu1  ;;  %v6358_v55 = vsel %vm359_vm13, 0.0, %v5547_v54  ;;  %vm360_vm15 = vmand %vm348_vm14, %vm6346_vm11 }
 0xe79   :  { %v1842_v37 = vadd.f32 %v1834_v46, %v6232_v5  ;;  %v1850_v5 = vsel %vm383_vm6, %v6310_v50, 0  ;;  %v1847_v44 = vsel %vm383_vm6, %v6316_v60, 0  ;;  %v6366_v14 = vsel %vm360_vm15, 0.0, %v5547_v54  ;;  %vm361_vm1 = vmand %vm349_vm0, %vm6346_vm11 }
 0xe7a   :  { %v6375_v25 = vsel %vm361_vm1, 0.0, %v5547_v54  ;;  %vm362_vm3 = vmand %vm350_vm2, %vm6346_vm11 }
 0xe7b   :  { %v6302_v45 = vpack.c.bf16 %v1842_v37, %v1841_v33  ;;  %v6384_v43 = vsel %vm362_vm3, 0.0, %v5547_v54  ;;  %vm363_vm5 = vmand %vm351_vm4, %vm6346_vm11 }
 0xe7c   :  { %v6390_v35 = vsel %vm363_vm5, 0.0, %v5547_v54  ;;  %vm364_vm12 = vmand %vm352_vm10, %vm6346_vm11 }
 0xe7d   :  { %4787 = vmatpush3.bf16.msra.mxu1 %v6302_v45  ;;  %v1853_v49 = vsel %vm383_vm6, %v6302_v45, 0  ;;  %v6396_v4 = vsel %vm364_vm12, 0.0, %v5547_v54 }
 0xe7e   :  { %4769 = vmatpush3.bf16.xpose.msra.mxu0 %v1853_v49  ;;  %4788 = vmatprep.subr.bf16.mxu1 %v5545_v61 }
 0xe7f   :  { %4770 = vmatprep.subr.bf16.mxu0 %v5545_v61 }
 0xe81   :  { %4789 = vmatpush3.bf16.msra.mxu1 %v6310_v50 }
 0xe82   :  { %4790 = vmatprep.subr.bf16.mxu1 %v5545_v61 }
 0xe85   :  { %4791 = vmatpush3.bf16.msra.mxu1 %v6316_v60 }
 0xe86   :  { %4771 = vmatpush3.bf16.xpose.msra.mxu0 %v1850_v5  ;;  %4820 = vmatprep.subr.bf16.mxu1 %v5545_v61 }
 0xe87   :  { %4772 = vmatprep.subr.bf16.mxu0 %v5545_v61 }
 0xe8e   :  { %4773 = vmatpush3.bf16.xpose.msra.mxu0 %v1847_v44 }
 0xe8f   :  { %4804 = vmatprep.subr.bf16.mxu0 %v5545_v61 }
 0xe95   :  { %4775 = vmatmul.mubr.msk.bf16.vlgmr.msra.gmra.mxu0 %vm383_vm6, %v6316_v60 }
 0xe96   :  { %4778 = vmatprep.mubr.msk.bf16.mxu0 %vm5546_vm8, %v5545_v61 }
 0xe9d   :  { %4779 = vmatmul.mubr.msk.bf16.gmra.mxu0 %vm383_vm6, %v6310_v50 }
 0xe9e   :  { %4782 = vmatprep.mubr.msk.bf16.mxu0 %vm5546_vm8, %v5545_v61 }
 0xea5   :  { %4783 = vmatmul.mubr.msk.bf16.gmra.mxu0 %vm383_vm6, %v6302_v45 }
 0xea6   :  { %4808 = vmatprep.mubr.msk.bf16.mxu0 %vm5546_vm8, %v5545_v61 }
 0xf55   :  { %v1889_v56 = vpop.f32.mrf.mxu0 }
 0xf56   :  { %v1890_v57 = vadd.f32 %v1889_v56, %v6358_v55 }
 0xf57   :  { %v4776_v59 = vpop.f32.mrf.mxu0 }
 0xf58   :  { %v1912_v12 = vsel %vm463_vm7, %v1890_v57, -inf }
 0xf59   :  { %1913 = vmax.xlane.f32.xlu1 %v1912_v12  ;;  %v1892_v18 = vpop.f32.mrf.mxu0 }
 0xf5a   :  { %v1893_v21 = vadd.f32 %v1892_v18, %v6366_v14 }
 0xf5b   :  { %v4777_v24 = vpop.f32.mrf.mxu0 }
 0xf5c   :  { %v1915_v27 = vsel %vm463_vm7, %v1893_v21, -inf }
 0xf5d   :  { %1916 = vmax.xlane.f32.xlu0 %v1915_v27  ;;  %v1897_v30 = vpop.f32.mrf.mxu0 }
 0xf5e   :  { %v1898_v39 = vadd.f32 %v1897_v30, %v6375_v25 }
 0xf5f   :  { %v4780_v31 = vpop.f32.mrf.mxu0 }
 0xf60   :  { %v1918_v38 = vsel %vm463_vm7, %v1898_v39, -inf }
 0xf61   :  { %1919 = vmax.xlane.f32.xlu1 %v1918_v38  ;;  %v1900_v47 = vpop.f32.mrf.mxu0 }
 0xf62   :  { %v1901_v62 = vadd.f32 %v1900_v47, %v6384_v43 }
 0xf63   :  { %v4781_v63 = vpop.f32.mrf.mxu0 }
 0xf64   :  { %v1921_v36 = vsel %vm463_vm7, %v1901_v62, -inf  ;;  %v5121_v63 = vld [vmem:[%s7083_s7 + $0x18] sm:$0xff]  }
 0xf65   :  { %1922 = vmax.xlane.f32.xlu0 %v1921_v36  ;;  %v1905_v34 = vpop.f32.mrf.mxu0 }
 0xf66   :  { %v1906_v29 = vadd.f32 %v1905_v34, %v6390_v35 }
 0xf67   :  { %v4784_v42 = vpop.f32.mrf.mxu0 }
 0xf68   :  { %v1924_v48 = vsel %vm463_vm7, %v1906_v29, -inf }
 0xf69   :  { %1925 = vmax.xlane.f32.xlu1 %v1924_v48  ;;  %v1908_v11 = vpop.f32.mrf.mxu0 }
 0xf6a   :  { %v1909_v10 = vadd.f32 %v1908_v11, %v6396_v4 }
 0xf6b   :  { %v4785_v16 = vpop.f32.mrf.mxu0 }
 0xf6c   :  { %v1927_v26 = vsel %vm463_vm7, %v1909_v10, -inf }
 0xf6d   :  { %1928 = vmax.xlane.f32.xlu0 %v1927_v26 }
 0xfe2   :  { %v1914_v9 = vpop.xlane.xlu1 %1913 }
 0xfe3   :  { %v1930_v32 = vsub.f32 %v1890_v57, %v1914_v9 }
 0xfe5   :  { %v1936_v46 = vmul.f32 1.442695, %v1930_v32 }
 0xfe6   :  { %v1917_v13 = vpop.xlane.xlu0 %1916 }
 0xfe7   :  { %5211 = vpow2.f32 %v1936_v46  ;;  %v1931_v40 = vsub.f32 %v1893_v21, %v1917_v13  ;;  %v5123_v21 = vld [vmem:[#allocation2 + $0x18] sm:$0xff]   ;;  %v6437_v13 = vld [vmem:[%s7112_s0] sm:$0xff] }
 0xfe8   :  { %4805 = vmatpush3.bf16.msra.mxu0 %v5123_v21 }
 0xfe9   :  { %v1938_v33 = vmul.f32 1.442695, %v1931_v40  ;;  %4806 = vmatprep.subr.bf16.mxu0 %v5545_v61 }
 0xfea   :  { %v1920_v37 = vpop.xlane.xlu1 %1919 }
 0xfeb   :  { %5213 = vpow2.f32 %v1938_v33  ;;  %v1932_v23 = vsub.f32 %v1898_v39, %v1920_v37 }
 0xfed   :  { %v1940_v19 = vmul.f32 1.442695, %v1932_v23 }
 0xfee   :  { %v1923_v15 = vpop.xlane.xlu0 %1922 }
 0xfef   :  { %5215 = vpow2.f32 %v1940_v19  ;;  %v1933_v20 = vsub.f32 %v1901_v62, %v1923_v15 }
 0xff1   :  { %v1942_v49 = vmul.f32 1.442695, %v1933_v20 }
 0xff2   :  { %v1926_v3 = vpop.xlane.xlu1 %1925 }
 0xff3   :  { %5217 = vpow2.f32 %v1942_v49  ;;  %v1934_v1 = vsub.f32 %v1906_v29, %v1926_v3  ;;  %v5122_v29 = vld [vmem:[%s7083_s7 + $0x10] sm:$0xff]  }
 0xff4   :  { %v5212_v5 = vpop.eup %5211 }
 0xff5   :  { %v1944_v44 = vmul.f32 1.442695, %v1934_v1  ;;  %v1948_v28 = vsel %vm463_vm7, %v5212_v5, 0.0 }
 0xff6   :  { %1949 = vadd.xlane.f32.xlu1 %v1948_v28  ;;  %v1929_v17 = vpop.xlane.xlu0 %1928 }
 0xff7   :  { %5219 = vpow2.f32 %v1944_v44  ;;  %v1935_v51 = vsub.f32 %v1909_v10, %v1929_v17 }
 0xff8   :  { %v5214_v52 = vpop.eup %5213 }
 0xff9   :  { %v1946_v7 = vmul.f32 1.442695, %v1935_v51  ;;  %v1951_v53 = vsel %vm463_vm7, %v5214_v52, 0.0  ;;  %v6451_v51 = vld [vmem:[%s7111_s19] sm:$0xff] }
 0xffa   :  { %1952 = vadd.xlane.f32.xlu0 %v1951_v53 }
 0xffb   :  { %5221 = vpow2.f32 %v1946_v7 }
 0xffc   :  { %v5216_v0 = vpop.eup %5215 }
 0xffd   :  { %v1954_v54 = vsel %vm463_vm7, %v5216_v0, 0.0 }
 0xffe   :  { %1955 = vadd.xlane.f32.xlu1 %v1954_v54 }
0x1000   :  { %v5218_v56 = vpop.eup %5217 }
0x1001   :  { %v1957_v57 = vsel %vm463_vm7, %v5218_v56, 0.0 }
0x1002   :  { %1958 = vadd.xlane.f32.xlu0 %v1957_v57 }
0x1004   :  { %v5220_v58 = vpop.eup %5219 }
0x1005   :  { %v1960_v59 = vsel %vm463_vm7, %v5220_v58, 0.0 }
0x1006   :  { %1961 = vadd.xlane.f32.xlu1 %v1960_v59 }
0x1008   :  { %v5222_v12 = vpop.eup %5221 }
0x1009   :  { %v1963_v18 = vsel %vm463_vm7, %v5222_v12, 0.0 }
0x100a   :  { %1964 = vadd.xlane.f32.xlu0 %v1963_v18 }
0x107f   :  { %v1950_v22 = vpop.xlane.xlu1 %1949 }
0x1080   :  { %5223 = vrcp.f32 %v1950_v22 }
0x1083   :  { %v1953_v24 = vpop.xlane.xlu0 %1952 }
0x1084   :  { %5225 = vrcp.f32 %v1953_v24 }
0x1087   :  { %v1956_v27 = vpop.xlane.xlu1 %1955 }
0x1088   :  { %5227 = vrcp.f32 %v1956_v27 }
0x108b   :  { %v1959_v30 = vpop.xlane.xlu0 %1958 }
0x108c   :  { %5229 = vrcp.f32 %v1959_v30 }
0x108d   :  { %v5224_v39 = vpop.eup %5223 }
0x108e   :  { %v1972_v38 = vmul.f32 %v5224_v39, %v5212_v5 }
0x108f   :  { %v1962_v41 = vpop.xlane.xlu1 %1961 }
0x1090   :  { %5231 = vrcp.f32 %v1962_v41 }
0x1091   :  { %v5226_v31 = vpop.eup %5225 }
0x1092   :  { %v1973_v47 = vmul.f32 %v5226_v31, %v5214_v52 }
0x1093   :  { %v1965_v62 = vpop.xlane.xlu0 %1964 }
0x1094   :  { %v1978_v36 = vpack.c.bf16 %v1973_v47, %v1972_v38  ;;  %5233 = vrcp.f32 %v1965_v62 }
0x1095   :  { %v5228_v34 = vpop.eup %5227 }
0x1096   :  { %4793 = vmatmul.mubr.msk.bf16.vlgmr.msra.gmra.mxu1 %vm463_vm7, %v1978_v36  ;;  %v1974_v48 = vmul.f32 %v5228_v34, %v5216_v0  ;;  %v4213_v36 = vld [vmem:[#allocation4 + $0x1] ss:$0 sm:$0xff] }
0x1097   :  { %4796 = vmatprep.mubr.msk.bf16.mxu1 %vm5546_vm8, %v5545_v61  ;;  %4821 = vmatpush3.bf16.msra.mxu1 %v5121_v63 }
0x1098   :  { %4822 = vmatprep.subr.bf16.mxu1 %v5545_v61 }
0x1099   :  { %v5230_v42 = vpop.eup %5229 }
0x109a   :  { %v1975_v11 = vmul.f32 %v5230_v42, %v5218_v56 }
0x109b   :  { %4823 = vmatpush3.bf16.msra.mxu1 %v5122_v29 }
0x109c   :  { %v1979_v10 = vpack.c.bf16 %v1975_v11, %v1974_v48 }
0x109d   :  { %v5232_v16 = vpop.eup %5231 }
0x109e   :  { %4797 = vmatmul.mubr.msk.bf16.gmra.mxu1 %vm463_vm7, %v1979_v10  ;;  %v1976_v9 = vmul.f32 %v5232_v16, %v5220_v58 }
0x109f   :  { %4800 = vmatprep.mubr.msk.bf16.mxu1 %vm5546_vm8, %v5545_v61 }
0x10a1   :  { %v5234_v26 = vpop.eup %5233 }
0x10a2   :  { %v1977_v32 = vmul.f32 %v5234_v26, %v5222_v12 }
0x10a4   :  { %v1980_v46 = vpack.c.bf16 %v1977_v32, %v1976_v9 }
0x10a6   :  { %4801 = vmatmul.mubr.msk.bf16.gmra.mxu1 %vm463_vm7, %v1980_v46 }
0x10a7   :  { %4824 = vmatprep.mubr.msk.bf16.mxu1 %vm5546_vm8, %v5545_v61 }
0x10ae   :  { %4825 = vmatmul.mubr.msk.bf16.vlgmr.msra.gmra.mxu1 %vm383_vm6, %v6316_v60  ;;  %v5124_v60 = vld [vmem:[#allocation2 + $0x10] sm:$0xff]  }
0x10af   :  { %4828 = vmatprep.mubr.msk.bf16.mxu1 %vm5546_vm8, %v5545_v61  ;;  %4807 = vmatpush3.bf16.msra.mxu0 %v5124_v60 }
0x10b6   :  { %4829 = vmatmul.mubr.msk.bf16.gmra.mxu1 %vm383_vm6, %v6310_v50 }
0x10b7   :  { %4832 = vmatprep.mubr.msk.bf16.mxu1 %vm5546_vm8, %v5545_v61 }
0x10be   :  { %4833 = vmatmul.mubr.msk.bf16.gmra.mxu1 %vm383_vm6, %v6302_v45 }
0x10bf   :  { %4869 = vmatprep.mubr.msk.f32.mxu1 %vm463_vm7, %v6437_v13 }
0x1156   :  { %v2024_v40 = vpop.f32.mrf.mxu1 }
0x1158   :  { %v4794_v33 = vpop.f32.mrf.mxu1 }
0x115a   :  { %v2027_v37 = vpop.f32.mrf.mxu1 }
0x115b   :  { %v2052_v50 = vpack.c.bf16 %v2027_v37, %v2024_v40 }
0x115c   :  { %v4795_v23 = vpop.f32.mrf.mxu1 }
0x115d   :  { %4809 = vmatmul.mubr.msk.bf16.vlgmr.msra.gmra.mxu0 %vm383_vm6, %v2052_v50 }
0x115e   :  { %v2032_v19 = vpop.f32.mrf.mxu1  ;;  %4812 = vmatprep.mubr.msk.bf16.mxu0 %vm5546_vm8, %v5545_v61 }
0x1160   :  { %v4798_v45 = vpop.f32.mrf.mxu1 }
0x1162   :  { %v2035_v15 = vpop.f32.mrf.mxu1 }
0x1163   :  { %v2053_v20 = vpack.c.bf16 %v2035_v15, %v2032_v19 }
0x1164   :  { %v4799_v49 = vpop.f32.mrf.mxu1 }
0x1165   :  { %4813 = vmatmul.mubr.msk.bf16.gmra.mxu0 %vm383_vm6, %v2053_v20 }
0x1166   :  { %v2040_v3 = vpop.f32.mrf.mxu1  ;;  %4816 = vmatprep.mubr.msk.bf16.mxu0 %vm5546_vm8, %v5545_v61 }
0x1168   :  { %v4802_v1 = vpop.f32.mrf.mxu1 }
0x116a   :  { %v2043_v5 = vpop.f32.mrf.mxu1 }
0x116b   :  { %v2054_v44 = vpack.c.bf16 %v2043_v5, %v2040_v3 }
0x116c   :  { %v4803_v28 = vpop.f32.mrf.mxu1 }
0x116d   :  { %4817 = vmatmul.mubr.msk.bf16.gmra.mxu0 %vm383_vm6, %v2054_v44 }
0x116e   :  { %v2184_v17 = vpop.f32.mrf.mxu1  ;;  %4848 = vmatprep.mubr.msk.f32.mxu0 %vm463_vm7, %v6451_v51 }
0x1170   :  { %v4826_v52 = vpop.f32.mrf.mxu1 }
0x1172   :  { %v2187_v7 = vpop.f32.mrf.mxu1 }
0x1174   :  { %v4827_v53 = vpop.f32.mrf.mxu1 }
0x1176   :  { %v2192_v0 = vpop.f32.mrf.mxu1 }
0x1178   :  { %v4830_v54 = vpop.f32.mrf.mxu1 }
0x117a   :  { %v2195_v56 = vpop.f32.mrf.mxu1 }
0x117c   :  { %v4831_v57 = vpop.f32.mrf.mxu1 }
0x117e   :  { %v2200_v58 = vpop.f32.mrf.mxu1 }
0x1180   :  { %v4834_v59 = vpop.f32.mrf.mxu1 }
0x1182   :  { %v2203_v12 = vpop.f32.mrf.mxu1 }
0x1184   :  { %v4835_v18 = vpop.f32.mrf.mxu1 }
0x121d   :  { %v2115_v21 = vpop.f32.mrf.mxu0 }
0x121e   :  { %v2185_v29 = vadd.f32 %v2184_v17, %v2115_v21 }
0x121f   :  { %v4810_v22 = vpop.f32.mrf.mxu0 }
0x1220   :  { %v2215_v32 = vadd.f32 %v4213_v36, %v2185_v29 }
0x1221   :  { %v2118_v24 = vpop.f32.mrf.mxu0 }
0x1222   :  { %v2188_v46 = vadd.f32 %v2187_v7, %v2118_v24  ;;  %v2221_v37 = vsel %vm383_vm6, %v2215_v32, 0.0 }
0x1223   :  { %v4811_v27 = vpop.f32.mrf.mxu0 }
0x1224   :  { %v2216_v23 = vadd.f32 %v4213_v36, %v2188_v46 }
0x1225   :  { %v2123_v30 = vpop.f32.mrf.mxu0 }
0x1226   :  { %v2193_v47 = vadd.f32 %v2192_v0, %v2123_v30  ;;  %v2224_v19 = vsel %vm383_vm6, %v2216_v23, 0.0 }
0x1227   :  { %v4814_v39 = vpop.f32.mrf.mxu0 }
0x1228   :  { %v2217_v16 = vadd.f32 %v4213_v36, %v2193_v47 }
0x1229   :  { %v2126_v41 = vpop.f32.mrf.mxu0 }
0x122a   :  { %v2196_v48 = vadd.f32 %v2195_v56, %v2126_v41  ;;  %v2227_v60 = vsel %vm383_vm6, %v2217_v16, 0.0 }
0x122b   :  { %v4815_v31 = vpop.f32.mrf.mxu0 }
0x122c   :  { %v2218_v33 = vadd.f32 %v4213_v36, %v2196_v48 }
0x122d   :  { %v2131_v38 = vpop.f32.mrf.mxu0 }
0x122e   :  { %v2201_v62 = vadd.f32 %v2200_v58, %v2131_v38  ;;  %v2230_v50 = vsel %vm383_vm6, %v2218_v33, 0.0 }
0x122f   :  { %v4818_v63 = vpop.f32.mrf.mxu0 }
0x1230   :  { %v2219_v34 = vadd.f32 %v4213_v36, %v2201_v62 }
0x1231   :  { %v2134_v42 = vpop.f32.mrf.mxu0 }
0x1232   :  { %v2204_v11 = vadd.f32 %v2203_v12, %v2134_v42  ;;  %v2233_v10 = vsel %vm383_vm6, %v2219_v34, 0.0 }
0x1233   :  { %v4819_v26 = vpop.f32.mrf.mxu0  ;;  %2234 = vadd.xlane.f32.xlu0 %v2233_v10 }
0x1234   :  { %v2220_v9 = vadd.f32 %v4213_v36, %v2204_v11 }
0x1236   :  { %v2236_v40 = vsel %vm383_vm6, %v2220_v9, 0.0 }
0x1237   :  { %2228 = vadd.xlane.f32.xlu0 %v2227_v60  ;;  %2237 = vadd.xlane.f32.xlu1 %v2236_v40 }
0x123b   :  { %2222 = vadd.xlane.f32.xlu0 %v2221_v37  ;;  %2231 = vadd.xlane.f32.xlu1 %v2230_v50 }
0x123f   :  { %2225 = vadd.xlane.f32.xlu1 %v2224_v19 }
0x12bc   :  { %v2235_v45 = vpop.xlane.xlu0 %2234 }
0x12bd   :  { %v2243_v15 = vmul.f32 0.03125, %v2235_v45 }
0x12bf   :  { %v2249_v20 = vsub.f32 %v2219_v34, %v2243_v15 }
0x12c0   :  { %v2229_v49 = vpop.xlane.xlu0 %2228  ;;  %v2238_v3 = vpop.xlane.xlu1 %2237 }
0x12c1   :  { %v2241_v1 = vmul.f32 0.03125, %v2229_v49  ;;  %v2244_v5 = vmul.f32 0.03125, %v2238_v3  ;;  %v2255_v44 = vmul.f32 %v2249_v20, %v2249_v20 }
0x12c3   :  { %v2247_v28 = vsub.f32 %v2217_v16, %v2241_v1  ;;  %v2250_v17 = vsub.f32 %v2220_v9, %v2244_v5  ;;  %v2269_v52 = vsel %vm383_vm6, %v2255_v44, 0.0 }
0x12c4   :  { %2270 = vadd.xlane.f32.xlu0 %v2269_v52  ;;  %v2223_v7 = vpop.xlane.xlu0 %2222  ;;  %v2232_v53 = vpop.xlane.xlu1 %2231 }
0x12c5   :  { %v2239_v0 = vmul.f32 0.03125, %v2223_v7  ;;  %v2242_v54 = vmul.f32 0.03125, %v2232_v53  ;;  %v2253_v56 = vmul.f32 %v2247_v28, %v2247_v28  ;;  %v2256_v57 = vmul.f32 %v2250_v17, %v2250_v17 }
0x12c7   :  { %v2245_v58 = vsub.f32 %v2215_v32, %v2239_v0  ;;  %v2248_v59 = vsub.f32 %v2218_v33, %v2242_v54  ;;  %v2263_v12 = vsel %vm383_vm6, %v2253_v56, 0.0  ;;  %v2272_v18 = vsel %vm383_vm6, %v2256_v57, 0.0 }
0x12c8   :  { %2264 = vadd.xlane.f32.xlu0 %v2263_v12  ;;  %2273 = vadd.xlane.f32.xlu1 %v2272_v18  ;;  %v2226_v21 = vpop.xlane.xlu1 %2225 }
0x12c9   :  { %v2240_v22 = vmul.f32 0.03125, %v2226_v21  ;;  %v2251_v24 = vmul.f32 %v2245_v58, %v2245_v58  ;;  %v2254_v27 = vmul.f32 %v2248_v59, %v2248_v59 }
0x12cb   :  { %v2246_v30 = vsub.f32 %v2216_v23, %v2240_v22  ;;  %v2257_v39 = vsel %vm383_vm6, %v2251_v24, 0.0  ;;  %v2266_v41 = vsel %vm383_vm6, %v2254_v27, 0.0 }
0x12cc   :  { %2258 = vadd.xlane.f32.xlu0 %v2257_v39  ;;  %2267 = vadd.xlane.f32.xlu1 %v2266_v41 }
0x12cd   :  { %v2252_v31 = vmul.f32 %v2246_v30, %v2246_v30 }
0x12cf   :  { %v2260_v38 = vsel %vm383_vm6, %v2252_v31, 0.0 }
0x12d0   :  { %2261 = vadd.xlane.f32.xlu1 %v2260_v38 }
0x134d   :  { %v2271_v47 = vpop.xlane.xlu0 %2270 }
0x134e   :  { %v2279_v62 = vmul.f32 0.03125, %v2271_v47 }
0x1350   :  { %v2285_v63 = vadd.f32 1e-06, %v2279_v62 }
0x1351   :  { %v2265_v36 = vpop.xlane.xlu0 %2264  ;;  %v2274_v34 = vpop.xlane.xlu1 %2273 }
0x1352   :  { %5235 = vrsqrt.f32 %v2285_v63  ;;  %v2277_v29 = vmul.f32 0.03125, %v2265_v36  ;;  %v2280_v42 = vmul.f32 0.03125, %v2274_v34 }
0x1354   :  { %v2283_v48 = vadd.f32 1e-06, %v2277_v29  ;;  %v2286_v11 = vadd.f32 1e-06, %v2280_v42 }
0x1355   :  { %v2259_v10 = vpop.xlane.xlu0 %2258  ;;  %v2268_v16 = vpop.xlane.xlu1 %2267 }
0x1356   :  { %5237 = vrsqrt.f32 %v2283_v48  ;;  %v2275_v26 = vmul.f32 0.03125, %v2259_v10  ;;  %v2278_v9 = vmul.f32 0.03125, %v2268_v16 }
0x1357   :  { %5239 = vrsqrt.f32 %v2286_v11 }
0x1358   :  { %v2281_v32 = vadd.f32 1e-06, %v2275_v26  ;;  %v2284_v46 = vadd.f32 1e-06, %v2278_v9 }
0x1359   :  { %v2262_v60 = vpop.xlane.xlu1 %2261 }
0x135a   :  { %5241 = vrsqrt.f32 %v2281_v32  ;;  %v2276_v40 = vmul.f32 0.03125, %v2262_v60 }
0x135b   :  { %5243 = vrsqrt.f32 %v2284_v46 }
0x135c   :  { %v2282_v33 = vadd.f32 1e-06, %v2276_v40 }
0x135e   :  { %5245 = vrsqrt.f32 %v2282_v33 }
0x135f   :  { %v5236_v37 = vpop.eup %5235 }
0x1360   :  { %v6467_v50 = vmul.f32 %v5236_v37, %v2249_v20 }
0x1362   :  { %v2311_v23 = vsel %vm383_vm6, %v6467_v50, 0.0 }
0x1363   :  { %v5238_v19 = vpop.eup %5237  ;;  %2312 = vadd.xlane.f32.xlu0 %v2311_v23 }
0x1364   :  { %v5240_v45 = vpop.eup %5239  ;;  %v6471_v15 = vmul.f32 %v5238_v19, %v2247_v28 }
0x1365   :  { %v6473_v49 = vmul.f32 %v5240_v45, %v2250_v17 }
0x1366   :  { %v2305_v3 = vsel %vm383_vm6, %v6471_v15, 0.0 }
0x1367   :  { %v5242_v1 = vpop.eup %5241  ;;  %2306 = vadd.xlane.f32.xlu0 %v2305_v3  ;;  %v2314_v5 = vsel %vm383_vm6, %v6473_v49, 0.0 }
0x1368   :  { %v5244_v20 = vpop.eup %5243  ;;  %2315 = vadd.xlane.f32.xlu1 %v2314_v5  ;;  %v6479_v44 = vmul.f32 %v5242_v1, %v2245_v58 }
0x1369   :  { %v6481_v52 = vmul.f32 %v5244_v20, %v2248_v59 }
0x136a   :  { %v2299_v28 = vsel %vm383_vm6, %v6479_v44, 0.0 }
0x136b   :  { %v5246_v7 = vpop.eup %5245  ;;  %2300 = vadd.xlane.f32.xlu0 %v2299_v28  ;;  %v2308_v17 = vsel %vm383_vm6, %v6481_v52, 0.0 }
0x136c   :  { %2309 = vadd.xlane.f32.xlu1 %v2308_v17  ;;  %v6487_v53 = vmul.f32 %v5246_v7, %v2246_v30 }
0x136e   :  { %v2302_v0 = vsel %vm383_vm6, %v6487_v53, 0.0 }
0x1370   :  { %2303 = vadd.xlane.f32.xlu1 %v2302_v0 }
0x13ec   :  { %v2313_v54 = vpop.xlane.xlu0 %2312 }
0x13ed   :  { %v2321_v56 = vmul.f32 0.03125, %v2313_v54 }
0x13ef   :  { %v6492_v57 = vsub.f32 %v6467_v50, %v2321_v56 }
0x13f0   :  { %v2307_v58 = vpop.xlane.xlu0 %2306 }
0x13f1   :  { %v2319_v59 = vmul.f32 0.03125, %v2307_v58  ;;  %v2316_v12 = vpop.xlane.xlu1 %2315  ;;  %v2333_v18 = vmul.f32 %v6492_v57, %v6492_v57 }
0x13f2   :  { %v2322_v21 = vmul.f32 0.03125, %v2316_v12 }
0x13f3   :  { %v6497_v22 = vsub.f32 %v6471_v15, %v2319_v59  ;;  %v2347_v24 = vsel %vm383_vm6, %v2333_v18, 0.0 }
0x13f4   :  { %v2328_v27 = vsub.f32 %v6473_v49, %v2322_v21  ;;  %2348 = vadd.xlane.f32.xlu0 %v2347_v24  ;;  %v2301_v30 = vpop.xlane.xlu0 %2300 }
0x13f5   :  { %v2317_v39 = vmul.f32 0.03125, %v2301_v30  ;;  %v2310_v41 = vpop.xlane.xlu1 %2309  ;;  %v2331_v31 = vmul.f32 %v6497_v22, %v6497_v22 }
0x13f6   :  { %v2320_v38 = vmul.f32 0.03125, %v2310_v41  ;;  %v2334_v47 = vmul.f32 %v2328_v27, %v2328_v27 }
0x13f7   :  { %v6504_v62 = vsub.f32 %v6479_v44, %v2317_v39  ;;  %v2341_v63 = vsel %vm383_vm6, %v2331_v31, 0.0 }
0x13f8   :  { %v2326_v36 = vsub.f32 %v6481_v52, %v2320_v38  ;;  %2342 = vadd.xlane.f32.xlu0 %v2341_v63  ;;  %v2350_v34 = vsel %vm383_vm6, %v2334_v47, 0.0  ;;  %v6552_v38 = vld [vmem:[%s7112_s0 + $0x8] sm:$0xff]  ;;  %v6559_v47 = vld [vmem:[%s7111_s19 + $0x10] sm:$0xff]  ;;  %v6574_v63 = vld [vmem:[%s7111_s19 + $0x18] sm:$0xff] }
0x13f9   :  { %2351 = vadd.xlane.f32.xlu1 %v2350_v34  ;;  %v2304_v29 = vpop.xlane.xlu1 %2303  ;;  %v2329_v42 = vmul.f32 %v6504_v62, %v6504_v62  ;;  %v6588_v34 = vld [vmem:[%s7111_s19 + $0x20] sm:$0xff] }
0x13fa   :  { %v2318_v48 = vmul.f32 0.03125, %v2304_v29  ;;  %v2332_v11 = vmul.f32 %v2326_v36, %v2326_v36  ;;  %v6595_v29 = vld [vmem:[%s7112_s0 + $0x20] sm:$0xff] }
0x13fb   :  { %v2335_v10 = vsel %vm383_vm6, %v2329_v42, 0.0  ;;  %v6602_v42 = vld [vmem:[%s7111_s19 + $0x28] sm:$0xff] }
0x13fc   :  { %v2324_v16 = vsub.f32 %v6487_v53, %v2318_v48  ;;  %2336 = vadd.xlane.f32.xlu0 %v2335_v10  ;;  %v2344_v26 = vsel %vm383_vm6, %v2332_v11, 0.0  ;;  %v6609_v48 = vld [vmem:[%s7112_s0 + $0x28] sm:$0xff]  ;;  %v5126_v10 = vld [vmem:[%s7088_s12 + $0x20] sm:$0xff]  }
0x13fd   :  { %2345 = vadd.xlane.f32.xlu1 %v2344_v26  ;;  %v5125_v11 = vld [vmem:[%s7088_s12 + $0x28] sm:$0xff]  }
0x13fe   :  { %v2330_v9 = vmul.f32 %v2324_v16, %v2324_v16 }
0x1400   :  { %v2338_v32 = vsel %vm383_vm6, %v2330_v9, 0.0 }
0x1401   :  { %2339 = vadd.xlane.f32.xlu1 %v2338_v32 }
0x147d   :  { %v2349_v46 = vpop.xlane.xlu0 %2348 }
0x147e   :  { %v2357_v60 = vmul.f32 0.03125, %v2349_v46 }
0x1480   :  { %v2363_v33 = vadd.f32 1e-06, %v2357_v60 }
0x1481   :  { %v2343_v40 = vpop.xlane.xlu0 %2342 }
0x1482   :  { %v2355_v37 = vmul.f32 0.03125, %v2343_v40  ;;  %v2352_v23 = vpop.xlane.xlu1 %2351  ;;  %5247 = vrsqrt.f32 %v2363_v33 }
0x1483   :  { %v2358_v19 = vmul.f32 0.03125, %v2352_v23 }
0x1484   :  { %v2361_v1 = vadd.f32 1e-06, %v2355_v37 }
0x1485   :  { %v2364_v45 = vadd.f32 1e-06, %v2358_v19  ;;  %v2337_v3 = vpop.xlane.xlu0 %2336 }
0x1486   :  { %v2353_v5 = vmul.f32 0.03125, %v2337_v3  ;;  %v2346_v20 = vpop.xlane.xlu1 %2345 }
0x1487   :  { %5249 = vrsqrt.f32 %v2364_v45  ;;  %v2356_v28 = vmul.f32 0.03125, %v2346_v20 }
0x1488   :  { %5251 = vrsqrt.f32 %v2361_v1  ;;  %v2359_v17 = vadd.f32 1e-06, %v2353_v5 }
0x1489   :  { %v2362_v7 = vadd.f32 1e-06, %v2356_v28 }
0x148a   :  { %v2340_v0 = vpop.xlane.xlu1 %2339 }
0x148b   :  { %5253 = vrsqrt.f32 %v2362_v7  ;;  %v2354_v54 = vmul.f32 0.03125, %v2340_v0  ;;  %v4227_v0 = vld [vmem:[#allocation6 + $0x2] ss:$0 sm:$0xff] }
0x148c   :  { %5255 = vrsqrt.f32 %v2359_v17 }
0x148d   :  { %v2360_v56 = vadd.f32 1e-06, %v2354_v54 }
0x148f   :  { %5257 = vrsqrt.f32 %v2360_v56  ;;  %v5248_v58 = vpop.eup %5247 }
0x1490   :  { %v6520_v21 = vmul.f32 %v5248_v58, %v6492_v57 }
0x1494   :  { %v5250_v59 = vpop.eup %5249 }
0x1495   :  { %v6515_v12 = vmul.f32 %v5250_v59, %v2328_v27  ;;  %v5252_v18 = vpop.eup %5251 }
0x1496   :  { %v6533_v57 = vmul.f32 %v5252_v18, %v6497_v22  ;;  %v6545_v22 = vld [vmem:[%s7111_s19 + $0x8] sm:$0xff] }
0x1497   :  { %4836 = vmatprep.subr.mxu0 %v6515_v12  ;;  %4857 = vmatprep.subr.mxu1 %v6515_v12 }
0x1498   :  { %v5254_v24 = vpop.eup %5253  ;;  %4837 = vmatpush3.msra.mxu0 %v6515_v12  ;;  %4858 = vmatpush3.msra.mxu1 %v6515_v12 }
0x1499   :  { %4838 = vmatprep.subr.mxu0 %v6520_v21  ;;  %4859 = vmatprep.subr.mxu1 %v6520_v21  ;;  %v6526_v30 = vmul.f32 %v5254_v24, %v2326_v36  ;;  %v5256_v27 = vpop.eup %5255  ;;  %v6581_v36 = vld [vmem:[%s7112_s0 + $0x18] sm:$0xff] }
0x149a   :  { %4839 = vmatpush3.msra.mxu0 %v6520_v21  ;;  %4860 = vmatpush3.msra.mxu1 %v6520_v21  ;;  %v2371_v31 = vmul.f32 %v5256_v27, %v6504_v62  ;;  %v6566_v62 = vld [vmem:[%s7112_s0 + $0x10] sm:$0xff] }
0x149b   :  { %4840 = vmatprep.subr.mxu0 %v6526_v30  ;;  %4861 = vmatprep.subr.mxu1 %v6526_v30 }
0x149c   :  { %v5258_v39 = vpop.eup %5257  ;;  %4841 = vmatpush3.msra.mxu0 %v6526_v30  ;;  %4862 = vmatpush3.msra.mxu1 %v6526_v30 }
0x149d   :  { %4842 = vmatprep.subr.mxu0 %v6533_v57  ;;  %4863 = vmatprep.subr.mxu1 %v6533_v57  ;;  %v2372_v41 = vmul.f32 %v5258_v39, %v2324_v16  ;;  %v4226_v16 = vld [vmem:[%s7086_s10 + $0x8] sm:$0x7] }
0x149e   :  { %4843 = vmatpush3.msra.mxu0 %v6533_v57  ;;  %4864 = vmatpush3.msra.mxu1 %v6533_v57  ;;  %v2598_v26 = vrot.slane %v4226_v16, %v5954_v8  ;;  %v2582_v9 = vrot.slane %v4226_v16, %v5951_v6 }
0x149f   :  { %4844 = vmatprep.subr.mxu0 %v2372_v41  ;;  %4865 = vmatprep.subr.mxu1 %v2372_v41 }
0x14a0   :  { %4845 = vmatpush3.msra.mxu0 %v2372_v41  ;;  %4866 = vmatpush3.msra.mxu1 %v2372_v41  ;;  %v2584_v40 = vmul.f32 %v2582_v9, %v2372_v41  ;;  %v2583_v3 = vmul.f32 %v2582_v9, %v2371_v31  ;;  %v2586_v5 = vmul.f32 %v2582_v9, %v6526_v30 }
0x14a1   :  { %4846 = vmatprep.subr.mxu0 %v2371_v31  ;;  %4867 = vmatprep.subr.mxu1 %v2371_v31  ;;  %v2585_v39 = vmul.f32 %v2582_v9, %v6533_v57 }
0x14a2   :  { %4847 = vmatpush3.msra.mxu0 %v2371_v31  ;;  %4868 = vmatpush3.msra.mxu1 %v2371_v31  ;;  %v2588_v31 = vmul.f32 %v2582_v9, %v6515_v12 }
0x14a3   :  { %4849 = vmatmul.mubr.msk.f32.vlgmr.msra.gmra.mxu0 %vm463_vm7, %v6545_v22  ;;  %4870 = vmatmul.mubr.msk.f32.vlgmr.msra.gmra.mxu1 %vm463_vm7, %v6552_v38 }
0x14a4   :  { %4851 = vmatprep.mubr.msk.f32.mxu0 %vm463_vm7, %v6559_v47  ;;  %4872 = vmatprep.mubr.msk.f32.mxu1 %vm463_vm7, %v6566_v62 }
0x14a5   :  { %4878 = vmatprep.subr.bf16.mxu0 %v5545_v61 }
0x14a6   :  { %4879 = vmatpush3.bf16.msra.mxu0 %v5125_v11 }
0x14a7   :  { %4852 = vmatmul.mubr.msk.f32.gmra.mxu0 %vm463_vm7, %v6574_v63  ;;  %4873 = vmatmul.mubr.msk.f32.gmra.mxu1 %vm463_vm7, %v6581_v36 }
0x14a8   :  { %4854 = vmatprep.mubr.msk.f32.mxu0 %vm463_vm7, %v6588_v34  ;;  %4875 = vmatprep.mubr.msk.f32.mxu1 %vm463_vm7, %v6595_v29 }
0x14a9   :  { %4880 = vmatprep.subr.bf16.mxu0 %v5545_v61 }
0x14aa   :  { %4881 = vmatpush3.bf16.msra.mxu0 %v5126_v10 }
0x14ab   :  { %4855 = vmatmul.mubr.msk.f32.gmra.mxu0 %vm463_vm7, %v6602_v42  ;;  %4876 = vmatmul.mubr.msk.f32.gmra.mxu1 %vm463_vm7, %v6609_v48 }
0x14ac   :  { %4882 = vmatprep.mubr.msk.bf16.mxu0 %vm5546_vm8, %v5545_v61  ;;  %4906 = vmatprep.mubr.msk.f32.mxu1 %vm463_vm7, %v6451_v51  ;;  %v2572_v51 = vrot.slane %v4226_v16, %v5946_v2 }
0x14ad   :  { %4936 = vmatprep.subr.bf16.mxu0 %v5545_v61 }
0x1563   :  { %v4850_v32 = vpop.f32.mrf.mxu0  ;;  %v4871_v46 = vpop.f32.mrf.mxu1 }
0x1564   :  { %v2574_v60 = vmul.f32 %v4850_v32, %v2572_v51  ;;  %v2600_v33 = vmul.f32 %v4871_v46, %v2598_v26 }
0x1565   :  { %v2443_v37 = vpop.f32.mrf.mxu0  ;;  %v2538_v23 = vpop.f32.mrf.mxu1 }
0x1566   :  { %v2590_v19 = vadd.f32 %v2584_v40, %v2574_v60  ;;  %v2573_v45 = vmul.f32 %v2572_v51, %v2443_v37  ;;  %v2599_v20 = vmul.f32 %v2598_v26, %v2538_v23 }
0x1567   :  { %v4853_v1 = vpop.f32.mrf.mxu0  ;;  %v4874_v28 = vpop.f32.mrf.mxu1 }
0x1568   :  { %v2589_v7 = vadd.f32 %v2583_v3, %v2573_v45  ;;  %v2606_v17 = vadd.f32 %v2600_v33, %v2590_v19  ;;  %v2576_v54 = vmul.f32 %v4853_v1, %v2572_v51  ;;  %v2602_v56 = vmul.f32 %v4874_v28, %v2598_v26 }
0x1569   :  { %v2453_v58 = vpop.f32.mrf.mxu0  ;;  %v2548_v59 = vpop.f32.mrf.mxu1  ;;  %v2587_v1 = vmul.f32 %v2582_v9, %v6520_v21 }
0x156a   :  { %v2592_v18 = vadd.f32 %v2586_v5, %v2576_v54  ;;  %v2605_v24 = vadd.f32 %v2599_v20, %v2589_v7  ;;  %v2575_v27 = vmul.f32 %v2572_v51, %v2453_v58  ;;  %v2620_v41 = vadd.f32 %v4227_v0, %v2606_v17 }
0x156b   :  { %v4856_v11 = vpop.f32.mrf.mxu0  ;;  %v2601_v10 = vmul.f32 %v2598_v26, %v2548_v59  ;;  %v4877_v30 = vpop.f32.mrf.mxu1 }
0x156c   :  { %v2619_v16 = vadd.f32 %v4227_v0, %v2605_v24  ;;  %v2591_v32 = vadd.f32 %v2585_v39, %v2575_v27  ;;  %v2608_v46 = vadd.f32 %v2602_v56, %v2592_v18  ;;  %v2578_v60 = vmul.f32 %v4856_v11, %v2572_v51 }
0x156d   :  { %v2463_v40 = vpop.f32.mrf.mxu0  ;;  %v2604_v33 = vmul.f32 %v4877_v30, %v2598_v26  ;;  %v2558_v37 = vpop.f32.mrf.mxu1 }
0x156e   :  { %v2625_v23 = vpack.c.bf16 %v2620_v41, %v2619_v16  ;;  %v2594_v19 = vadd.f32 %v2588_v31, %v2578_v60  ;;  %v2607_v45 = vadd.f32 %v2601_v10, %v2591_v32  ;;  %v2577_v3 = vmul.f32 %v2572_v51, %v2463_v40 }
0x156f   :  { %v2603_v57 = vmul.f32 %v2598_v26, %v2558_v37  ;;  %v2622_v5 = vadd.f32 %v4227_v0, %v2608_v46 }
0x1570   :  { %v2621_v20 = vadd.f32 %v4227_v0, %v2607_v45  ;;  %4883 = vmatmul.mubr.msk.bf16.vlgmr.msra.gmra.mxu0 %vm383_vm6, %v2625_v23  ;;  %v2593_v12 = vadd.f32 %v2587_v1, %v2577_v3  ;;  %v2610_v28 = vadd.f32 %v2604_v33, %v2594_v19 }
0x1571   :  { %4886 = vmatprep.mubr.msk.bf16.mxu0 %vm5546_vm8, %v5545_v61 }
0x1572   :  { %v2626_v7 = vpack.c.bf16 %v2622_v5, %v2621_v20  ;;  %v2609_v17 = vadd.f32 %v2603_v57, %v2593_v12  ;;  %v2624_v54 = vadd.f32 %v4227_v0, %v2610_v28 }
0x1574   :  { %v2623_v56 = vadd.f32 %v4227_v0, %v2609_v17  ;;  %v4233_v0 = vld [vmem:[%s7089_s13 + $0x2] ss:$0 sm:$0xff] }
0x1576   :  { %v2627_v58 = vpack.c.bf16 %v2624_v54, %v2623_v56 }
0x1578   :  { %4887 = vmatmul.mubr.msk.bf16.gmra.mxu0 %vm383_vm6, %v2626_v7 }
0x1579   :  { %4890 = vmatprep.mubr.msk.bf16.mxu0 %vm5546_vm8, %v5545_v61 }
0x1580   :  { %4891 = vmatmul.mubr.msk.bf16.gmra.mxu0 %vm383_vm6, %v2627_v58 }
0x1581   :  { %4940 = vmatprep.mubr.msk.bf16.mxu0 %vm5546_vm8, %v5545_v61 }
0x1630   :  { %v2696_v21 = vpop.f32.mrf.mxu0 }
0x1631   :  { %v2697_v30 = vadd.f32 %v4233_v0, %v2696_v21 }
0x1632   :  { %v4884_v51 = vpop.f32.mrf.mxu0 }
0x1633   :  { %v6659_v23 = vadd.f32 %v2697_v30, %v6479_v44 }
0x1634   :  { %v2699_v26 = vpop.f32.mrf.mxu0 }
0x1636   :  { %v4885_v9 = vpop.f32.mrf.mxu0 }
0x1638   :  { %v2704_v59 = vpop.f32.mrf.mxu0 }
0x1639   :  { %v2705_v41 = vadd.f32 %v4233_v0, %v2704_v59 }
0x163a   :  { %v4888_v18 = vpop.f32.mrf.mxu0 }
0x163b   :  { %v6651_v32 = vadd.f32 %v2705_v41, %v6471_v15 }
0x163c   :  { %v2707_v24 = vpop.f32.mrf.mxu0 }
0x163d   :  { %v2708_v46 = vadd.f32 %v4233_v0, %v2707_v24  ;;  %v2731_v15 = vsel %vm383_vm6, %v6651_v32, 0.0 }
0x163e   :  { %v4889_v27 = vpop.f32.mrf.mxu0 }
0x163f   :  { %v6662_v19 = vadd.f32 %v2708_v46, %v6481_v52 }
0x1640   :  { %v2712_v39 = vpop.f32.mrf.mxu0 }
0x1641   :  { %v2713_v11 = vadd.f32 %v4233_v0, %v2712_v39  ;;  %v2734_v44 = vsel %vm383_vm6, %v6662_v19, 0.0 }
0x1642   :  { %v4892_v31 = vpop.f32.mrf.mxu0 }
0x1643   :  { %v6648_v10 = vadd.f32 %v2713_v11, %v6467_v50  ;;  %v2700_v50 = vadd.f32 %v4233_v0, %v2699_v26 }
0x1644   :  { %v2715_v16 = vpop.f32.mrf.mxu0 }
0x1645   :  { %v2716_v60 = vadd.f32 %v4233_v0, %v2715_v16  ;;  %v2737_v40 = vsel %vm383_vm6, %v6648_v10, 0.0  ;;  %v6669_v3 = vadd.f32 %v2700_v50, %v6487_v53 }
0x1646   :  { %2738 = vadd.xlane.f32.xlu0 %v2737_v40  ;;  %v4893_v33 = vpop.f32.mrf.mxu0 }
0x1647   :  { %v6656_v37 = vadd.f32 %v2716_v60, %v6473_v49  ;;  %v2725_v49 = vsel %vm383_vm6, %v6659_v23, 0.0  ;;  %v2728_v52 = vsel %vm383_vm6, %v6669_v3, 0.0 }
0x1649   :  { %v2740_v45 = vsel %vm383_vm6, %v6656_v37, 0.0 }
0x164a   :  { %2732 = vadd.xlane.f32.xlu0 %v2731_v15  ;;  %2741 = vadd.xlane.f32.xlu1 %v2740_v45 }
0x164e   :  { %2726 = vadd.xlane.f32.xlu0 %v2725_v49  ;;  %2735 = vadd.xlane.f32.xlu1 %v2734_v44 }
0x1652   :  { %2729 = vadd.xlane.f32.xlu1 %v2728_v52 }
0x16cf   :  { %v2739_v1 = vpop.xlane.xlu0 %2738 }
0x16d0   :  { %v2747_v57 = vmul.f32 0.03125, %v2739_v1 }
0x16d2   :  { %v6678_v5 = vsub.f32 %v6648_v10, %v2747_v57 }
0x16d3   :  { %v2733_v20 = vpop.xlane.xlu0 %2732  ;;  %v2742_v53 = vpop.xlane.xlu1 %2741 }
0x16d4   :  { %v2745_v12 = vmul.f32 0.03125, %v2733_v20  ;;  %v2748_v28 = vmul.f32 0.03125, %v2742_v53  ;;  %v2759_v7 = vmul.f32 %v6678_v5, %v6678_v5 }
0x16d6   :  { %v6683_v17 = vsub.f32 %v6651_v32, %v2745_v12  ;;  %v2754_v54 = vsub.f32 %v6656_v37, %v2748_v28  ;;  %v2773_v56 = vsel %vm383_vm6, %v2759_v7, 0.0 }
0x16d7   :  { %2774 = vadd.xlane.f32.xlu0 %v2773_v56  ;;  %v2727_v58 = vpop.xlane.xlu0 %2726  ;;  %v2736_v21 = vpop.xlane.xlu1 %2735 }
0x16d8   :  { %v2743_v51 = vmul.f32 0.03125, %v2727_v58  ;;  %v2746_v26 = vmul.f32 0.03125, %v2736_v21  ;;  %v2757_v9 = vmul.f32 %v6683_v17, %v6683_v17  ;;  %v2760_v59 = vmul.f32 %v2754_v54, %v2754_v54 }
0x16da   :  { %v2749_v18 = vsub.f32 %v6659_v23, %v2743_v51  ;;  %v2752_v24 = vsub.f32 %v6662_v19, %v2746_v26  ;;  %v2767_v27 = vsel %vm383_vm6, %v2757_v9, 0.0  ;;  %v2776_v0 = vsel %vm383_vm6, %v2760_v59, 0.0 }
0x16db   :  { %2768 = vadd.xlane.f32.xlu0 %v2767_v27  ;;  %2777 = vadd.xlane.f32.xlu1 %v2776_v0  ;;  %v2730_v39 = vpop.xlane.xlu1 %2729 }
0x16dc   :  { %v2744_v41 = vmul.f32 0.03125, %v2730_v39  ;;  %v2755_v11 = vmul.f32 %v2749_v18, %v2749_v18  ;;  %v2758_v31 = vmul.f32 %v2752_v24, %v2752_v24 }
0x16de   :  { %v2750_v30 = vsub.f32 %v6669_v3, %v2744_v41  ;;  %v2761_v16 = vsel %vm383_vm6, %v2755_v11, 0.0  ;;  %v2770_v46 = vsel %vm383_vm6, %v2758_v31, 0.0 }
0x16df   :  { %2762 = vadd.xlane.f32.xlu0 %v2761_v16  ;;  %2771 = vadd.xlane.f32.xlu1 %v2770_v46 }
0x16e0   :  { %v2756_v60 = vmul.f32 %v2750_v30, %v2750_v30 }
0x16e2   :  { %v2764_v40 = vsel %vm383_vm6, %v2756_v60, 0.0 }
0x16e3   :  { %2765 = vadd.xlane.f32.xlu1 %v2764_v40 }
0x1760   :  { %v2775_v33 = vpop.xlane.xlu0 %2774 }
0x1761   :  { %v2783_v50 = vmul.f32 0.03125, %v2775_v33 }
0x1763   :  { %v2789_v49 = vadd.f32 1e-06, %v2783_v50 }
0x1764   :  { %v2769_v15 = vpop.xlane.xlu0 %2768  ;;  %v2778_v45 = vpop.xlane.xlu1 %2777 }
0x1765   :  { %v2781_v44 = vmul.f32 0.03125, %v2769_v15  ;;  %v2784_v52 = vmul.f32 0.03125, %v2778_v45  ;;  %5259 = vrsqrt.f32 %v2789_v49 }
0x1767   :  { %v2790_v1 = vadd.f32 1e-06, %v2784_v52  ;;  %v2787_v53 = vadd.f32 1e-06, %v2781_v44 }
0x1768   :  { %v2763_v57 = vpop.xlane.xlu0 %2762  ;;  %v2772_v20 = vpop.xlane.xlu1 %2771 }
0x1769   :  { %v2782_v12 = vmul.f32 0.03125, %v2772_v20  ;;  %5261 = vrsqrt.f32 %v2790_v1  ;;  %v2779_v28 = vmul.f32 0.03125, %v2763_v57 }
0x176a   :  { %5263 = vrsqrt.f32 %v2787_v53 }
0x176b   :  { %v2788_v7 = vadd.f32 1e-06, %v2782_v12  ;;  %v2785_v21 = vadd.f32 1e-06, %v2779_v28 }
0x176c   :  { %v2766_v56 = vpop.xlane.xlu1 %2765 }
0x176d   :  { %v2780_v58 = vmul.f32 0.03125, %v2766_v56  ;;  %5265 = vrsqrt.f32 %v2788_v7 }
0x176f   :  { %v2786_v51 = vadd.f32 1e-06, %v2780_v58 }
0x1771   :  { %5267 = vrsqrt.f32 %v2786_v51 }
0x1772   :  { %5269 = vrsqrt.f32 %v2785_v21  ;;  %v5260_v26 = vpop.eup %5259 }
0x1773   :  { %v6701_v0 = vmul.f32 %v5260_v26, %v6678_v5 }
0x1776   :  { %v5262_v9 = vpop.eup %5261 }
0x1777   :  { %v6697_v59 = vmul.f32 %v5262_v9, %v2754_v54  ;;  %v5264_v27 = vpop.eup %5263 }
0x1778   :  { %v6710_v54 = vmul.f32 %v5264_v27, %v6683_v17 }
0x1779   :  { %4894 = vmatprep.subr.mxu1 %v6697_v59 }
0x177a   :  { %v5266_v39 = vpop.eup %5265  ;;  %4895 = vmatpush3.msra.mxu1 %v6697_v59 }
0x177b   :  { %4896 = vmatprep.subr.mxu1 %v6701_v0  ;;  %v6705_v41 = vmul.f32 %v5266_v39, %v2752_v24 }
0x177c   :  { %4897 = vmatpush3.msra.mxu1 %v6701_v0 }
0x177d   :  { %4898 = vmatprep.subr.mxu1 %v6705_v41 }
0x177e   :  { %v5268_v11 = vpop.eup %5267  ;;  %4899 = vmatpush3.msra.mxu1 %v6705_v41 }
0x177f   :  { %v5270_v31 = vpop.eup %5269  ;;  %v2798_v5 = vmul.f32 %v5268_v11, %v2750_v30  ;;  %4900 = vmatprep.subr.mxu1 %v6710_v54 }
0x1780   :  { %4901 = vmatpush3.msra.mxu1 %v6710_v54  ;;  %v2797_v16 = vmul.f32 %v5270_v31, %v2749_v18 }
0x1781   :  { %4902 = vmatprep.subr.mxu1 %v2798_v5 }
0x1782   :  { %4903 = vmatpush3.msra.mxu1 %v2798_v5 }
0x1783   :  { %4904 = vmatprep.subr.mxu1 %v2797_v16 }
0x1784   :  { %4905 = vmatpush3.msra.mxu1 %v2797_v16 }
0x1785   :  { %4907 = vmatmul.mubr.msk.f32.vlgmr.msra.gmra.mxu1 %vm463_vm7, %v6545_v22  ;;  %4915 = vmatprep.subr.mxu1 %v6697_v59  ;;  %v5128_v22 = vld [vmem:[%s7088_s12 + $0x30] sm:$0xff]  }
0x1786   :  { %4916 = vmatpush3.msra.mxu1 %v6697_v59  ;;  %4909 = vmatprep.mubr.msk.f32.mxu1 %vm463_vm7, %v6559_v47 }
0x1787   :  { %4917 = vmatprep.subr.mxu1 %v6701_v0 }
0x1788   :  { %4918 = vmatpush3.msra.mxu1 %v6701_v0 }
0x1789   :  { %4910 = vmatmul.mubr.msk.f32.gmra.mxu1 %vm463_vm7, %v6574_v63  ;;  %4919 = vmatprep.subr.mxu1 %v6705_v41 }
0x178a   :  { %4920 = vmatpush3.msra.mxu1 %v6705_v41  ;;  %4912 = vmatprep.mubr.msk.f32.mxu1 %vm463_vm7, %v6588_v34 }
0x178b   :  { %4921 = vmatprep.subr.mxu1 %v6710_v54 }
0x178c   :  { %4922 = vmatpush3.msra.mxu1 %v6710_v54 }
0x178d   :  { %4913 = vmatmul.mubr.msk.f32.gmra.mxu1 %vm463_vm7, %v6602_v42  ;;  %4923 = vmatprep.subr.mxu1 %v2798_v5 }
0x178e   :  { %4924 = vmatpush3.msra.mxu1 %v2798_v5  ;;  %4927 = vmatprep.mubr.msk.f32.mxu1 %vm463_vm7, %v6437_v13  ;;  %v5127_v13 = vld [vmem:[%s7088_s12 + $0x38] sm:$0xff]  }
0x178f   :  { %4925 = vmatprep.subr.mxu1 %v2797_v16  ;;  %4937 = vmatpush3.bf16.msra.mxu0 %v5127_v13 }
0x1790   :  { %4926 = vmatpush3.msra.mxu1 %v2797_v16  ;;  %4938 = vmatprep.subr.bf16.mxu0 %v5545_v61 }
0x1791   :  { %4928 = vmatmul.mubr.msk.f32.vlgmr.msra.gmra.mxu1 %vm463_vm7, %v6552_v38  ;;  %4952 = vmatprep.subr.bf16.mxu1 %v5545_v61 }
0x1792   :  { %4930 = vmatprep.mubr.msk.f32.mxu1 %vm463_vm7, %v6566_v62  ;;  %v4251_v62 = vld [vmem:[%s7086_s10 + $0xc] sm:$0x7] }
0x1793   :  { %4939 = vmatpush3.bf16.msra.mxu0 %v5128_v22  ;;  %v3024_v17 = vrot.slane %v4251_v62, %v5954_v8 }
0x1794   :  { %4970 = vmatprep.subr.bf16.mxu0 %v5545_v61 }
0x1795   :  { %4931 = vmatmul.mubr.msk.f32.gmra.mxu1 %vm463_vm7, %v6581_v36  ;;  %v2998_v36 = vrot.slane %v4251_v62, %v5946_v2 }
0x1796   :  { %4933 = vmatprep.mubr.msk.f32.mxu1 %vm463_vm7, %v6595_v29 }
0x1799   :  { %4934 = vmatmul.mubr.msk.f32.gmra.mxu1 %vm463_vm7, %v6609_v48  ;;  %v3008_v48 = vrot.slane %v4251_v62, %v5951_v6  ;;  %v4252_v6 = vld [vmem:[#allocation6 + $0x3] ss:$0 sm:$0xff] }
0x179a   :  { %4958 = vmatprep.mubr.msk.bf16.mxu1 %vm5546_vm8, %v5545_v61 }
0x179b   :  { %v3010_v24 = vmul.f32 %v3008_v48, %v2798_v5  ;;  %v3009_v40 = vmul.f32 %v3008_v48, %v2797_v16  ;;  %v3012_v2 = vmul.f32 %v3008_v48, %v6705_v41  ;;  %v3011_v1 = vmul.f32 %v3008_v48, %v6710_v54 }
0x179c   :  { %v3014_v7 = vmul.f32 %v3008_v48, %v6697_v59  ;;  %v3013_v27 = vmul.f32 %v3008_v48, %v6701_v0 }
0x1845   :  { %v4908_v38 = vpop.f32.mrf.mxu1 }
0x1846   :  { %v3000_v42 = vmul.f32 %v4908_v38, %v2998_v36 }
0x1847   :  { %v2869_v47 = vpop.f32.mrf.mxu1 }
0x1848   :  { %v2999_v30 = vmul.f32 %v2998_v36, %v2869_v47  ;;  %v3016_v60 = vadd.f32 %v3010_v24, %v3000_v42 }
0x1849   :  { %v4911_v63 = vpop.f32.mrf.mxu1 }
0x184a   :  { %v3002_v33 = vmul.f32 %v4911_v63, %v2998_v36  ;;  %v3015_v49 = vadd.f32 %v3009_v40, %v2999_v30 }
0x184b   :  { %v2879_v34 = vpop.f32.mrf.mxu1 }
0x184c   :  { %v3001_v15 = vmul.f32 %v2998_v36, %v2879_v34  ;;  %v3018_v8 = vadd.f32 %v3012_v2, %v3002_v33 }
0x184d   :  { %v4914_v29 = vpop.f32.mrf.mxu1 }
0x184e   :  { %v3004_v20 = vmul.f32 %v4914_v29, %v2998_v36  ;;  %v3017_v28 = vadd.f32 %v3011_v1, %v3001_v15 }
0x184f   :  { %v2889_v18 = vpop.f32.mrf.mxu1 }
0x1850   :  { %v3003_v56 = vmul.f32 %v2998_v36, %v2889_v18  ;;  %v3020_v41 = vadd.f32 %v3014_v7, %v3004_v20 }
0x1851   :  { %v4929_v46 = vpop.f32.mrf.mxu1 }
0x1852   :  { %v3026_v50 = vmul.f32 %v4929_v46, %v3024_v17  ;;  %v3019_v5 = vadd.f32 %v3013_v27, %v3003_v56  ;;  %v4258_v46 = vld [vmem:[%s7089_s13 + $0x3] ss:$0 sm:$0xff] }
0x1853   :  { %v2964_v45 = vpop.f32.mrf.mxu1 }
0x1854   :  { %v3032_v44 = vadd.f32 %v3026_v50, %v3016_v60  ;;  %v3025_v52 = vmul.f32 %v3024_v17, %v2964_v45 }
0x1855   :  { %v4932_v57 = vpop.f32.mrf.mxu1 }
0x1856   :  { %v3031_v53 = vadd.f32 %v3025_v52, %v3015_v49  ;;  %v3028_v12 = vmul.f32 %v4932_v57, %v3024_v17  ;;  %v3046_v21 = vadd.f32 %v4252_v6, %v3032_v44 }
0x1857   :  { %v2974_v58 = vpop.f32.mrf.mxu1 }
0x1858   :  { %v3045_v51 = vadd.f32 %v4252_v6, %v3031_v53  ;;  %v3034_v26 = vadd.f32 %v3028_v12, %v3018_v8  ;;  %v3027_v9 = vmul.f32 %v3024_v17, %v2974_v58 }
0x1859   :  { %v4935_v39 = vpop.f32.mrf.mxu1 }
0x185a   :  { %v3051_v11 = vpack.c.bf16 %v3046_v21, %v3045_v51  ;;  %v3033_v54 = vadd.f32 %v3027_v9, %v3017_v28  ;;  %v3030_v31 = vmul.f32 %v4935_v39, %v3024_v17  ;;  %v3048_v13 = vadd.f32 %v4252_v6, %v3034_v26 }
0x185b   :  { %v2984_v16 = vpop.f32.mrf.mxu1 }
0x185c   :  { %v3047_v22 = vadd.f32 %v4252_v6, %v3033_v54  ;;  %v3036_v38 = vadd.f32 %v3030_v31, %v3020_v41  ;;  %v3029_v47 = vmul.f32 %v3024_v17, %v2984_v16  ;;  %4941 = vmatmul.mubr.msk.bf16.vlgmr.msra.gmra.mxu0 %vm383_vm6, %v3051_v11 }
0x185d   :  { %4944 = vmatprep.mubr.msk.bf16.mxu0 %vm5546_vm8, %v5545_v61 }
0x185e   :  { %v3052_v59 = vpack.c.bf16 %v3048_v13, %v3047_v22  ;;  %v3035_v62 = vadd.f32 %v3029_v47, %v3019_v5  ;;  %v3050_v63 = vadd.f32 %v4252_v6, %v3036_v38 }
0x1860   :  { %v3049_v0 = vadd.f32 %v4252_v6, %v3035_v62 }
0x1862   :  { %v3053_v36 = vpack.c.bf16 %v3050_v63, %v3049_v0 }
0x1864   :  { %4945 = vmatmul.mubr.msk.bf16.gmra.mxu0 %vm383_vm6, %v3052_v59 }
0x1865   :  { %4948 = vmatprep.mubr.msk.bf16.mxu0 %vm5546_vm8, %v5545_v61 }
0x186c   :  { %4949 = vmatmul.mubr.msk.bf16.gmra.mxu0 %vm383_vm6, %v3053_v36 }
0x186d   :  { %4976 = vmatprep.mubr.msk.bf16.mxu0 %vm5546_vm8, %v5545_v61 }
0x191c   :  { %v3122_v34 = vpop.f32.mrf.mxu0 }
0x191d   :  { %v3123_v45 = vadd.f32 %v4258_v46, %v3122_v34 }
0x191e   :  { %v4942_v29 = vpop.f32.mrf.mxu0 }
0x191f   :  { %v6790_v8 = vadd.f32 %v3123_v45, %v6659_v23 }
0x1920   :  { %v3125_v42 = vpop.f32.mrf.mxu0 }
0x1922   :  { %v4943_v48 = vpop.f32.mrf.mxu0 }
0x1924   :  { %v3130_v17 = vpop.f32.mrf.mxu0 }
0x1925   :  { %v3131_v40 = vadd.f32 %v4258_v46, %v3130_v17 }
0x1926   :  { %v4946_v18 = vpop.f32.mrf.mxu0 }
0x1927   :  { %v6782_v2 = vadd.f32 %v3131_v40, %v6651_v32 }
0x1928   :  { %v3133_v24 = vpop.f32.mrf.mxu0 }
0x1929   :  { %v3134_v44 = vadd.f32 %v4258_v46, %v3133_v24  ;;  %v3157_v32 = vsel %vm383_vm6, %v6782_v2, 0.0 }
0x192a   :  { %v4947_v30 = vpop.f32.mrf.mxu0 }
0x192b   :  { %v6793_v20 = vadd.f32 %v3134_v44, %v6662_v19 }
0x192c   :  { %v3138_v60 = vpop.f32.mrf.mxu0 }
0x192d   :  { %v3139_v33 = vadd.f32 %v4258_v46, %v3138_v60  ;;  %v3160_v23 = vsel %vm383_vm6, %v6793_v20, 0.0 }
0x192e   :  { %v4950_v50 = vpop.f32.mrf.mxu0 }
0x192f   :  { %v6779_v15 = vadd.f32 %v3139_v33, %v6648_v10  ;;  %v3126_v10 = vadd.f32 %v4258_v46, %v3125_v42 }
0x1930   :  { %v3141_v49 = vpop.f32.mrf.mxu0 }
0x1931   :  { %v3142_v52 = vadd.f32 %v4258_v46, %v3141_v49  ;;  %v3163_v1 = vsel %vm383_vm6, %v6779_v15, 0.0  ;;  %v6800_v12 = vadd.f32 %v3126_v10, %v6669_v3 }
0x1932   :  { %3164 = vadd.xlane.f32.xlu1 %v3163_v1  ;;  %v4951_v6 = vpop.f32.mrf.mxu0 }
0x1933   :  { %v6787_v57 = vadd.f32 %v3142_v52, %v6656_v37  ;;  %v3151_v37 = vsel %vm383_vm6, %v6790_v8, 0.0  ;;  %v3154_v19 = vsel %vm383_vm6, %v6800_v12, 0.0 }
0x1935   :  { %v3166_v53 = vsel %vm383_vm6, %v6787_v57, 0.0 }
0x1936   :  { %3158 = vadd.xlane.f32.xlu1 %v3157_v32  ;;  %3167 = vadd.xlane.f32.xlu0 %v3166_v53 }
0x193a   :  { %3152 = vadd.xlane.f32.xlu1 %v3151_v37  ;;  %3161 = vadd.xlane.f32.xlu0 %v3160_v23 }
0x193e   :  { %3155 = vadd.xlane.f32.xlu0 %v3154_v19 }
0x19bb   :  { %v3165_v28 = vpop.xlane.xlu1 %3164 }
0x19bc   :  { %v3173_v7 = vmul.f32 0.03125, %v3165_v28 }
0x19be   :  { %v3179_v56 = vsub.f32 %v6779_v15, %v3173_v7 }
0x19bf   :  { %v3159_v58 = vpop.xlane.xlu1 %3158  ;;  %v3168_v21 = vpop.xlane.xlu0 %3167 }
0x19c0   :  { %v3171_v3 = vmul.f32 0.03125, %v3159_v58  ;;  %v3174_v51 = vmul.f32 0.03125, %v3168_v21  ;;  %v3185_v26 = vmul.f32 %v3179_v56, %v3179_v56 }
0x19c2   :  { %v3177_v9 = vsub.f32 %v6782_v2, %v3171_v3  ;;  %v3180_v27 = vsub.f32 %v6787_v57, %v3174_v51  ;;  %v3199_v39 = vsel %vm383_vm6, %v3185_v26, 0.0 }
0x19c3   :  { %3200 = vadd.xlane.f32.xlu1 %v3199_v39  ;;  %v3153_v41 = vpop.xlane.xlu1 %3152  ;;  %v3162_v11 = vpop.xlane.xlu0 %3161 }
0x19c4   :  { %v3169_v54 = vmul.f32 0.03125, %v3153_v41  ;;  %v3172_v31 = vmul.f32 0.03125, %v3162_v11  ;;  %v3183_v5 = vmul.f32 %v3177_v9, %v3177_v9  ;;  %v3186_v16 = vmul.f32 %v3180_v27, %v3180_v27 }
0x19c6   :  { %v3175_v13 = vsub.f32 %v6790_v8, %v3169_v54  ;;  %v3178_v22 = vsub.f32 %v6793_v20, %v3172_v31  ;;  %v3193_v38 = vsel %vm383_vm6, %v3183_v5, 0.0  ;;  %v3202_v47 = vsel %vm383_vm6, %v3186_v16, 0.0  ;;  %v5355_v16 = vld [vmem:[%s7113_s8] sm:$0xff] }
0x19c7   :  { %3194 = vadd.xlane.f32.xlu1 %v3193_v38  ;;  %3203 = vadd.xlane.f32.xlu0 %v3202_v47  ;;  %v3156_v59 = vpop.xlane.xlu0 %3155 }
0x19c8   :  { %v3170_v62 = vmul.f32 0.03125, %v3156_v59  ;;  %v3181_v63 = vmul.f32 %v3175_v13, %v3175_v13  ;;  %v3184_v0 = vmul.f32 %v3178_v22, %v3178_v22  ;;  %v5356_v59 = vld [vmem:[%s7113_s8 + $0x8] sm:$0xff] }
0x19ca   :  { %v3176_v36 = vsub.f32 %v6800_v12, %v3170_v62  ;;  %v3187_v34 = vsel %vm383_vm6, %v3181_v63, 0.0  ;;  %v3196_v29 = vsel %vm383_vm6, %v3184_v0, 0.0 }
0x19cb   :  { %3188 = vadd.xlane.f32.xlu1 %v3187_v34  ;;  %3197 = vadd.xlane.f32.xlu0 %v3196_v29  ;;  %v5357_v34 = vld [vmem:[%s7113_s8 + $0x10] sm:$0xff] }
0x19cc   :  { %v3182_v42 = vmul.f32 %v3176_v36, %v3176_v36 }
0x19ce   :  { %v3190_v48 = vsel %vm383_vm6, %v3182_v42, 0.0 }
0x19cf   :  { %3191 = vadd.xlane.f32.xlu0 %v3190_v48 }
0x1a4c   :  { %v3201_v17 = vpop.xlane.xlu1 %3200 }
0x1a4d   :  { %v3209_v18 = vmul.f32 0.03125, %v3201_v17 }
0x1a4f   :  { %v3215_v24 = vadd.f32 1e-06, %v3209_v18  ;;  %v5358_v18 = vld [vmem:[%s7113_s8 + $0x18] sm:$0xff] }
0x1a50   :  { %v3195_v30 = vpop.xlane.xlu1 %3194  ;;  %v3204_v46 = vpop.xlane.xlu0 %3203 }
0x1a51   :  { %v3207_v60 = vmul.f32 0.03125, %v3195_v30  ;;  %v3210_v40 = vmul.f32 0.03125, %v3204_v46  ;;  %5271 = vrsqrt.f32 %v3215_v24 }
0x1a53   :  { %v3216_v33 = vadd.f32 1e-06, %v3210_v40  ;;  %v3213_v50 = vadd.f32 1e-06, %v3207_v60  ;;  %v5359_v40 = vld [vmem:[%s7113_s8 + $0x20] sm:$0xff] }
0x1a54   :  { %v3189_v45 = vpop.xlane.xlu1 %3188  ;;  %v3198_v49 = vpop.xlane.xlu0 %3197 }
0x1a55   :  { %v3205_v44 = vmul.f32 0.03125, %v3189_v45  ;;  %v3208_v52 = vmul.f32 0.03125, %v3198_v49  ;;  %5273 = vrsqrt.f32 %v3216_v33 }
0x1a56   :  { %5275 = vrsqrt.f32 %v3213_v50 }
0x1a57   :  { %v3211_v1 = vadd.f32 1e-06, %v3205_v44  ;;  %v3214_v6 = vadd.f32 1e-06, %v3208_v52  ;;  %v5360_v44 = vld [vmem:[%s7113_s8 + $0x28] sm:$0xff] }
0x1a58   :  { %v3192_v10 = vpop.xlane.xlu0 %3191 }
0x1a59   :  { %v3206_v32 = vmul.f32 0.03125, %v3192_v10  ;;  %5277 = vrsqrt.f32 %v3214_v6 }
0x1a5a   :  { %5279 = vrsqrt.f32 %v3211_v1 }
0x1a5b   :  { %v3212_v53 = vadd.f32 1e-06, %v3206_v32 }
0x1a5d   :  { %5281 = vrsqrt.f32 %v3212_v53 }
0x1a5e   :  { %v5272_v37 = vpop.eup %5271 }
0x1a5f   :  { %v3227_v19 = vmul.f32 %v5272_v37, %v3179_v56 }
0x1a62   :  { %v5274_v23 = vpop.eup %5273 }
0x1a63   :  { %v3228_v28 = vmul.f32 %v5274_v23, %v3180_v27  ;;  %v5276_v7 = vpop.eup %5275 }
0x1a64   :  { %v3225_v26 = vmul.f32 %v5276_v7, %v3177_v9 }
0x1a65   :  { %v3231_v58 = vpack.c.bf16 %v3228_v28, %v3227_v19 }
0x1a66   :  { %v5278_v21 = vpop.eup %5277 }
0x1a67   :  { %v5280_v3 = vpop.eup %5279  ;;  %4971 = vmatpush3.bf16.msra.mxu0 %v3231_v58  ;;  %v3239_v51 = vsel %vm383_vm6, %v3231_v58, 0  ;;  %v3226_v39 = vmul.f32 %v5278_v21, %v3178_v22 }
0x1a68   :  { %4953 = vmatpush3.bf16.xpose.msra.mxu1 %v3239_v51  ;;  %4972 = vmatprep.subr.bf16.mxu0 %v5545_v61  ;;  %v3223_v54 = vmul.f32 %v5280_v3, %v3175_v13 }
0x1a69   :  { %v3230_v11 = vpack.c.bf16 %v3226_v39, %v3225_v26  ;;  %4954 = vmatprep.subr.bf16.mxu1 %v5545_v61 }
0x1a6a   :  { %v5282_v41 = vpop.eup %5281 }
0x1a6b   :  { %v3224_v31 = vmul.f32 %v5282_v41, %v3176_v36  ;;  %4973 = vmatpush3.bf16.msra.mxu0 %v3230_v11  ;;  %v3236_v27 = vsel %vm383_vm6, %v3230_v11, 0 }
0x1a6c   :  { %4974 = vmatprep.subr.bf16.mxu0 %v5545_v61 }
0x1a6d   :  { %v3229_v56 = vpack.c.bf16 %v3224_v31, %v3223_v54 }
0x1a6f   :  { %4975 = vmatpush3.bf16.msra.mxu0 %v3229_v56  ;;  %v3233_v9 = vsel %vm383_vm6, %v3229_v56, 0 }
0x1a70   :  { %4955 = vmatpush3.bf16.xpose.msra.mxu1 %v3236_v27  ;;  %5004 = vmatprep.subr.bf16.mxu0 %v5545_v61 }
0x1a71   :  { %4956 = vmatprep.subr.bf16.mxu1 %v5545_v61 }
0x1a78   :  { %4957 = vmatpush3.bf16.xpose.msra.mxu1 %v3233_v9 }
0x1a79   :  { %4988 = vmatprep.subr.bf16.mxu1 %v5545_v61 }
0x1a7f   :  { %4959 = vmatmul.mubr.msk.bf16.vlgmr.msra.gmra.mxu1 %vm383_vm6, %v3229_v56 }
0x1a80   :  { %4962 = vmatprep.mubr.msk.bf16.mxu1 %vm5546_vm8, %v5545_v61 }
0x1a87   :  { %4963 = vmatmul.mubr.msk.bf16.gmra.mxu1 %vm383_vm6, %v3230_v11 }
0x1a88   :  { %4966 = vmatprep.mubr.msk.bf16.mxu1 %vm5546_vm8, %v5545_v61 }
0x1a8f   :  { %4967 = vmatmul.mubr.msk.bf16.gmra.mxu1 %vm383_vm6, %v3231_v58 }
0x1a90   :  { %4992 = vmatprep.mubr.msk.bf16.mxu1 %vm5546_vm8, %v5545_v61 }
0x1b3f   :  { %v3275_v5 = vpop.f32.mrf.mxu1 }
0x1b40   :  { %v3276_v13 = vadd.f32 %v5355_v16, %v3275_v5 }
0x1b41   :  { %v4960_v22 = vpop.f32.mrf.mxu1 }
0x1b42   :  { %v3298_v38 = vsel %vm463_vm7, %v3276_v13, -inf }
0x1b43   :  { %3299 = vmax.xlane.f32.xlu1 %v3298_v38  ;;  %v3278_v47 = vpop.f32.mrf.mxu1 }
0x1b44   :  { %v3279_v62 = vadd.f32 %v5356_v59, %v3278_v47 }
0x1b45   :  { %v4961_v63 = vpop.f32.mrf.mxu1 }
0x1b46   :  { %v3301_v0 = vsel %vm463_vm7, %v3279_v62, -inf }
0x1b47   :  { %3302 = vmax.xlane.f32.xlu0 %v3301_v0  ;;  %v3283_v36 = vpop.f32.mrf.mxu1 }
0x1b48   :  { %v3284_v29 = vadd.f32 %v5357_v34, %v3283_v36 }
0x1b49   :  { %v4964_v42 = vpop.f32.mrf.mxu1 }
0x1b4a   :  { %v3304_v48 = vsel %vm463_vm7, %v3284_v29, -inf }
0x1b4b   :  { %3305 = vmax.xlane.f32.xlu1 %v3304_v48  ;;  %v3286_v17 = vpop.f32.mrf.mxu1 }
0x1b4c   :  { %v3287_v24 = vadd.f32 %v5358_v18, %v3286_v17 }
0x1b4d   :  { %v4965_v30 = vpop.f32.mrf.mxu1 }
0x1b4e   :  { %v3307_v46 = vsel %vm463_vm7, %v3287_v24, -inf }
0x1b4f   :  { %3308 = vmax.xlane.f32.xlu0 %v3307_v46  ;;  %v3291_v60 = vpop.f32.mrf.mxu1 }
0x1b50   :  { %v3292_v33 = vadd.f32 %v5359_v40, %v3291_v60 }
0x1b51   :  { %v4968_v50 = vpop.f32.mrf.mxu1 }
0x1b52   :  { %v3310_v45 = vsel %vm463_vm7, %v3292_v33, -inf }
0x1b53   :  { %3311 = vmax.xlane.f32.xlu1 %v3310_v45  ;;  %v3294_v49 = vpop.f32.mrf.mxu1 }
0x1b54   :  { %v3295_v52 = vadd.f32 %v5360_v44, %v3294_v49 }
0x1b55   :  { %v4969_v1 = vpop.f32.mrf.mxu1 }
0x1b56   :  { %v3313_v6 = vsel %vm463_vm7, %v3295_v52, -inf }
0x1b57   :  { %3314 = vmax.xlane.f32.xlu0 %v3313_v6 }
0x1bcc   :  { %v3300_v10 = vpop.xlane.xlu1 %3299 }
0x1bcd   :  { %v3316_v32 = vsub.f32 %v3276_v13, %v3300_v10 }
0x1bcf   :  { %v3322_v53 = vmul.f32 1.442695, %v3316_v32 }
0x1bd0   :  { %v3303_v37 = vpop.xlane.xlu0 %3302 }
0x1bd1   :  { %5283 = vpow2.f32 %v3322_v53  ;;  %v3317_v23 = vsub.f32 %v3279_v62, %v3303_v37 }
0x1bd3   :  { %v3324_v19 = vmul.f32 1.442695, %v3317_v23 }
0x1bd4   :  { %v3306_v28 = vpop.xlane.xlu1 %3305 }
0x1bd5   :  { %5285 = vpow2.f32 %v3324_v19  ;;  %v3318_v7 = vsub.f32 %v3284_v29, %v3306_v28 }
0x1bd7   :  { %v3326_v58 = vmul.f32 1.442695, %v3318_v7 }
0x1bd8   :  { %v3309_v21 = vpop.xlane.xlu0 %3308 }
0x1bd9   :  { %5287 = vpow2.f32 %v3326_v58  ;;  %v3319_v3 = vsub.f32 %v3287_v24, %v3309_v21 }
0x1bdb   :  { %v3328_v51 = vmul.f32 1.442695, %v3319_v3 }
0x1bdc   :  { %v3312_v26 = vpop.xlane.xlu1 %3311 }
0x1bdd   :  { %5289 = vpow2.f32 %v3328_v51  ;;  %v3320_v39 = vsub.f32 %v3292_v33, %v3312_v26 }
0x1bde   :  { %v5284_v41 = vpop.eup %5283 }
0x1bdf   :  { %v3330_v11 = vmul.f32 1.442695, %v3320_v39  ;;  %v3334_v54 = vsel %vm463_vm7, %v5284_v41, 0.0 }
0x1be0   :  { %3335 = vadd.xlane.f32.xlu1 %v3334_v54  ;;  %v3315_v31 = vpop.xlane.xlu0 %3314 }
0x1be1   :  { %5291 = vpow2.f32 %v3330_v11  ;;  %v3321_v56 = vsub.f32 %v3295_v52, %v3315_v31 }
0x1be2   :  { %v5286_v27 = vpop.eup %5285 }
0x1be3   :  { %v3332_v9 = vmul.f32 1.442695, %v3321_v56  ;;  %v3337_v5 = vsel %vm463_vm7, %v5286_v27, 0.0 }
0x1be4   :  { %3338 = vadd.xlane.f32.xlu0 %v3337_v5 }
0x1be5   :  { %5293 = vpow2.f32 %v3332_v9 }
0x1be6   :  { %v5288_v16 = vpop.eup %5287 }
0x1be7   :  { %v3340_v13 = vsel %vm463_vm7, %v5288_v16, 0.0 }
0x1be8   :  { %3341 = vadd.xlane.f32.xlu1 %v3340_v13 }
0x1bea   :  { %v5290_v22 = vpop.eup %5289 }
0x1beb   :  { %v3343_v38 = vsel %vm463_vm7, %v5290_v22, 0.0 }
0x1bec   :  { %3344 = vadd.xlane.f32.xlu0 %v3343_v38 }
0x1bee   :  { %v5292_v47 = vpop.eup %5291 }
0x1bef   :  { %v3346_v59 = vsel %vm463_vm7, %v5292_v47, 0.0 }
0x1bf0   :  { %3347 = vadd.xlane.f32.xlu1 %v3346_v59 }
0x1bf2   :  { %v5294_v62 = vpop.eup %5293 }
0x1bf3   :  { %v3349_v63 = vsel %vm463_vm7, %v5294_v62, 0.0 }
0x1bf4   :  { %3350 = vadd.xlane.f32.xlu0 %v3349_v63 }
0x1c69   :  { %v3336_v0 = vpop.xlane.xlu1 %3335 }
0x1c6a   :  { %5295 = vrcp.f32 %v3336_v0 }
0x1c6d   :  { %v3339_v36 = vpop.xlane.xlu0 %3338 }
0x1c6e   :  { %5297 = vrcp.f32 %v3339_v36 }
0x1c71   :  { %v3342_v34 = vpop.xlane.xlu1 %3341 }
0x1c72   :  { %5299 = vrcp.f32 %v3342_v34 }
0x1c75   :  { %v3345_v29 = vpop.xlane.xlu0 %3344 }
0x1c76   :  { %5301 = vrcp.f32 %v3345_v29 }
0x1c77   :  { %v5296_v42 = vpop.eup %5295 }
0x1c78   :  { %v3358_v18 = vmul.f32 %v5296_v42, %v5284_v41 }
0x1c79   :  { %v3348_v48 = vpop.xlane.xlu1 %3347 }
0x1c7a   :  { %5303 = vrcp.f32 %v3348_v48 }
0x1c7b   :  { %v5298_v17 = vpop.eup %5297 }
0x1c7c   :  { %v3359_v24 = vmul.f32 %v5298_v17, %v5286_v27 }
0x1c7d   :  { %v3351_v30 = vpop.xlane.xlu0 %3350 }
0x1c7e   :  { %v3364_v46 = vpack.c.bf16 %v3359_v24, %v3358_v18  ;;  %5305 = vrcp.f32 %v3351_v30 }
0x1c7f   :  { %v5300_v60 = vpop.eup %5299 }
0x1c80   :  { %4977 = vmatmul.mubr.msk.bf16.vlgmr.msra.gmra.mxu0 %vm463_vm7, %v3364_v46  ;;  %v3360_v33 = vmul.f32 %v5300_v60, %v5288_v16 }
0x1c81   :  { %4980 = vmatprep.mubr.msk.bf16.mxu0 %vm5546_vm8, %v5545_v61 }
0x1c83   :  { %v5302_v40 = vpop.eup %5301 }
0x1c84   :  { %v3361_v50 = vmul.f32 %v5302_v40, %v5290_v22 }
0x1c86   :  { %v3365_v45 = vpack.c.bf16 %v3361_v50, %v3360_v33 }
0x1c87   :  { %v5304_v49 = vpop.eup %5303 }
0x1c88   :  { %4981 = vmatmul.mubr.msk.bf16.gmra.mxu0 %vm463_vm7, %v3365_v45  ;;  %v3362_v52 = vmul.f32 %v5304_v49, %v5292_v47 }
0x1c89   :  { %4984 = vmatprep.mubr.msk.bf16.mxu0 %vm5546_vm8, %v5545_v61 }
0x1c8b   :  { %v5306_v44 = vpop.eup %5305 }
0x1c8c   :  { %v3363_v1 = vmul.f32 %v5306_v44, %v5294_v62 }
0x1c8e   :  { %v3366_v6 = vpack.c.bf16 %v3363_v1, %v3362_v52  ;;  %v5129_v52 = vld [vmem:[#allocation7 + $0x18] sm:$0xff]   ;;  %v5130_v1 = vld [vmem:[#allocation7 + $0x10] sm:$0xff]  }
0x1c8f   :  { %4989 = vmatpush3.bf16.msra.mxu1 %v5129_v52 }
0x1c90   :  { %4985 = vmatmul.mubr.msk.bf16.gmra.mxu0 %vm463_vm7, %v3366_v6  ;;  %4990 = vmatprep.subr.bf16.mxu1 %v5545_v61  ;;  %v5131_v6 = vld [vmem:[%s7092_s16 + $0x38] sm:$0xff]  }
0x1c91   :  { %5012 = vmatprep.mubr.msk.bf16.mxu0 %vm5546_vm8, %v5545_v61  ;;  %5005 = vmatpush3.bf16.msra.mxu0 %v5131_v6 }
0x1c92   :  { %5006 = vmatprep.subr.bf16.mxu0 %v5545_v61 }
0x1c93   :  { %4991 = vmatpush3.bf16.msra.mxu1 %v5130_v1 }
0x1c94   :  { %5024 = vmatprep.subr.bf16.mxu1 %v5545_v61 }
0x1d40   :  { %v3410_v10 = vpop.f32.mrf.mxu0 }
0x1d41   :  { %v6878_v32 = vadd.f32 %v3410_v10, %v6790_v8 }
0x1d42   :  { %v4978_v53 = vpop.f32.mrf.mxu0 }
0x1d43   :  { %v3433_v37 = vsel %vm383_vm6, %v6878_v32, 0.0 }
0x1d44   :  { %3434 = vadd.xlane.f32.xlu1 %v3433_v37  ;;  %v3413_v23 = vpop.f32.mrf.mxu0 }
0x1d45   :  { %v6883_v19 = vadd.f32 %v3413_v23, %v6800_v12 }
0x1d46   :  { %v4979_v28 = vpop.f32.mrf.mxu0 }
0x1d47   :  { %v3436_v7 = vsel %vm383_vm6, %v6883_v19, 0.0 }
0x1d48   :  { %3437 = vadd.xlane.f32.xlu0 %v3436_v7  ;;  %v3418_v58 = vpop.f32.mrf.mxu0 }
0x1d49   :  { %v6888_v21 = vadd.f32 %v3418_v58, %v6782_v2 }
0x1d4a   :  { %v4982_v8 = vpop.f32.mrf.mxu0 }
0x1d4b   :  { %v3439_v3 = vsel %vm383_vm6, %v6888_v21, 0.0 }
0x1d4c   :  { %3440 = vadd.xlane.f32.xlu1 %v3439_v3  ;;  %v3421_v51 = vpop.f32.mrf.mxu0 }
0x1d4d   :  { %v6893_v26 = vadd.f32 %v3421_v51, %v6793_v20 }
0x1d4e   :  { %v4983_v12 = vpop.f32.mrf.mxu0 }
0x1d4f   :  { %v3442_v39 = vsel %vm383_vm6, %v6893_v26, 0.0 }
0x1d50   :  { %3443 = vadd.xlane.f32.xlu0 %v3442_v39  ;;  %v3426_v41 = vpop.f32.mrf.mxu0 }
0x1d51   :  { %v6898_v11 = vadd.f32 %v3426_v41, %v6779_v15 }
0x1d52   :  { %v4986_v2 = vpop.f32.mrf.mxu0 }
0x1d53   :  { %v3445_v54 = vsel %vm383_vm6, %v6898_v11, 0.0 }
0x1d54   :  { %3446 = vadd.xlane.f32.xlu1 %v3445_v54  ;;  %v3429_v31 = vpop.f32.mrf.mxu0 }
0x1d55   :  { %v6903_v56 = vadd.f32 %v3429_v31, %v6787_v57 }
0x1d56   :  { %v4987_v20 = vpop.f32.mrf.mxu0 }
0x1d57   :  { %v3448_v27 = vsel %vm383_vm6, %v6903_v56, 0.0 }
0x1d58   :  { %3449 = vadd.xlane.f32.xlu0 %v3448_v27 }
0x1dcd   :  { %v3435_v9 = vpop.xlane.xlu1 %3434 }
0x1dce   :  { %v3451_v5 = vmul.f32 0.03125, %v3435_v9 }
0x1dd0   :  { %v6908_v16 = vsub.f32 %v6878_v32, %v3451_v5 }
0x1dd1   :  { %v3438_v15 = vpop.xlane.xlu0 %3437 }
0x1dd2   :  { %v3452_v13 = vmul.f32 0.03125, %v3438_v15  ;;  %v3463_v22 = vmul.f32 %v6908_v16, %v6908_v16 }
0x1dd4   :  { %v6913_v38 = vsub.f32 %v6883_v19, %v3452_v13  ;;  %v3469_v57 = vsel %vm383_vm6, %v3463_v22, 0.0 }
0x1dd5   :  { %v3441_v47 = vpop.xlane.xlu1 %3440  ;;  %3470 = vadd.xlane.f32.xlu1 %v3469_v57 }
0x1dd6   :  { %v3453_v59 = vmul.f32 0.03125, %v3441_v47  ;;  %v3464_v62 = vmul.f32 %v6913_v38, %v6913_v38 }
0x1dd8   :  { %v6919_v63 = vsub.f32 %v6888_v21, %v3453_v59  ;;  %v3472_v0 = vsel %vm383_vm6, %v3464_v62, 0.0 }
0x1dd9   :  { %v3444_v36 = vpop.xlane.xlu0 %3443  ;;  %3473 = vadd.xlane.f32.xlu0 %v3472_v0 }
0x1dda   :  { %v3454_v34 = vmul.f32 0.03125, %v3444_v36  ;;  %v3465_v29 = vmul.f32 %v6919_v63, %v6919_v63 }
0x1ddc   :  { %v3460_v42 = vsub.f32 %v6893_v26, %v3454_v34  ;;  %v3475_v48 = vsel %vm383_vm6, %v3465_v29, 0.0 }
0x1ddd   :  { %3476 = vadd.xlane.f32.xlu1 %v3475_v48  ;;  %v3447_v17 = vpop.xlane.xlu1 %3446  ;;  %v5134_v48 = vld [vmem:[%s7092_s16 + $0x20] sm:$0xff]  }
0x1dde   :  { %v3455_v18 = vmul.f32 0.03125, %v3447_v17  ;;  %v3466_v24 = vmul.f32 %v3460_v42, %v3460_v42  ;;  %v4270_v17 = vld [vmem:[#allocation9 + $0x1] ss:$0 sm:$0xff] }
0x1de0   :  { %v3461_v30 = vsub.f32 %v6898_v11, %v3455_v18  ;;  %v3478_v46 = vsel %vm383_vm6, %v3466_v24, 0.0 }
0x1de1   :  { %3479 = vadd.xlane.f32.xlu0 %v3478_v46  ;;  %v3450_v60 = vpop.xlane.xlu0 %3449 }
0x1de2   :  { %v3456_v40 = vmul.f32 0.03125, %v3450_v60  ;;  %v3467_v33 = vmul.f32 %v3461_v30, %v3461_v30 }
0x1de4   :  { %v3462_v50 = vsub.f32 %v6903_v56, %v3456_v40  ;;  %v3481_v45 = vsel %vm383_vm6, %v3467_v33, 0.0 }
0x1de5   :  { %3482 = vadd.xlane.f32.xlu1 %v3481_v45 }
0x1de6   :  { %v3468_v49 = vmul.f32 %v3462_v50, %v3462_v50 }
0x1de8   :  { %v3484_v44 = vsel %vm383_vm6, %v3468_v49, 0.0 }
0x1de9   :  { %3485 = vadd.xlane.f32.xlu0 %v3484_v44 }
0x1e5e   :  { %v3471_v10 = vpop.xlane.xlu1 %3470 }
0x1e5f   :  { %v3487_v53 = vmul.f32 0.03125, %v3471_v10 }
0x1e61   :  { %v3493_v37 = vadd.f32 1e-06, %v3487_v53 }
0x1e62   :  { %v3474_v23 = vpop.xlane.xlu0 %3473 }
0x1e63   :  { %v3488_v28 = vmul.f32 0.03125, %v3474_v23  ;;  %5307 = vrsqrt.f32 %v3493_v37 }
0x1e65   :  { %v3494_v7 = vadd.f32 1e-06, %v3488_v28 }
0x1e66   :  { %v3477_v58 = vpop.xlane.xlu1 %3476 }
0x1e67   :  { %5309 = vrsqrt.f32 %v3494_v7  ;;  %v3489_v8 = vmul.f32 0.03125, %v3477_v58 }
0x1e69   :  { %v3495_v3 = vadd.f32 1e-06, %v3489_v8 }
0x1e6a   :  { %v3480_v51 = vpop.xlane.xlu0 %3479 }
0x1e6b   :  { %v3490_v12 = vmul.f32 0.03125, %v3480_v51  ;;  %5311 = vrsqrt.f32 %v3495_v3 }
0x1e6d   :  { %v3496_v39 = vadd.f32 1e-06, %v3490_v12 }
0x1e6e   :  { %v3483_v41 = vpop.xlane.xlu1 %3482 }
0x1e6f   :  { %5313 = vrsqrt.f32 %v3496_v39  ;;  %v3491_v2 = vmul.f32 0.03125, %v3483_v41 }
0x1e70   :  { %v5308_v31 = vpop.eup %5307 }
0x1e71   :  { %v3497_v54 = vadd.f32 1e-06, %v3491_v2  ;;  %v3505_v5 = vmul.f32 %v5308_v31, %v6908_v16 }
0x1e72   :  { %v3486_v20 = vpop.xlane.xlu0 %3485 }
0x1e73   :  { %v3492_v27 = vmul.f32 0.03125, %v3486_v20  ;;  %5315 = vrsqrt.f32 %v3497_v54 }
0x1e74   :  { %v5310_v9 = vpop.eup %5309 }
0x1e75   :  { %v3506_v15 = vmul.f32 %v5310_v9, %v6913_v38  ;;  %v3498_v13 = vadd.f32 1e-06, %v3492_v27 }
0x1e77   :  { %v3511_v22 = vpack.c.bf16 %v3506_v15, %v3505_v5  ;;  %5317 = vrsqrt.f32 %v3498_v13 }
0x1e78   :  { %v5312_v57 = vpop.eup %5311 }
0x1e79   :  { %4993 = vmatmul.mubr.msk.bf16.vlgmr.msra.gmra.mxu1 %vm383_vm6, %v3511_v22  ;;  %v3507_v59 = vmul.f32 %v5312_v57, %v6919_v63  ;;  %v5132_v63 = vld [vmem:[%s7092_s16 + $0x30] sm:$0xff]   ;;  %v4284_v22 = vld [vmem:[#allocation10 + $0x1] ss:$0 sm:$0xff] }
0x1e7a   :  { %4996 = vmatprep.mubr.msk.bf16.mxu1 %vm5546_vm8, %v5545_v61  ;;  %5007 = vmatpush3.bf16.msra.mxu0 %v5132_v63 }
0x1e7b   :  { %5008 = vmatprep.subr.bf16.mxu0 %v5545_v61 }
0x1e7c   :  { %v5314_v47 = vpop.eup %5313 }
0x1e7d   :  { %v3508_v62 = vmul.f32 %v5314_v47, %v3460_v42  ;;  %v5133_v42 = vld [vmem:[%s7092_s16 + $0x28] sm:$0xff]  }
0x1e7e   :  { %5009 = vmatpush3.bf16.msra.mxu0 %v5133_v42 }
0x1e7f   :  { %v3512_v0 = vpack.c.bf16 %v3508_v62, %v3507_v59  ;;  %5010 = vmatprep.subr.bf16.mxu0 %v5545_v61 }
0x1e80   :  { %v5316_v16 = vpop.eup %5315 }
0x1e81   :  { %4997 = vmatmul.mubr.msk.bf16.gmra.mxu1 %vm383_vm6, %v3512_v0  ;;  %v3509_v36 = vmul.f32 %v5316_v16, %v3461_v30 }
0x1e82   :  { %5000 = vmatprep.mubr.msk.bf16.mxu1 %vm5546_vm8, %v5545_v61  ;;  %5011 = vmatpush3.bf16.msra.mxu0 %v5134_v48 }
0x1e83   :  { %5042 = vmatprep.subr.bf16.mxu0 %v5545_v61 }
0x1e84   :  { %v5318_v38 = vpop.eup %5317 }
0x1e85   :  { %v3510_v34 = vmul.f32 %v5318_v38, %v3462_v50 }
0x1e87   :  { %v3513_v29 = vpack.c.bf16 %v3510_v34, %v3509_v36 }
0x1e89   :  { %5001 = vmatmul.mubr.msk.bf16.gmra.mxu1 %vm383_vm6, %v3513_v29 }
0x1e8a   :  { %5030 = vmatprep.mubr.msk.bf16.mxu1 %vm5546_vm8, %v5545_v61 }
0x1f39   :  { %v3582_v18 = vpop.f32.mrf.mxu1 }
0x1f3a   :  { %v3583_v30 = vadd.f32 %v4270_v17, %v3582_v18 }
0x1f3b   :  { %v4994_v24 = vpop.f32.mrf.mxu1 }
0x1f3c   :  { %v3605_v33 = vmax.f32 %v3583_v30, 0.0 }
0x1f3d   :  { %v3585_v46 = vpop.f32.mrf.mxu1 }
0x1f3e   :  { %v3586_v60 = vadd.f32 %v4270_v17, %v3585_v46 }
0x1f3f   :  { %v4995_v40 = vpop.f32.mrf.mxu1 }
0x1f40   :  { %v3606_v50 = vmax.f32 %v3586_v60, 0.0 }
0x1f41   :  { %v3590_v45 = vpop.f32.mrf.mxu1 }
0x1f42   :  { %v3611_v49 = vpack.c.bf16 %v3606_v50, %v3605_v33  ;;  %v3591_v52 = vadd.f32 %v4270_v17, %v3590_v45 }
0x1f43   :  { %v4998_v44 = vpop.f32.mrf.mxu1 }
0x1f44   :  { %5013 = vmatmul.mubr.msk.bf16.vlgmr.msra.gmra.mxu0 %vm1770_vm9, %v3611_v49  ;;  %v3607_v53 = vmax.f32 %v3591_v52, 0.0 }
0x1f45   :  { %v3593_v1 = vpop.f32.mrf.mxu1  ;;  %5016 = vmatprep.mubr.msk.bf16.mxu0 %vm5546_vm8, %v5545_v61 }
0x1f46   :  { %v3594_v6 = vadd.f32 %v4270_v17, %v3593_v1 }
0x1f47   :  { %v4999_v10 = vpop.f32.mrf.mxu1 }
0x1f48   :  { %v3608_v37 = vmax.f32 %v3594_v6, 0.0 }
0x1f49   :  { %v3598_v23 = vpop.f32.mrf.mxu1 }
0x1f4a   :  { %v3612_v28 = vpack.c.bf16 %v3608_v37, %v3607_v53  ;;  %v3599_v58 = vadd.f32 %v4270_v17, %v3598_v23 }
0x1f4b   :  { %v5002_v7 = vpop.f32.mrf.mxu1 }
0x1f4c   :  { %5017 = vmatmul.mubr.msk.bf16.gmra.mxu0 %vm1770_vm9, %v3612_v28  ;;  %v3609_v12 = vmax.f32 %v3599_v58, 0.0 }
0x1f4d   :  { %v3601_v8 = vpop.f32.mrf.mxu1  ;;  %5020 = vmatprep.mubr.msk.bf16.mxu0 %vm5546_vm8, %v5545_v61 }
0x1f4e   :  { %v3602_v3 = vadd.f32 %v4270_v17, %v3601_v8 }
0x1f4f   :  { %v5003_v51 = vpop.f32.mrf.mxu1 }
0x1f50   :  { %v3610_v39 = vmax.f32 %v3602_v3, 0.0 }
0x1f52   :  { %v3613_v41 = vpack.c.bf16 %v3610_v39, %v3609_v12 }
0x1f54   :  { %5021 = vmatmul.mubr.msk.bf16.gmra.mxu0 %vm1770_vm9, %v3613_v41 }
0x1f55   :  { %5048 = vmatprep.mubr.msk.bf16.mxu0 %vm5546_vm8, %v5545_v61 }
0x2004   :  { %v3698_v2 = vpop.f32.mrf.mxu0 }
0x2005   :  { %v3699_v48 = vadd.f32 %v4284_v22, %v3698_v2 }
0x2006   :  { %v5014_v54 = vpop.f32.mrf.mxu0 }
0x2008   :  { %v3701_v31 = vpop.f32.mrf.mxu0 }
0x2009   :  { %v3702_v29 = vadd.f32 %v4284_v22, %v3701_v31 }
0x200a   :  { %v5015_v20 = vpop.f32.mrf.mxu0 }
0x200c   :  { %v3706_v27 = vpop.f32.mrf.mxu0 }
0x200d   :  { %v3707_v38 = vadd.f32 %v4284_v22, %v3706_v27 }
0x200e   :  { %v5018_v9 = vpop.f32.mrf.mxu0 }
0x200f   :  { %v3723_v17 = vadd.f32 %v3707_v38, %v6888_v21 }
0x2010   :  { %v3709_v5 = vpop.f32.mrf.mxu0 }
0x2011   :  { %v3710_v62 = vadd.f32 %v4284_v22, %v3709_v5 }
0x2012   :  { %v5019_v15 = vpop.f32.mrf.mxu0 }
0x2013   :  { %v3724_v63 = vadd.f32 %v3710_v62, %v6893_v26  ;;  %v3721_v26 = vadd.f32 %v3699_v48, %v6878_v32 }
0x2014   :  { %v3714_v13 = vpop.f32.mrf.mxu0 }
0x2015   :  { %v3715_v47 = vadd.f32 %v4284_v22, %v3714_v13  ;;  %v6981_v24 = vpack.c.bf16 %v3724_v63, %v3723_v17  ;;  %v5137_v17 = vld [vmem:[#allocation13 + $0x8] sm:$0xff]  }
0x2016   :  { %v5022_v57 = vpop.f32.mrf.mxu0 }
0x2017   :  { %v3725_v36 = vadd.f32 %v3715_v47, %v6898_v11  ;;  %v3722_v11 = vadd.f32 %v3702_v29, %v6883_v19 }
0x2018   :  { %v3717_v59 = vpop.f32.mrf.mxu0 }
0x2019   :  { %v3718_v0 = vadd.f32 %v4284_v22, %v3717_v59  ;;  %v6987_v21 = vpack.c.bf16 %v3722_v11, %v3721_v26 }
0x201a   :  { %v5023_v16 = vpop.f32.mrf.mxu0 }
0x201b   :  { %v3726_v34 = vadd.f32 %v3718_v0, %v6903_v56  ;;  %v3734_v56 = vsel %vm383_vm6, %v6981_v24, 0  ;;  %v3731_v19 = vsel %vm383_vm6, %v6987_v21, 0 }
0x201d   :  { %v6973_v42 = vpack.c.bf16 %v3726_v34, %v3725_v36 }
0x201f   :  { %5043 = vmatpush3.bf16.msra.mxu0 %v6973_v42  ;;  %v3737_v18 = vsel %vm383_vm6, %v6973_v42, 0 }
0x2020   :  { %5025 = vmatpush3.bf16.xpose.msra.mxu1 %v3737_v18  ;;  %5044 = vmatprep.subr.bf16.mxu0 %v5545_v61 }
0x2021   :  { %5026 = vmatprep.subr.bf16.mxu1 %v5545_v61 }
0x2023   :  { %5045 = vmatpush3.bf16.msra.mxu0 %v6981_v24 }
0x2024   :  { %5046 = vmatprep.subr.bf16.mxu0 %v5545_v61 }
0x2027   :  { %5047 = vmatpush3.bf16.msra.mxu0 %v6987_v21 }
0x2028   :  { %5027 = vmatpush3.bf16.xpose.msra.mxu1 %v3734_v56  ;;  %5076 = vmatprep.subr.bf16.mxu0 %v5545_v61 }
0x2029   :  { %5028 = vmatprep.subr.bf16.mxu1 %v5545_v61 }
0x2030   :  { %5029 = vmatpush3.bf16.xpose.msra.mxu1 %v3731_v19 }
0x2031   :  { %5060 = vmatprep.subr.bf16.mxu1 %v5545_v61 }
0x2037   :  { %5031 = vmatmul.mubr.msk.bf16.vlgmr.msra.gmra.mxu1 %vm383_vm6, %v6987_v21 }
0x2038   :  { %5034 = vmatprep.mubr.msk.bf16.mxu1 %vm5546_vm8, %v5545_v61  ;;  %5061 = vmatpush3.bf16.msra.mxu1 %v5137_v17 }
0x2039   :  { %5062 = vmatprep.subr.bf16.mxu1 %v5545_v61 }
0x203f   :  { %5035 = vmatmul.mubr.msk.bf16.gmra.mxu1 %vm383_vm6, %v6981_v24 }
0x2040   :  { %5038 = vmatprep.mubr.msk.bf16.mxu1 %vm5546_vm8, %v5545_v61 }
0x2047   :  { %5039 = vmatmul.mubr.msk.bf16.gmra.mxu1 %vm383_vm6, %v6973_v42 }
0x2048   :  { %5064 = vmatprep.mubr.msk.bf16.mxu1 %vm5546_vm8, %v5545_v61 }
0x20f7   :  { %v3773_v32 = vpop.f32.mrf.mxu1 }
0x20f8   :  { %v3774_v30 = vadd.f32 %v3773_v32, %v6358_v55 }
0x20f9   :  { %v5032_v46 = vpop.f32.mrf.mxu1 }
0x20fa   :  { %v3796_v60 = vsel %vm463_vm7, %v3774_v30, -inf }
0x20fb   :  { %3797 = vmax.xlane.f32.xlu1 %v3796_v60  ;;  %v3776_v40 = vpop.f32.mrf.mxu1 }
0x20fc   :  { %v3777_v33 = vadd.f32 %v3776_v40, %v6366_v14 }
0x20fd   :  { %v5033_v50 = vpop.f32.mrf.mxu1 }
0x20fe   :  { %v3799_v45 = vsel %vm463_vm7, %v3777_v33, -inf }
0x20ff   :  { %3800 = vmax.xlane.f32.xlu0 %v3799_v45  ;;  %v3781_v49 = vpop.f32.mrf.mxu1 }
0x2100   :  { %v3782_v44 = vadd.f32 %v3781_v49, %v6375_v25  ;;  %v5136_v49 = vld [vmem:[#allocation12] sm:$0xff]  }
0x2101   :  { %v5036_v52 = vpop.f32.mrf.mxu1 }
0x2102   :  { %v3802_v1 = vsel %vm463_vm7, %v3782_v44, -inf }
0x2103   :  { %3803 = vmax.xlane.f32.xlu1 %v3802_v1  ;;  %v3784_v6 = vpop.f32.mrf.mxu1 }
0x2104   :  { %v3785_v55 = vadd.f32 %v3784_v6, %v6384_v43 }
0x2105   :  { %v5037_v10 = vpop.f32.mrf.mxu1 }
0x2106   :  { %v3805_v53 = vsel %vm463_vm7, %v3785_v55, -inf }
0x2107   :  { %3806 = vmax.xlane.f32.xlu0 %v3805_v53  ;;  %v3789_v37 = vpop.f32.mrf.mxu1 }
0x2108   :  { %v3790_v14 = vadd.f32 %v3789_v37, %v6390_v35 }
0x2109   :  { %v5040_v23 = vpop.f32.mrf.mxu1 }
0x210a   :  { %v3808_v28 = vsel %vm463_vm7, %v3790_v14, -inf  ;;  %v5138_v23 = vld [vmem:[#allocation13] sm:$0xff]  }
0x210b   :  { %3809 = vmax.xlane.f32.xlu1 %v3808_v28  ;;  %v3792_v7 = vpop.f32.mrf.mxu1  ;;  %5063 = vmatpush3.bf16.msra.mxu1 %v5138_v23 }
0x210c   :  { %v3793_v25 = vadd.f32 %v3792_v7, %v6396_v4 }
0x210d   :  { %v5041_v58 = vpop.f32.mrf.mxu1 }
0x210e   :  { %v3811_v8 = vsel %vm463_vm7, %v3793_v25, -inf }
0x210f   :  { %3812 = vmax.xlane.f32.xlu0 %v3811_v8 }
0x2184   :  { %v3798_v3 = vpop.xlane.xlu1 %3797 }
0x2185   :  { %v3814_v43 = vsub.f32 %v3774_v30, %v3798_v3 }
0x2187   :  { %v3820_v51 = vmul.f32 1.442695, %v3814_v43 }
0x2188   :  { %v3801_v12 = vpop.xlane.xlu0 %3800 }
0x2189   :  { %5319 = vpow2.f32 %v3820_v51  ;;  %v3815_v39 = vsub.f32 %v3777_v33, %v3801_v12  ;;  %v5135_v33 = vld [vmem:[#allocation12 + $0x8] sm:$0xff]  }
0x218b   :  { %v3822_v41 = vmul.f32 1.442695, %v3815_v39 }
0x218c   :  { %v3804_v2 = vpop.xlane.xlu1 %3803 }
0x218d   :  { %5321 = vpow2.f32 %v3822_v41  ;;  %v3816_v35 = vsub.f32 %v3782_v44, %v3804_v2 }
0x218f   :  { %v3824_v54 = vmul.f32 1.442695, %v3816_v35 }
0x2190   :  { %v3807_v31 = vpop.xlane.xlu0 %3806 }
0x2191   :  { %5323 = vpow2.f32 %v3824_v54  ;;  %v3817_v20 = vsub.f32 %v3785_v55, %v3807_v31 }
0x2193   :  { %v3826_v27 = vmul.f32 1.442695, %v3817_v20 }
0x2194   :  { %v3810_v4 = vpop.xlane.xlu1 %3809 }
0x2195   :  { %5325 = vpow2.f32 %v3826_v27  ;;  %v3818_v9 = vsub.f32 %v3790_v14, %v3810_v4 }
0x2196   :  { %v5320_v5 = vpop.eup %5319 }
0x2197   :  { %v3828_v15 = vmul.f32 1.442695, %v3818_v9  ;;  %v3832_v13 = vsel %vm463_vm7, %v5320_v5, 0.0 }
0x2198   :  { %3833 = vadd.xlane.f32.xlu1 %v3832_v13  ;;  %v3813_v22 = vpop.xlane.xlu0 %3812 }
0x2199   :  { %5327 = vpow2.f32 %v3828_v15  ;;  %v3819_v57 = vsub.f32 %v3793_v25, %v3813_v22 }
0x219a   :  { %v5322_v47 = vpop.eup %5321 }
0x219b   :  { %v3830_v59 = vmul.f32 1.442695, %v3819_v57  ;;  %v3835_v62 = vsel %vm463_vm7, %v5322_v47, 0.0 }
0x219c   :  { %3836 = vadd.xlane.f32.xlu0 %v3835_v62 }
0x219d   :  { %5329 = vpow2.f32 %v3830_v59 }
0x219e   :  { %v5324_v0 = vpop.eup %5323 }
0x219f   :  { %v3838_v16 = vsel %vm463_vm7, %v5324_v0, 0.0 }
0x21a0   :  { %3839 = vadd.xlane.f32.xlu1 %v3838_v16 }
0x21a2   :  { %v5326_v38 = vpop.eup %5325 }
0x21a3   :  { %v3841_v36 = vsel %vm463_vm7, %v5326_v38, 0.0 }
0x21a4   :  { %3842 = vadd.xlane.f32.xlu0 %v3841_v36 }
0x21a6   :  { %v5328_v34 = vpop.eup %5327 }
0x21a7   :  { %v3844_v29 = vsel %vm463_vm7, %v5328_v34, 0.0 }
0x21a8   :  { %3845 = vadd.xlane.f32.xlu1 %v3844_v29 }
0x21aa   :  { %v5330_v63 = vpop.eup %5329 }
0x21ab   :  { %v3847_v48 = vsel %vm463_vm7, %v5330_v63, 0.0 }
0x21ac   :  { %3848 = vadd.xlane.f32.xlu0 %v3847_v48 }
0x2221   :  { %v3834_v18 = vpop.xlane.xlu1 %3833 }
0x2222   :  { %5331 = vrcp.f32 %v3834_v18 }
0x2225   :  { %v3837_v11 = vpop.xlane.xlu0 %3836 }
0x2226   :  { %5333 = vrcp.f32 %v3837_v11 }
0x2229   :  { %v3840_v26 = vpop.xlane.xlu1 %3839 }
0x222a   :  { %5335 = vrcp.f32 %v3840_v26 }
0x222d   :  { %v3843_v56 = vpop.xlane.xlu0 %3842 }
0x222e   :  { %5337 = vrcp.f32 %v3843_v56 }
0x222f   :  { %v5332_v19 = vpop.eup %5331 }
0x2230   :  { %v3856_v46 = vmul.f32 %v5332_v19, %v5320_v5 }
0x2231   :  { %v3846_v32 = vpop.xlane.xlu1 %3845 }
0x2232   :  { %5339 = vrcp.f32 %v3846_v32 }
0x2233   :  { %v5334_v30 = vpop.eup %5333 }
0x2234   :  { %v3857_v60 = vmul.f32 %v5334_v30, %v5322_v47 }
0x2235   :  { %v3849_v40 = vpop.xlane.xlu0 %3848 }
0x2236   :  { %v3862_v50 = vpack.c.bf16 %v3857_v60, %v3856_v46  ;;  %5341 = vrcp.f32 %v3849_v40 }
0x2237   :  { %v5336_v45 = vpop.eup %5335 }
0x2238   :  { %5049 = vmatmul.mubr.msk.bf16.vlgmr.msra.gmra.mxu0 %vm463_vm7, %v3862_v50  ;;  %v3858_v52 = vmul.f32 %v5336_v45, %v5324_v0 }
0x2239   :  { %5052 = vmatprep.mubr.msk.bf16.mxu0 %vm5546_vm8, %v5545_v61  ;;  %5077 = vmatpush3.bf16.msra.mxu0 %v5135_v33 }
0x223a   :  { %5078 = vmatprep.subr.bf16.mxu0 %v5545_v61 }
0x223b   :  { %v5338_v44 = vpop.eup %5337 }
0x223c   :  { %v3859_v1 = vmul.f32 %v5338_v44, %v5326_v38 }
0x223d   :  { %5079 = vmatpush3.bf16.msra.mxu0 %v5136_v49 }
0x223e   :  { %v3863_v6 = vpack.c.bf16 %v3859_v1, %v3858_v52 }
0x223f   :  { %v5340_v55 = vpop.eup %5339 }
0x2240   :  { %5053 = vmatmul.mubr.msk.bf16.gmra.mxu0 %vm463_vm7, %v3863_v6  ;;  %v3860_v53 = vmul.f32 %v5340_v55, %v5328_v34 }
0x2241   :  { %5056 = vmatprep.mubr.msk.bf16.mxu0 %vm5546_vm8, %v5545_v61 }
0x2243   :  { %v5342_v10 = vpop.eup %5341 }
0x2244   :  { %v3861_v37 = vmul.f32 %v5342_v10, %v5330_v63 }
0x2246   :  { %v3864_v14 = vpack.c.bf16 %v3861_v37, %v3860_v53 }
0x2248   :  { %5057 = vmatmul.mubr.msk.bf16.gmra.mxu0 %vm463_vm7, %v3864_v14 }
0x2249   :  { %5080 = vmatprep.mubr.msk.bf16.mxu0 %vm5546_vm8, %v5545_v61 }
0x2250   :  { %5081 = vmatmul.mubr.msk.bf16.vlgmr.msra.gmra.mxu0 %vm383_vm6, %v6987_v21 }
0x2251   :  { %5084 = vmatprep.mubr.msk.bf16.mxu0 %vm5546_vm8, %v5545_v61 }
0x2258   :  { %5085 = vmatmul.mubr.msk.bf16.gmra.mxu0 %vm383_vm6, %v6981_v24 }
0x2259   :  { %5088 = vmatprep.mubr.msk.bf16.mxu0 %vm5546_vm8, %v5545_v61 }
0x2260   :  { %5089 = vmatmul.mubr.msk.bf16.gmra.mxu0 %vm383_vm6, %v6973_v42 }
0x22f8   :  { %v3908_v28 = vpop.f32.mrf.mxu0 }
0x22fa   :  { %v5050_v7 = vpop.f32.mrf.mxu0 }
0x22fc   :  { %v3911_v25 = vpop.f32.mrf.mxu0 }
0x22fd   :  { %v3935_v58 = vpack.c.bf16 %v3911_v25, %v3908_v28 }
0x22fe   :  { %v5051_v8 = vpop.f32.mrf.mxu0 }
0x22ff   :  { %5065 = vmatmul.mubr.msk.bf16.vlgmr.msra.gmra.mxu1 %vm383_vm6, %v3935_v58 }
0x2300   :  { %v3916_v21 = vpop.f32.mrf.mxu0  ;;  %5068 = vmatprep.mubr.msk.bf16.mxu1 %vm5546_vm8, %v5545_v61 }
0x2302   :  { %v5054_v24 = vpop.f32.mrf.mxu0 }
0x2304   :  { %v3919_v3 = vpop.f32.mrf.mxu0 }
0x2305   :  { %v3936_v43 = vpack.c.bf16 %v3919_v3, %v3916_v21 }
0x2306   :  { %v5055_v51 = vpop.f32.mrf.mxu0 }
0x2307   :  { %5069 = vmatmul.mubr.msk.bf16.gmra.mxu1 %vm383_vm6, %v3936_v43 }
0x2308   :  { %v3924_v42 = vpop.f32.mrf.mxu0  ;;  %5072 = vmatprep.mubr.msk.bf16.mxu1 %vm5546_vm8, %v5545_v61  ;;  %v4308_v61 = vld [vmem:[%s7096_s20] ss:$0 sm:$0xff] }
0x230a   :  { %v5058_v12 = vpop.f32.mrf.mxu0 }
0x230c   :  { %v3927_v39 = vpop.f32.mrf.mxu0 }
0x230d   :  { %v3937_v41 = vpack.c.bf16 %v3927_v39, %v3924_v42 }
0x230e   :  { %v5059_v2 = vpop.f32.mrf.mxu0 }
0x230f   :  { %5073 = vmatmul.mubr.msk.bf16.gmra.mxu1 %vm383_vm6, %v3937_v41 }
0x2310   :  { %v4066_v35 = vpop.f32.mrf.mxu0 }
0x2312   :  { %v5082_v54 = vpop.f32.mrf.mxu0 }
0x2314   :  { %v4069_v31 = vpop.f32.mrf.mxu0 }
0x2316   :  { %v5083_v20 = vpop.f32.mrf.mxu0 }
0x2318   :  { %v4074_v27 = vpop.f32.mrf.mxu0 }
0x231a   :  { %v5086_v4 = vpop.f32.mrf.mxu0 }
0x231c   :  { %v4077_v9 = vpop.f32.mrf.mxu0 }
0x231e   :  { %v5087_v5 = vpop.f32.mrf.mxu0 }
0x2320   :  { %v4082_v15 = vpop.f32.mrf.mxu0 }
0x2322   :  { %v5090_v13 = vpop.f32.mrf.mxu0 }
0x2324   :  { %v4085_v22 = vpop.f32.mrf.mxu0 }
0x2326   :  { %v5091_v57 = vpop.f32.mrf.mxu0 }
0x23bf   :  { %v3997_v47 = vpop.f32.mrf.mxu1 }
0x23c0   :  { %v4067_v59 = vadd.f32 %v4066_v35, %v3997_v47 }
0x23c1   :  { %v5066_v62 = vpop.f32.mrf.mxu1 }
0x23c2   :  { %v4096_v0 = vadd.f32 %v4308_v61, %v4067_v59 }
0x23c3   :  { %v4000_v16 = vpop.f32.mrf.mxu1 }
0x23c4   :  { %4102 = vst [vmem:[%s7097_s21] sm:$0xff] %v4096_v0  ;;  %v4070_v38 = vadd.f32 %v4069_v31, %v4000_v16 }
0x23c5   :  { %v5067_v36 = vpop.f32.mrf.mxu1 }
0x23c6   :  { %v4097_v34 = vadd.f32 %v4308_v61, %v4070_v38 }
0x23c7   :  { %v4005_v29 = vpop.f32.mrf.mxu1 }
0x23c8   :  { %4103 = vst [vmem:[%s7097_s21 + $0x8] sm:$0xff] %v4097_v34  ;;  %v4075_v63 = vadd.f32 %v4074_v27, %v4005_v29 }
0x23c9   :  { %v5070_v48 = vpop.f32.mrf.mxu1 }
0x23ca   :  { %v4098_v17 = vadd.f32 %v4308_v61, %v4075_v63 }
0x23cb   :  { %v4008_v18 = vpop.f32.mrf.mxu1 }
0x23cc   :  { %4104 = vst [vmem:[%s7097_s21 + $0x10] sm:$0xff] %v4098_v17  ;;  %v4078_v11 = vadd.f32 %v4077_v9, %v4008_v18 }
0x23cd   :  { %v5071_v26 = vpop.f32.mrf.mxu1 }
0x23ce   :  { %v4099_v56 = vadd.f32 %v4308_v61, %v4078_v11 }
0x23cf   :  { %v4013_v19 = vpop.f32.mrf.mxu1 }
0x23d0   :  { %4105 = vst [vmem:[%s7097_s21 + $0x18] sm:$0xff] %v4099_v56  ;;  %v4083_v32 = vadd.f32 %v4082_v15, %v4013_v19 }
0x23d1   :  { %v5074_v30 = vpop.f32.mrf.mxu1 }
0x23d2   :  { %v4100_v46 = vadd.f32 %v4308_v61, %v4083_v32 }
0x23d3   :  { %v4016_v60 = vpop.f32.mrf.mxu1 }
0x23d4   :  { %4106 = vst [vmem:[%s7097_s21 + $0x20] sm:$0xff] %v4100_v46  ;;  %v4086_v40 = vadd.f32 %v4085_v22, %v4016_v60 }
0x23d5   :  { %v5075_v33 = vpop.f32.mrf.mxu1 }
0x23d6   :  { %v4101_v50 = vadd.f32 %v4308_v61, %v4086_v40 }
0x23d8   :  { %4107 = vst [vmem:[%s7097_s21 + $0x28] sm:$0xff] %v4101_v50 }
0x23d9   :  { %4112 = vsyncpa [#allocation3], 1 }
0x23da   :  { %4113 = vsyncpa [#allocation5], 1 }
0x23db   :  { %4114 = vsyncpa [#allocation8], 1 }
0x23dc   :  { %4115 = vsyncpa [#allocation11], 1 }
0x23dd   :  { %4116 = vsyncpa [#allocation14], 1 }

</bundles_post_ra>
